<compile_context>
chip_gen: v7x
topology: tpu7x:2x2x1
jax: 0.10.0
libtpu: 0.0.40
codegen_flags: <defaults>
</compile_context>

<pallas_src>
import jax
import jax.numpy as jnp
from jax.experimental import pallas as pl
from jax.experimental.pallas import tpu as pltpu

_EPS = 1e-5
_LANE = 128


def _round_up(x, m):
    return ((x + m - 1) // m) * m


def _pick_row_tile(Ho, Wo, Cop, budget_bytes=4 * 1024 * 1024):
    """Largest divisor of Ho whose f32 row-tile fits the per-step byte budget."""
    best = 1
    for t in range(1, Ho + 1):
        if Ho % t == 0 and t * Wo * Cop * 4 <= budget_bytes:
            best = t
    return best


def _vmem_limit_bytes():
    # v5e/v6e: 128 MiB physical -> 96 MiB; v7x: 64 MiB physical -> 48 MiB.
    try:
        cap = pltpu.get_tpu_info().vmem_capacity_bytes
        return int(min(100 * 1024 * 1024, cap * 3 // 4))
    except Exception:
        return 48 * 1024 * 1024


# -----------------------------------------------------------------------------
# Kernels 1 & 2: 3x3 conv (pad=1) + per-image channel sum / sum-of-squares.
# -----------------------------------------------------------------------------
def make_conv_stats_kernel(Hi, Wi, Cin_p, Cout_p, stride, pre_affine):
    """3x3 conv, pad=1, stride=`stride`, emitting bf16 conv output + f32 stats.

    pre_affine=False: input block is the raw (1, Hi, Wi, Cin_p) bf16 image.
    pre_affine=True : input block is the previous conv output (bf16); a folded
                      BatchNorm affine + ReLU is applied before the conv.
    Both paths stage the (affine'd) input once, in f32, into a small VMEM halo
    scratch whose 1-pixel border is re-zeroed (border only) every step.
    """
    Ho = (Hi - 1) // stride + 1
    Wo = (Wi - 1) // stride + 1
    R = Ho * Wo
    span_w = stride * (Wo - 1) + 1
    f32, bf16 = jnp.float32, jnp.bfloat16

    def kernel(*refs):
        if pre_affine:
            x_ref, scale_ref, shift_ref, w_ref, y_ref, stats_ref, zp_ref = refs
        else:
            x_ref, w_ref, y_ref, stats_ref, zp_ref = refs

        # Zero ONLY the 1-pixel border of the halo scratch (interior is fully
        # overwritten below).  Much cheaper on the vector-store slot than the
        # previous full-tile zero fill.
        zp_ref[:, 0:1, :] = jnp.zeros((Hi + 2, 1, Cin_p), f32)
        zp_ref[:, Wi + 1:Wi + 2, :] = jnp.zeros((Hi + 2, 1, Cin_p), f32)
        zp_ref[0:1, :, :] = jnp.zeros((1, Wi + 2, Cin_p), f32)
        zp_ref[Hi + 1:Hi + 2, :, :] = jnp.zeros((1, Wi + 2, Cin_p), f32)

        # Single bf16 -> f32 widen per element (hoisted out of the tap loop).
        xin = x_ref[0].reshape(Hi * Wi, Cin_p).astype(f32)
        if pre_affine:
            # Folded BatchNorm (scale/shift) + ReLU in one f32 VPU pass.
            xin = jnp.maximum(xin * scale_ref[...] + shift_ref[...], 0.0)
        zp_ref[1:Hi + 1, 1:Wi + 1, :] = xin.reshape(Hi, Wi, Cin_p)

        # Three MXU matmuls (dy taps); dx taps folded into K = 3*Cin_p.
        # Results are summed in values -> exactly one store into y_ref.
        acc = None
        for dy in range(3):
            if stride == 1:
                rows = zp_ref[dy:dy + Ho]                    # (Ho, Wi+2, Cin_p) f32
            else:
                rows = zp_ref[pl.ds(dy, Ho, stride)]
            slab = jnp.concatenate(
                [rows[:, dx:dx + span_w:stride, :] for dx in range(3)],
                axis=-1)                                     # (Ho, Wo, 3*Cin_p)
            slab = slab.reshape(R, 3 * Cin_p).astype(bf16)
            part = jnp.dot(slab, w_ref[dy], preferred_element_type=f32)
            acc = part if acc is None else acc + part

        # Stats from the exact f32 accumulator, BEFORE the bf16 narrowing store.
        s = jnp.sum(acc, axis=0, keepdims=True)              # (1, Cout_p)
        sq = jnp.sum(acc * acc, axis=0, keepdims=True)       # (1, Cout_p)
        stats_ref[0] = jnp.concatenate([s, sq], axis=0)      # (2, Cout_p)
        y_ref[0] = acc.reshape(Ho, Wo, Cout_p).astype(y_ref.dtype)

    return kernel


# -----------------------------------------------------------------------------
# Kernel 3: bn2 affine + skip (identity or 1x1 conv) + ReLU.  Row-tiled grid.
# -----------------------------------------------------------------------------
def make_bn_skip_relu_kernel(Th, Wo, Cin_p, Cout_p, use_1x1conv):
    R = Th * Wo
    f32 = jnp.float32

    def kernel(*refs):
        if use_1x1conv:
            y_ref, scale_ref, shift_ref, xs_ref, w3_ref, b3_ref, out_ref = refs
            skip = jnp.dot(xs_ref[0].reshape(R, Cin_p), w3_ref[...],
                           preferred_element_type=f32) + b3_ref[...]
        else:
            y_ref, scale_ref, shift_ref, xs_ref, out_ref = refs
            skip = xs_ref[0].reshape(R, Cout_p).astype(f32)
        y = y_ref[0].reshape(R, Cout_p).astype(f32) * scale_ref[...] + shift_ref[...]
        out_ref[0] = jnp.maximum(y + skip, 0.0).reshape(Th, Wo, Cout_p)

    return kernel


# -----------------------------------------------------------------------------
# Wrapper (NCHW in / NCHW out).
# -----------------------------------------------------------------------------
def residual_block(x_nchw, params, *, stride=1, use_1x1conv=False):
    N, Cin, H, W = x_nchw.shape
    Cout = params["w1"].shape[-1]
    if not use_1x1conv and (stride != 1 or Cin != Cout):
        raise ValueError(
            "identity skip requires stride == 1 and input_channels == num_channels")
    Ho = (H - 1) // stride + 1
    Wo = (W - 1) // stride + 1
    count = float(N * Ho * Wo)

    Cip = _round_up(Cin, _LANE)
    Cop = _round_up(Cout, _LANE)
    f32, bf16 = jnp.float32, jnp.bfloat16

    # ----- layout plumbing (XLA side): NHWC, channels padded to lane width ----
    # TODO(synk): if the surrounding network stays NHWC / lane-padded, these
    #             transpose/pad/slice passes (full HBM read+write each) disappear.
    x = jnp.transpose(x_nchw, (0, 2, 3, 1)).astype(f32)
    x = jnp.pad(x, ((0, 0), (0, 0), (0, 0), (0, Cip - Cin)))          # (N,H,W,Cip)
    x_bf = x.astype(bf16)                                             # stage-1 / skip stream

    def pad_vec(v, C, Cp):
        return jnp.pad(v.astype(f32).reshape(1, C), ((0, 0), (0, Cp - C)))

    w1 = jnp.pad(params["w1"].astype(f32),
                 ((0, 0), (0, 0), (0, Cip - Cin), (0, Cop - Cout)))
    w1 = w1.reshape(3, 3 * Cip, Cop).astype(bf16)                     # dx folded into K
    w2 = jnp.pad(params["w2"].astype(f32),
                 ((0, 0), (0, 0), (0, Cop - Cout), (0, Cop - Cout)))
    w2 = w2.reshape(3, 3 * Cop, Cop).astype(bf16)
    g1, be1 = pad_vec(params["g1"], Cout, Cop), pad_vec(params["be1"], Cout, Cop)
    g2, be2 = pad_vec(params["g2"], Cout, Cop), pad_vec(params["be2"], Cout, Cop)
    # NOTE: conv biases b1/b2 cancel exactly under training-mode BatchNorm
    # (BN subtracts the per-channel mean), so they are folded away entirely.

    vmem_limit = _vmem_limit_bytes()
    cparams12 = pltpu.CompilerParams(
        dimension_semantics=("parallel",), vmem_limit_bytes=vmem_limit)
    cparams3 = pltpu.CompilerParams(
        dimension_semantics=("parallel", "parallel"), vmem_limit_bytes=vmem_limit)

    img_spec1 = lambda h, w, c: pl.BlockSpec((1, h, w, c), lambda i: (i, 0, 0, 0))
    vec_spec1 = pl.BlockSpec((1, Cop), lambda i: (0, 0))
    stats_spec = pl.BlockSpec((1, 2, Cop), lambda i: (i, 0, 0))

    # ----- stage 1: conv1 + per-image channel stats ----------------------------
    y1, st1 = pl.pallas_call(
        make_conv_stats_kernel(H, W, Cip, Cop, stride, pre_affine=False),
        grid=(N,),
        in_specs=[img_spec1(H, W, Cip),
                  pl.BlockSpec((3, 3 * Cip, Cop), lambda i: (0, 0, 0))],
        out_specs=(img_spec1(Ho, Wo, Cop), stats_spec),
        out_shape=(jax.ShapeDtypeStruct((N, Ho, Wo, Cop), bf16),
                   jax.ShapeDtypeStruct((N, 2, Cop), f32)),
        scratch_shapes=[pltpu.VMEM((H + 2, W + 2, Cip), f32)],
        compiler_params=cparams12,
    )(x_bf, w1)

    def bn_affine(stats, g, be):
        # Exact global BN statistics from per-image partial sums (tiny vectors).
        # NOTE: E[x^2]-E[x]^2 in f32 can cancel at production N*H*W; prefer a
        # shifted two-pass formulation if this block is used at large scale.
        s = jnp.sum(stats[:, 0, :], axis=0, keepdims=True)
        q = jnp.sum(stats[:, 1, :], axis=0, keepdims=True)
        mean = s / count
        var = jnp.maximum(q / count - mean * mean, 0.0)
        scale = g * jax.lax.rsqrt(var + _EPS)
        shift = be - mean * scale
        return scale, shift

    scale1, shift1 = bn_affine(st1, g1, be1)

    # ----- stage 2: bn1 affine + ReLU + conv2 + stats ---------------------------
    y2, st2 = pl.pallas_call(
        make_conv_stats_kernel(Ho, Wo, Cop, Cop, 1, pre_affine=True),
        grid=(N,),
        in_specs=[img_spec1(Ho, Wo, Cop), vec_spec1, vec_spec1,
                  pl.BlockSpec((3, 3 * Cop, Cop), lambda i: (0, 0, 0))],
        out_specs=(img_spec1(Ho, Wo, Cop), stats_spec),
        out_shape=(jax.ShapeDtypeStruct((N, Ho, Wo, Cop), bf16),
                   jax.ShapeDtypeStruct((N, 2, Cop), f32)),
        scratch_shapes=[pltpu.VMEM((Ho + 2, Wo + 2, Cop), f32)],
        compiler_params=cparams12,
    )(y1, scale1, shift1, w2)

    scale2, shift2 = bn_affine(st2, g2, be2)

    # ----- stage 3: bn2 affine + skip + ReLU (row-tiled 2-D grid) ----------------
    Th = _pick_row_tile(Ho, Wo, Cop)
    n_rt = Ho // Th
    tile_spec = lambda c: pl.BlockSpec((1, Th, Wo, c), lambda i, j: (i, j, 0, 0))
    vec_spec2 = pl.BlockSpec((1, Cop), lambda i, j: (0, 0))

    if use_1x1conv:
        xs = x[:, ::stride, ::stride, :][:, :Ho, :Wo, :].astype(bf16)
        w3 = jnp.pad(params["w3"].astype(f32).reshape(Cin, Cout),
                     ((0, Cip - Cin), (0, Cop - Cout))).astype(bf16)
        b3 = pad_vec(params["b3"], Cout, Cop)
        skip_args = (xs, w3, b3)
        skip_specs = [tile_spec(Cip),
                      pl.BlockSpec((Cip, Cop), lambda i, j: (0, 0)),
                      vec_spec2]
    else:
        skip_args = (x_bf,)                            # stride == 1, Cip == Cop
        skip_specs = [tile_spec(Cop)]

    out_p = pl.pallas_call(
        make_bn_skip_relu_kernel(Th, Wo, Cip, Cop, use_1x1conv),
        grid=(N, n_rt),
        in_specs=[tile_spec(Cop), vec_spec2, vec_spec2] + skip_specs,
        out_specs=tile_spec(Cop),
        out_shape=jax.ShapeDtypeStruct((N, Ho, Wo, Cop), f32),
        compiler_params=cparams3,
    )(y2, scale2, shift2, *skip_args)

    out = out_p[..., :Cout]                            # drop channel padding
    return jnp.transpose(out, (0, 3, 1, 2))            # back to NCHW


# ------------------------- pure-JAX reference (for checking) --------------------
def residual_reference(x_nchw, p, *, stride=1, use_1x1conv=False):
    dn = ("NHWC", "HWIO", "NHWC")
    hp = jax.lax.Precision.HIGHEST

    def bn(v, g, b):
        m = jnp.mean(v, axis=(0, 1, 2), keepdims=True)
        var = jnp.mean((v - m) ** 2, axis=(0, 1, 2), keepdims=True)
        return (v - m) * jax.lax.rsqrt(var + _EPS) * g + b

    x = jnp.transpose(x_nchw, (0, 2, 3, 1)).astype(jnp.float32)
    y = jax.lax.conv_general_dilated(x, p["w1"], (stride, stride), ((1, 1), (1, 1)),
                                     dimension_numbers=dn, precision=hp) + p["b1"]
    y = jax.nn.relu(bn(y, p["g1"], p["be1"]))
    y = jax.lax.conv_general_dilated(y, p["w2"], (1, 1), ((1, 1), (1, 1)),
                                     dimension_numbers=dn, precision=hp) + p["b2"]
    y = bn(y, p["g2"], p["be2"])
    if use_1x1conv:
        sk = jax.lax.conv_general_dilated(x, p["w3"], (stride, stride),
                                          ((0, 0), (0, 0)),
                                          dimension_numbers=dn, precision=hp) + p["b3"]
    else:
        sk = x
    return jnp.transpose(jax.nn.relu(y + sk), (0, 3, 1, 2))


def init_params(key, Cin, Cout, use_1x1conv):
    ks = jax.random.split(key, 12)
    p = {
        "w1": 0.1 * jax.random.normal(ks[0], (3, 3, Cin, Cout), jnp.float32),
        "b1": 0.1 * jax.random.normal(ks[1], (Cout,), jnp.float32),
        "w2": 0.1 * jax.random.normal(ks[2], (3, 3, Cout, Cout), jnp.float32),
        "b2": 0.1 * jax.random.normal(ks[3], (Cout,), jnp.float32),
        "g1": 1.0 + 0.1 * jax.random.normal(ks[4], (Cout,), jnp.float32),
        "be1": 0.1 * jax.random.normal(ks[5], (Cout,), jnp.float32),
        "g2": 1.0 + 0.1 * jax.random.normal(ks[6], (Cout,), jnp.float32),
        "be2": 0.1 * jax.random.normal(ks[7], (Cout,), jnp.float32),
    }
    if use_1x1conv:
        p["w3"] = 0.1 * jax.random.normal(ks[8], (1, 1, Cin, Cout), jnp.float32)
        p["b3"] = 0.1 * jax.random.normal(ks[9], (Cout,), jnp.float32)
    return p


if __name__ == "__main__":
    key = jax.random.PRNGKey(0)
    kx1, kx2, kp1, kp2 = jax.random.split(key, 4)

    # Config A: input_channels == num_channels, identity skip (module defaults).
    xA = jax.random.normal(kx1, (2, 8, 16, 16), jnp.float32)
    pA = init_params(kp1, 8, 8, use_1x1conv=False)
    outA = residual_block(xA, pA, stride=1, use_1x1conv=False)
    jax.block_until_ready(outA)
    refA = residual_reference(xA, pA, stride=1, use_1x1conv=False)
    assert outA.shape == (2, 8, 16, 16)
    assert jnp.allclose(outA, refA, atol=1e-1, rtol=1e-1), "config A mismatch"

    # Config B: channel change with 1x1-conv projection skip.
    xB = jax.random.normal(kx2, (2, 4, 16, 16), jnp.float32)
    pB = init_params(kp2, 4, 8, use_1x1conv=True)
    outB = residual_block(xB, pB, stride=1, use_1x1conv=True)
    jax.block_until_ready(outB)
    refB = residual_reference(xB, pB, stride=1, use_1x1conv=True)
    assert outB.shape == (2, 8, 16, 16)
    assert jnp.allclose(outB, refB, atol=1e-1, rtol=1e-1), "config B mismatch"

    print("KERNEL_OK")
</pallas_src>

<mosaic_0001>
module attributes {stable_mosaic.version = 11 : i64} {
  func.func @kernel(%arg0: i32, %arg1: memref<1x16x16x128xbf16, #tpu.memory_space<vmem>>, %arg2: memref<3x384x128xbf16, #tpu.memory_space<vmem>>, %arg3: memref<1x16x16x128xbf16, #tpu.memory_space<vmem>>, %arg4: memref<1x2x128xf32, #tpu.memory_space<vmem>>, %arg5: memref<18x18x128xf32, #tpu.memory_space<vmem>>) attributes {dimension_semantics = [#tpu.dimension_semantics<parallel>], iteration_bounds = array<i64: 2>, scalar_prefetch = 0 : i64, scratch_operands = 1 : i64, tpu.core_type = #tpu.core_type<tc>, window_params = [{transform_indices = @transform_0, window_bounds = array<i64: 1, 16, 16, 128>}, {pipeline_mode = #tpu.pipeline_mode<synchronous>, transform_indices = @transform_1, window_bounds = array<i64: 3, 384, 128>}, {transform_indices = @transform_2, window_bounds = array<i64: 1, 16, 16, 128>}, {transform_indices = @transform_3, window_bounds = array<i64: 1, 2, 128>}]} {
    %cst = arith.constant 0.000000e+00 : f32
    %0 = vector.broadcast %cst : f32 to vector<18x1x128xf32>
    %c0 = arith.constant 0 : index
    %c0_0 = arith.constant 0 : index
    %c0_1 = arith.constant 0 : index
    %1 = vector.load %arg5[%c0, %c0_0, %c0_1] : memref<18x18x128xf32, #tpu.memory_space<vmem>>, vector<18x1x128xf32>
    tpu.vector_store %arg5[%c0, %c0_0, %c0_1], %0 {strides = array<i32>} : memref<18x18x128xf32, #tpu.memory_space<vmem>>, vector<18x1x128xf32>,
    %cst_2 = arith.constant 0.000000e+00 : f32
    %2 = vector.broadcast %cst_2 : f32 to vector<18x1x128xf32>
    %c0_3 = arith.constant 0 : index
    %c17 = arith.constant 17 : index
    %c0_4 = arith.constant 0 : index
    %3 = vector.load %arg5[%c0_3, %c17, %c0_4] : memref<18x18x128xf32, #tpu.memory_space<vmem>>, vector<18x1x128xf32>
    tpu.vector_store %arg5[%c0_3, %c17, %c0_4], %2 {strides = array<i32>} : memref<18x18x128xf32, #tpu.memory_space<vmem>>, vector<18x1x128xf32>,
    %cst_5 = arith.constant 0.000000e+00 : f32
    %4 = vector.broadcast %cst_5 : f32 to vector<1x18x128xf32>
    %c0_6 = arith.constant 0 : index
    %c0_7 = arith.constant 0 : index
    %c0_8 = arith.constant 0 : index
    %5 = vector.load %arg5[%c0_6, %c0_7, %c0_8] : memref<18x18x128xf32, #tpu.memory_space<vmem>>, vector<1x18x128xf32>
    tpu.vector_store %arg5[%c0_6, %c0_7, %c0_8], %4 {strides = array<i32>} : memref<18x18x128xf32, #tpu.memory_space<vmem>>, vector<1x18x128xf32>,
    %cst_9 = arith.constant 0.000000e+00 : f32
    %6 = vector.broadcast %cst_9 : f32 to vector<1x18x128xf32>
    %c17_10 = arith.constant 17 : index
    %c0_11 = arith.constant 0 : index
    %c0_12 = arith.constant 0 : index
    %7 = vector.load %arg5[%c17_10, %c0_11, %c0_12] : memref<18x18x128xf32, #tpu.memory_space<vmem>>, vector<1x18x128xf32>
    tpu.vector_store %arg5[%c17_10, %c0_11, %c0_12], %6 {strides = array<i32>} : memref<18x18x128xf32, #tpu.memory_space<vmem>>, vector<1x18x128xf32>,
    %c0_13 = arith.constant 0 : index
    %c0_14 = arith.constant 0 : index
    %c0_15 = arith.constant 0 : index
    %c0_16 = arith.constant 0 : index
    %8 = vector.load %arg1[%c0_13, %c0_14, %c0_15, %c0_16] : memref<1x16x16x128xbf16, #tpu.memory_space<vmem>>, vector<1x16x16x128xbf16>
    %9 = vector.shape_cast %8 : vector<1x16x16x128xbf16> to vector<16x16x128xbf16>
    %10 = vector.shape_cast %9 : vector<16x16x128xbf16> to vector<256x128xbf16>
    %11 = arith.extf %10 : vector<256x128xbf16> to vector<256x128xf32>
    %12 = vector.shape_cast %11 : vector<256x128xf32> to vector<16x16x128xf32>
    %c1 = arith.constant 1 : index
    %c1_17 = arith.constant 1 : index
    %c0_18 = arith.constant 0 : index
    %13 = vector.load %arg5[%c1, %c1_17, %c0_18] : memref<18x18x128xf32, #tpu.memory_space<vmem>>, vector<16x16x128xf32>
    tpu.vector_store %arg5[%c1, %c1_17, %c0_18], %12 {strides = array<i32>} : memref<18x18x128xf32, #tpu.memory_space<vmem>>, vector<16x16x128xf32>,
    %c0_19 = arith.constant 0 : index
    %c0_20 = arith.constant 0 : index
    %c0_21 = arith.constant 0 : index
    %14 = vector.load %arg5[%c0_19, %c0_20, %c0_21] : memref<18x18x128xf32, #tpu.memory_space<vmem>>, vector<16x18x128xf32>
    %15 = vector.extract_strided_slice %14 {offsets = [0, 0, 0], sizes = [16, 16, 128], strides = [1, 1, 1]} : vector<16x18x128xf32> to vector<16x16x128xf32>
    %16 = vector.extract_strided_slice %14 {offsets = [0, 1, 0], sizes = [16, 16, 128], strides = [1, 1, 1]} : vector<16x18x128xf32> to vector<16x16x128xf32>
    %17 = vector.extract_strided_slice %14 {offsets = [0, 2, 0], sizes = [16, 16, 128], strides = [1, 1, 1]} : vector<16x18x128xf32> to vector<16x16x128xf32>
    %18 = tpu.concatenate %15, %16, %17 in 2 : vector<16x16x128xf32>, vector<16x16x128xf32>, vector<16x16x128xf32> -> vector<16x16x384xf32>
    %19 = vector.shape_cast %18 : vector<16x16x384xf32> to vector<256x384xf32>
    %20 = arith.truncf %19 : vector<256x384xf32> to vector<256x384xbf16>
    %c0_22 = arith.constant 0 : index
    %c0_23 = arith.constant 0 : index
    %c0_24 = arith.constant 0 : index
    %21 = vector.load %arg2[%c0_22, %c0_23, %c0_24] : memref<3x384x128xbf16, #tpu.memory_space<vmem>>, vector<1x384x128xbf16>
    %22 = vector.shape_cast %21 : vector<1x384x128xbf16> to vector<384x128xbf16>
    %cst_25 = arith.constant dense<0.000000e+00> : vector<256x128xf32>
    %23 = tpu.matmul %20, %22, %cst_25 {dimension_numbers = #tpu.dot_dimension_numbers<[1], [0], [0], [1], [0, 0, 1, 1], [], []>} : vector<256x384xbf16>, vector<384x128xbf16>, vector<256x128xf32> -> vector<256x128xf32>
    %c1_26 = arith.constant 1 : index
    %c0_27 = arith.constant 0 : index
    %c0_28 = arith.constant 0 : index
    %24 = vector.load %arg5[%c1_26, %c0_27, %c0_28] : memref<18x18x128xf32, #tpu.memory_space<vmem>>, vector<16x18x128xf32>
    %25 = vector.extract_strided_slice %24 {offsets = [0, 0, 0], sizes = [16, 16, 128], strides = [1, 1, 1]} : vector<16x18x128xf32> to vector<16x16x128xf32>
    %26 = vector.extract_strided_slice %24 {offsets = [0, 1, 0], sizes = [16, 16, 128], strides = [1, 1, 1]} : vector<16x18x128xf32> to vector<16x16x128xf32>
    %27 = vector.extract_strided_slice %24 {offsets = [0, 2, 0], sizes = [16, 16, 128], strides = [1, 1, 1]} : vector<16x18x128xf32> to vector<16x16x128xf32>
    %28 = tpu.concatenate %25, %26, %27 in 2 : vector<16x16x128xf32>, vector<16x16x128xf32>, vector<16x16x128xf32> -> vector<16x16x384xf32>
    %29 = vector.shape_cast %28 : vector<16x16x384xf32> to vector<256x384xf32>
    %30 = arith.truncf %29 : vector<256x384xf32> to vector<256x384xbf16>
    %c1_29 = arith.constant 1 : index
    %c0_30 = arith.constant 0 : index
    %c0_31 = arith.constant 0 : index
    %31 = vector.load %arg2[%c1_29, %c0_30, %c0_31] : memref<3x384x128xbf16, #tpu.memory_space<vmem>>, vector<1x384x128xbf16>
    %32 = vector.shape_cast %31 : vector<1x384x128xbf16> to vector<384x128xbf16>
    %cst_32 = arith.constant dense<0.000000e+00> : vector<256x128xf32>
    %33 = tpu.matmul %30, %32, %cst_32 {dimension_numbers = #tpu.dot_dimension_numbers<[1], [0], [0], [1], [0, 0, 1, 1], [], []>} : vector<256x384xbf16>, vector<384x128xbf16>, vector<256x128xf32> -> vector<256x128xf32>
    %34 = arith.addf %23, %33 : vector<256x128xf32>
    %c2 = arith.constant 2 : index
    %c0_33 = arith.constant 0 : index
    %c0_34 = arith.constant 0 : index
    %35 = vector.load %arg5[%c2, %c0_33, %c0_34] : memref<18x18x128xf32, #tpu.memory_space<vmem>>, vector<16x18x128xf32>
    %36 = vector.extract_strided_slice %35 {offsets = [0, 0, 0], sizes = [16, 16, 128], strides = [1, 1, 1]} : vector<16x18x128xf32> to vector<16x16x128xf32>
    %37 = vector.extract_strided_slice %35 {offsets = [0, 1, 0], sizes = [16, 16, 128], strides = [1, 1, 1]} : vector<16x18x128xf32> to vector<16x16x128xf32>
    %38 = vector.extract_strided_slice %35 {offsets = [0, 2, 0], sizes = [16, 16, 128], strides = [1, 1, 1]} : vector<16x18x128xf32> to vector<16x16x128xf32>
    %39 = tpu.concatenate %36, %37, %38 in 2 : vector<16x16x128xf32>, vector<16x16x128xf32>, vector<16x16x128xf32> -> vector<16x16x384xf32>
    %40 = vector.shape_cast %39 : vector<16x16x384xf32> to vector<256x384xf32>
    %41 = arith.truncf %40 : vector<256x384xf32> to vector<256x384xbf16>
    %c2_35 = arith.constant 2 : index
    %c0_36 = arith.constant 0 : index
    %c0_37 = arith.constant 0 : index
    %42 = vector.load %arg2[%c2_35, %c0_36, %c0_37] : memref<3x384x128xbf16, #tpu.memory_space<vmem>>, vector<1x384x128xbf16>
    %43 = vector.shape_cast %42 : vector<1x384x128xbf16> to vector<384x128xbf16>
    %cst_38 = arith.constant dense<0.000000e+00> : vector<256x128xf32>
    %44 = tpu.matmul %41, %43, %cst_38 {dimension_numbers = #tpu.dot_dimension_numbers<[1], [0], [0], [1], [0, 0, 1, 1], [], []>} : vector<256x384xbf16>, vector<384x128xbf16>, vector<256x128xf32> -> vector<256x128xf32>
    %45 = arith.addf %34, %44 : vector<256x128xf32>
    %cst_39 = arith.constant dense<0.000000e+00> : vector<128xf32>
    %46 = vector.multi_reduction <add>, %45, %cst_39 [0] : vector<256x128xf32> to vector<128xf32>
    %47 = vector.shape_cast %46 : vector<128xf32> to vector<1x128xf32>
    %48 = arith.mulf %45, %45 : vector<256x128xf32>
    %cst_40 = arith.constant dense<0.000000e+00> : vector<128xf32>
    %49 = vector.multi_reduction <add>, %48, %cst_40 [0] : vector<256x128xf32> to vector<128xf32>
    %50 = vector.shape_cast %49 : vector<128xf32> to vector<1x128xf32>
    %51 = tpu.concatenate %47, %50 in 0 : vector<1x128xf32>, vector<1x128xf32> -> vector<2x128xf32>
    %c0_41 = arith.constant 0 : index
    %c0_42 = arith.constant 0 : index
    %c0_43 = arith.constant 0 : index
    %52 = vector.load %arg4[%c0_41, %c0_42, %c0_43] : memref<1x2x128xf32, #tpu.memory_space<vmem>>, vector<1x2x128xf32>
    %53 = vector.shape_cast %52 : vector<1x2x128xf32> to vector<2x128xf32>
    %54 = vector.shape_cast %51 : vector<2x128xf32> to vector<1x2x128xf32>
    tpu.vector_store %arg4[%c0_41, %c0_42, %c0_43], %54 {strides = array<i32>} : memref<1x2x128xf32, #tpu.memory_space<vmem>>, vector<1x2x128xf32>,
    %55 = vector.shape_cast %45 : vector<256x128xf32> to vector<16x16x128xf32>
    %56 = arith.truncf %55 : vector<16x16x128xf32> to vector<16x16x128xbf16>
    %c0_44 = arith.constant 0 : index
    %c0_45 = arith.constant 0 : index
    %c0_46 = arith.constant 0 : index
    %c0_47 = arith.constant 0 : index
    %57 = vector.load %arg3[%c0_44, %c0_45, %c0_46, %c0_47] : memref<1x16x16x128xbf16, #tpu.memory_space<vmem>>, vector<1x16x16x128xbf16>
    %58 = vector.shape_cast %57 : vector<1x16x16x128xbf16> to vector<16x16x128xbf16>
    %59 = vector.shape_cast %56 : vector<16x16x128xbf16> to vector<1x16x16x128xbf16>
    tpu.vector_store %arg3[%c0_44, %c0_45, %c0_46, %c0_47], %59 {strides = array<i32>} : memref<1x16x16x128xbf16, #tpu.memory_space<vmem>>, vector<1x16x16x128xbf16>,
    return
  }
  func.func @transform_0(%arg0: i32) -> (i32, i32, i32, i32) {
    %c0_i32 = arith.constant 0 : i32
    %c0_i32_0 = arith.constant 0 : i32
    %c0_i32_1 = arith.constant 0 : i32
    %c0_i32_2 = arith.constant 0 : i32
    return %arg0, %c0_i32, %c0_i32_0, %c0_i32_1 : i32, i32, i32, i32
  }
  func.func @transform_1(%arg0: i32) -> (i32, i32, i32) {
    %c0_i32 = arith.constant 0 : i32
    %c0_i32_0 = arith.constant 0 : i32
    %c0_i32_1 = arith.constant 0 : i32
    %c0_i32_2 = arith.constant 0 : i32
    return %c0_i32, %c0_i32_0, %c0_i32_1 : i32, i32, i32
  }
  func.func @transform_2(%arg0: i32) -> (i32, i32, i32, i32) {
    %c0_i32 = arith.constant 0 : i32
    %c0_i32_0 = arith.constant 0 : i32
    %c0_i32_1 = arith.constant 0 : i32
    %c0_i32_2 = arith.constant 0 : i32
    return %arg0, %c0_i32, %c0_i32_0, %c0_i32_1 : i32, i32, i32, i32
  }
  func.func @transform_3(%arg0: i32) -> (i32, i32, i32) {
    %c0_i32 = arith.constant 0 : i32
    %c0_i32_0 = arith.constant 0 : i32
    %c0_i32_1 = arith.constant 0 : i32
    return %arg0, %c0_i32, %c0_i32_0 : i32, i32, i32
  }
}

</mosaic_0001>

<bundles_post_ra>
// kernel: tpu_custom_call.1
= control target key start
LH: loop header
LB: loop body
LE: loop exit
PB: predicated region body
PF: predicated region fallthrough
CT: control target
= control target key end

     0   :  { %9 = vsyncpa [#allocation4], 0  ;;  %s6558_s0 = inlined_call_operand.hbm [shape: bf16[2,16,16,128], index: 0, kind: input, shape index: {}]   ;;  %s6559_s1 = inlined_call_operand.hbm [shape: bf16[3,384,128], index: 1, kind: input, shape index: {}]   ;;  %s6560_s2 = inlined_call_operand.hbm [shape: bf16[2,16,16,128], index: 2, kind: output, shape index: {0}]   ;;  %s6561_s3 = inlined_call_operand.hbm [shape: f32[2,2,128], index: 3, kind: output, shape index: {1}]  }
   0x1   :  { %11 = vsyncpa [#allocation4 + $0x1], 0 }
   0x2   :  { %12 = vsyncpa [#allocation7], 0 }
   0x3   :  { %13 = vsyncpa [#allocation5], 0 }
   0x4   :  { %15 = vsyncpa [#allocation5 + $0x1], 0 }
   0x5   :  { %16 = vsyncpa [#allocation10], 0 }
   0x6   :  { %18 = vsyncpa [#allocation10 + $0x1], 0  ;;  %s4864_s12 = smov 0   ;;  %s4866_s13 = smov 0  }
   0x7   :  { %s4868_s14 = smov 0   ;;  %s4870_s15 = smov 0  }
   0x8 LB: > { %s4885_s16 = sadd.s32 4294967295, %s4832_s15   ;;  %s3455_s17 = sadd.s32 4294967294, %s4832_s15   ;;  %s4832_s15 = sphi %s4870_s15, %s6684_s15   ;;  %s4828_s14 = sphi %s4868_s14, %s6683_s14   ;;  %s4824_s13 = sphi %s4866_s13, %s6682_s13   ;;  %s4820_s12 = sphi %s4864_s12, %s6681_s12  }
   0x9   : > { %p44_p0 = scmp.ne.s32.totalorder %s4824_s13, %s4820_s12  ;;  %p6562_p1 = scmp.eq.s32.totalorder %s4885_s16, 0 }
   0xa   : > { %p95_p3 = scmp.eq.s32.totalorder %s3455_s17, 1  ;;  %p3456_p5 = scmp.ge.s32.totalorder %s4832_s15, 1 }
   0xb   : > { %p4894_p4 = por %p6562_p1, %p44_p0  ;;  %p128_p7 = scmp.lt.s32.totalorder %s4832_s15, 3 }
   0xc   : > { %p4899_p6 = por %p95_p3, %p44_p0  ;;  %s4834_s21 = smov [#allocation6]  }
   0xd   : > { %s6598_s18 = scalar_select %p4894_p4, 1, 0 }
   0xe   : > { %s6599_s19 = scalar_select %p4899_p6, 1, 0 }
   0xf   : > { %p4904_p8 = pnand %p3456_p5, %p128_p7  ;;  %s140_s22 = sshll.u32 %s4834_s21, 4  ;;  %s4908_s22 = int_to_ptr.vmem [resolvable:$true] %s140_s22 }
  0x10   : > { %s4920_s24 = sadd.s32 1, %s4832_s15   ;;  %s31_s25 = sadd.s32 1, %s4828_s14 }
  0x11   : > { %s6600_s20 = scalar_select %p4904_p8, 1, 0 }
  0x12   : > { %p4524_p9 = pneg %p4904_p8  ;;  %s28_s26 = ssub.s32 %s4832_s15, %s4920_s24 }
  0x13   : > { %s4672_s29 = scalar_lea.hbm %s6559_s1, 9216 }
  0x14   : > { %p4915_p11 = pnand %p4524_p9, %p6562_p1  ;;  %p4673_p12 = scmp.ne.s32.totalorder %s6559_s1, %s4672_s29 }
  0x15   : > { %p4679_p5 = scmp.lt.u32.totalorder %s4672_s29, %s6559_s1 }
  0x16   : > { %p4674_p13 = pneg %p4915_p11 }
  0x18   : > { %p4675_p0 = pnand %p4674_p13, %p4673_p12 }
  0x1a   : > { %p4676_p3 = pneg %p4675_p0 }
  0x1c   : > { %p4681_p7 = pnand %p4679_p5, %p4676_p3 }
  0x1e   : > { %4684 = shalt.err (!%p4681_p7)
}
  0x1f   : > { %s4685_s7 = scalar_lea.vmem %s4908_s22, 9216  ;;  %p4693_p2 = scmp.lt.s32.totalorder %s4908_s22, %s4908_s22 }
  0x20   : > { %p4686_p9 = scmp.ne.s32.totalorder %s4908_s22, %s4685_s7  ;;  %p4694_p6 = scmp.lt.s32.totalorder %s4685_s7, %s4685_s7 }
  0x22   : > { %p4688_p10 = pnand %p4686_p9, %p4674_p13  ;;  %p4695_p4 = por %p4694_p6, %p4693_p2 }
  0x24   : > { %p4689_p1 = pneg %p4688_p10 }
  0x26   : > { %p4696_p8 = pnand %p4695_p4, %p4689_p1 }
  0x28   : > { %4699 = shalt.err (!%p4696_p8)
}
  0x29   : > { %s4835_s8 = smov 64   ;;  %s4836_s9 = smov 4  }
  0x2a   : > { %4527 = dma.hbm_to_vmem [thread:$0]  (!%p4915_p11), %s6559_s1, 9216, %s4908_s22, [#allocation7], %s4835_s8, %s4835_s8, %s4836_s9  }
  0x2b   : > { %p29_p1 = scmp.eq.s32.totalorder %s28_s26, 0  ;;  %p38_p2 = scmp.ne.s32.totalorder %s4828_s14, %s4824_s13 }
  0x2c   : > { %p39_p4 = scmp.eq.s32.totalorder %s4832_s15, 0  ;;  %p4540_p6 = scmp.lt.s32.totalorder %s4832_s15, 2 }
  0x2d   : > { %s4954_s17 = scalar_select %p29_p1, %s4828_s14, %s31_s25  }
  0x2e   : > { %p40_p8 = por %p39_p4, %p38_p2  ;;  %p6602_p10 = scmp.eq.s32.totalorder %s4885_s16, 1 }
  0x2f   : > { %s154_s23 = sand.u32 1, %s4828_s14   ;;  %s3578_s27 = sshll.u32 %s4832_s15, 11 }
  0x30   : > { %p4958_p12 = por %p6602_p10, %p38_p2  ;;  %s3459_s28 = sshll.u32 %s154_s23, 7 }
  0x31   : > { %s4967_s4 = scalar_lea.hbm %s6558_s0, %s3578_s27  ;;  %s158_s22 = scalar_lea.vmem [#allocation3], %s3459_s28 }
  0x32   : > { %s165_s25 = sshll.u32 %s158_s22, 4  ;;  %p4969_p11 = pnand %p4540_p6, %p40_p8  ;;  %s4973_s25 = int_to_ptr.vmem [resolvable:$true] %s165_s25 }
  0x33   : > { %s4975_s5 = scalar_lea.sflag [#allocation4], %s154_s23  ;;  %s4700_s6 = scalar_lea.hbm %s4967_s4, 2048 }
  0x34   : > { %p4701_p13 = scmp.ne.s32.totalorder %s4967_s4, %s4700_s6  ;;  %p4702_p0 = pneg %p4969_p11 }
  0x35   : > { %s4705_s11 = scalar_lea.hbm %s6558_s0, 4096  ;;  %p4706_p7 = scmp.lt.u32.totalorder %s4967_s4, %s6558_s0 }
  0x36   : > { %p4703_p3 = pnand %p4702_p0, %p4701_p13  ;;  %p4707_p9 = scmp.lt.u32.totalorder %s4705_s11, %s4700_s6 }
  0x37   : > { %p4709_p2 = scmp.lt.u32.totalorder %s4700_s6, %s4967_s4 }
  0x38   : > { %p4704_p5 = pneg %p4703_p3  ;;  %p4708_p1 = por %p4707_p9, %p4706_p7 }
  0x3a   : > { %p4710_p4 = por %p4709_p2, %p4708_p1 }
  0x3c   : > { %p4711_p6 = pnand %p4710_p4, %p4704_p5 }
  0x3e   : > { %4714 = shalt.err (!%p4711_p6)
}
  0x3f   : > { %s4715_s23 = scalar_lea.vmem %s4973_s25, 2048  ;;  %s4837_s29 = smov [#allocation3]  }
  0x40   : > { %p4716_p8 = scmp.ne.s32.totalorder %s4973_s25, %s4715_s23  ;;  %s4720_s30 = sshll.u32 %s4837_s29, 4  ;;  %s4721_s30 = int_to_ptr.vmem [resolvable:$false] %s4720_s30 }
  0x41   : > { %s4722_s22 = scalar_lea.vmem %s4721_s30, 4096  ;;  %p4723_p3 = scmp.lt.s32.totalorder %s4973_s25, %s4721_s30 }
  0x42   : > { %p4718_p10 = pnand %p4716_p8, %p4702_p0  ;;  %p4724_p7 = scmp.lt.s32.totalorder %s4722_s22, %s4715_s23 }
  0x44   : > { %p4719_p13 = pneg %p4718_p10  ;;  %p4725_p9 = por %p4724_p7, %p4723_p3 }
  0x46   : > { %p4726_p1 = pnand %p4725_p9, %p4719_p13 }
  0x48   : > { %4729 = shalt.err (!%p4726_p1)
}
  0x49   : > { %4531 = dma.hbm_to_vmem [thread:$0]  (!%p4969_p11), %s4967_s4, 2048, %s4973_s25, %s4975_s5, %s4835_s8, %s4835_s8, %s4836_s9  }
  0x4a   : > { %p6605_p0 = scmp.ne.s32.totalorder %s6600_s20, 0 }
  0x4c   : > { %177 = sbr.rel (%p6605_p0) target bundleno = 672 (0x2a0), region = 28 }
  0x53   : > { %s5009_s6 = sand.u32 1, %s4824_s13   ;;  %p6606_p5 = scmp.ne.s32.totalorder %s6598_s18, 0 }
  0x54   : > { %s3463_s7 = sshll.u32 %s5009_s6, 7  ;;  %s180_s10 = scalar_lea.sflag [#allocation4], %s5009_s6 }
  0x55   : > { %s5015_s26 = scalar_lea.vmem [#allocation3], %s3463_s7 }
  0x56   : > { %4803 = dma.done.wait (%p6606_p5), %s180_s10, 2048  }
  0x57   : > { %4805 = vsyncadd (%p6606_p5), %s180_s10, 4294965248  ;;  %p6607_p11 = scmp.eq.s32.totalorder %s4885_s16, 0 }
  0x59   : > { %4807 = dma.done.wait (%p6607_p11), [#allocation7], 9216   ;;  %p6608_p2 = pmov %p6607_p11 }
  0x5a   : > { %v4838_v0 = vmov 0.0   ;;  %v4581_v1 = vld [vmem:[#allocation6 + $0x100] sm:$0xff]   ;;  %v4584_v4 = vld [vmem:[#allocation6 + $0x108] sm:$0xff]   ;;  %v4587_v7 = vld [vmem:[#allocation6 + $0x110] sm:$0xff]   ;;  %vm452_vm0 = vcmask 1046528   ;;  %vm565_vm1 = vcmask 1045504  }
  0x5b   : > { %4809 = vsyncadd (%p6608_p2), [#allocation7], 4294958080  ;;  %217 = vst [vmem:[#allocation2 + $0x18] sm:$0x1] %v4838_v0  ;;  %v5062_v2 = vld [vmem:[#allocation6 + $0x140] sm:$0xff]   ;;  %3786 = vmatprep.subr.bf16.mxu0 %v4581_v1  ;;  %v5066_v5 = vld [vmem:[#allocation6 + $0x148] sm:$0xff]  }
  0x5c   : > { %235 = vst [vmem:[#allocation2 + $0x29] sm:$0x1] %v4838_v0  ;;  %218 = vst [vmem:[#allocation2 + $0x30] sm:$0x1] %v4838_v0  ;;  %v4583_v3 = vld [vmem:[#allocation6 + $0xc0] sm:$0xff]   ;;  %4338 = vmatprep.subr.bf16.mxu1 %v5062_v2  ;;  %v4586_v6 = vld [vmem:[#allocation6 + $0xc8] sm:$0xff]  }
  0x5d   : > { %219 = vst [vmem:[#allocation2 + $0x48] sm:$0x1] %v4838_v0  ;;  %220 = vst [vmem:[#allocation2 + $0x60] sm:$0x1] %v4838_v0  ;;  %3787 = vmatpush3.bf16.msra.mxu0 %v4583_v3  ;;  %4346 = vmatpush3.bf16.msra.mxu1 %v5062_v2  ;;  %v5069_v8 = vld [vmem:[#allocation6 + $0x150] sm:$0xff]   ;;  %v4590_v10 = vld [vmem:[#allocation6 + $0x118] sm:$0xff]  }
  0x5e   : > { %221 = vst [vmem:[#allocation2 + $0x78] sm:$0x1] %v4838_v0  ;;  %222 = vst [vmem:[#allocation2 + $0x90] sm:$0x1] %v4838_v0  ;;  %3788 = vmatprep.subr.bf16.mxu0 %v4584_v4  ;;  %4339 = vmatprep.subr.bf16.mxu1 %v5066_v5  ;;  %v4589_v9 = vld [vmem:[#allocation6 + $0xd0] sm:$0xff]   ;;  %v5073_v11 = vld [vmem:[#allocation6 + $0x158] sm:$0xff]  }
  0x5f   : > { %223 = vst [vmem:[#allocation2 + $0xa8] sm:$0x1] %v4838_v0  ;;  %224 = vst [vmem:[#allocation2 + $0xc0] sm:$0x1] %v4838_v0  ;;  %v4592_v12 = vld [vmem:[#allocation6 + $0xd8] sm:$0xff]   ;;  %v4593_v13 = vld [vmem:[#allocation6 + $0x120] sm:$0xff]  }
  0x60   : > { %225 = vst [vmem:[#allocation2 + $0xd8] sm:$0x1] %v4838_v0  ;;  %226 = vst [vmem:[#allocation2 + $0xf0] sm:$0x1] %v4838_v0  ;;  %v5077_v14 = vld [vmem:[#allocation6 + $0x160] sm:$0xff]   ;;  %v4596_v16 = vld [vmem:[#allocation6 + $0x128] sm:$0xff]  }
  0x61   : > { %227 = vst [vmem:[#allocation2 + $0x108] sm:$0x1] %v4838_v0  ;;  %228 = vst [vmem:[#allocation2 + $0x120] sm:$0x1] %v4838_v0  ;;  %3789 = vmatpush3.bf16.msra.mxu0 %v4586_v6  ;;  %4347 = vmatpush3.bf16.msra.mxu1 %v5066_v5  ;;  %v4595_v15 = vld [vmem:[#allocation6 + $0xe0] sm:$0xff]   ;;  %v5081_v17 = vld [vmem:[#allocation6 + $0x168] sm:$0xff]  }
  0x62   : > { %229 = vst [vmem:[#allocation2 + $0x138] sm:$0x1] %v4838_v0  ;;  %230 = vst [vmem:[#allocation2 + $0x150] sm:$0x1] %v4838_v0  ;;  %3790 = vmatprep.subr.bf16.mxu0 %v4587_v7  ;;  %4340 = vmatprep.subr.bf16.mxu1 %v5069_v8  ;;  %v4598_v18 = vld [vmem:[#allocation6 + $0xe8] sm:$0xff]   ;;  %v4599_v19 = vld [vmem:[#allocation6 + $0x130] sm:$0xff]  }
  0x63   : > { %231 = vst [vmem:[#allocation2 + $0x168] sm:$0x1] %v4838_v0  ;;  %232 = vst [vmem:[#allocation2 + $0x180] sm:$0x1] %v4838_v0  ;;  %v5085_v20 = vld [vmem:[#allocation6 + $0x170] sm:$0xff]   ;;  %v4602_v22 = vld [vmem:[#allocation6 + $0x138] sm:$0xff]  }
  0x64   : > { %234 = vst [vmem:[#allocation2 + $0x11] sm:$0x1] %v4838_v0  ;;  %236 = vst [vmem:[#allocation2 + $0x41] sm:$0x1] %v4838_v0  ;;  %v4601_v21 = vld [vmem:[#allocation6 + $0xf0] sm:$0xff]   ;;  %v3613_v23 = vld [vmem:[%s5015_s26] sm:$0xff]  }
  0x65   : > { %237 = vst [vmem:[#allocation2 + $0x59] sm:$0x1] %v4838_v0  ;;  %238 = vst [vmem:[#allocation2 + $0x71] sm:$0x1] %v4838_v0  ;;  %3791 = vmatpush3.bf16.msra.mxu0 %v4589_v9  ;;  %4348 = vmatpush3.bf16.msra.mxu1 %v5069_v8  ;;  %v3763_v24 = vld [vmem:[%s5015_s26 + $0x40] sm:$0xff]   ;;  %v3764_v25 = vld [vmem:[%s5015_s26 + $0x48] sm:$0xff]   ;;  %v3614_v27 = vunpack.c.l.bf16 %v3613_v23  ;;  %v3615_v28 = vunpack.c.h.bf16 %v3613_v23 }
  0x66   : > { %239 = vst [vmem:[#allocation2 + $0x89] sm:$0x1] %v4838_v0  ;;  %240 = vst [vmem:[#allocation2 + $0xa1] sm:$0x1] %v4838_v0  ;;  %3792 = vmatprep.subr.bf16.mxu0 %v4590_v10  ;;  %4341 = vmatprep.subr.bf16.mxu1 %v5073_v11  ;;  %v5092_v26 = vld [vmem:[#allocation6 + $0x178] sm:$0xff]   ;;  %v3646_v29 = vunpack.c.l.bf16 %v3763_v24  ;;  %v3647_v30 = vunpack.c.h.bf16 %v3763_v24  ;;  %v3650_v31 = vunpack.c.l.bf16 %v3764_v25  ;;  %v3651_v32 = vunpack.c.h.bf16 %v3764_v25  ;;  %v4605_v34 = vld [vmem:[#allocation6 + $0x40] sm:$0xff]  }
  0x67   : > { %241 = vst [vmem:[#allocation2 + $0xb9] sm:$0x1] %v4838_v0  ;;  %242 = vst [vmem:[#allocation2 + $0xd1] sm:$0x1] %v4838_v0  ;;  %v4604_v33 = vld [vmem:[#allocation6 + $0xf8] sm:$0xff]   ;;  %v3756_v35 = vld [vmem:[%s5015_s26 + $0x8] sm:$0xff]  }
  0x68   : > { %243 = vst [vmem:[#allocation2 + $0xe9] sm:$0x1] %v4838_v0  ;;  %244 = vst [vmem:[#allocation2 + $0x101] sm:$0x1] %v4838_v0  ;;  %v3765_v36 = vld [vmem:[%s5015_s26 + $0x50] sm:$0xff]   ;;  %v3766_v37 = vld [vmem:[%s5015_s26 + $0x58] sm:$0xff]   ;;  %v3618_v38 = vunpack.c.l.bf16 %v3756_v35  ;;  %v3619_v39 = vunpack.c.h.bf16 %v3756_v35 }
  0x69   : > { %245 = vst [vmem:[#allocation2 + $0x119] sm:$0x1] %v4838_v0  ;;  %246 = vst [vmem:[#allocation2 + $0x131] sm:$0x1] %v4838_v0  ;;  %3793 = vmatpush3.bf16.msra.mxu0 %v4592_v12  ;;  %4349 = vmatpush3.bf16.msra.mxu1 %v5073_v11  ;;  %v3654_v40 = vunpack.c.l.bf16 %v3765_v36  ;;  %v3655_v41 = vunpack.c.h.bf16 %v3765_v36  ;;  %v3658_v42 = vunpack.c.l.bf16 %v3766_v37  ;;  %v3659_v43 = vunpack.c.h.bf16 %v3766_v37  ;;  %v3757_v62 = vld [vmem:[%s5015_s26 + $0x10] sm:$0xff]   ;;  %v4606_v9 = vld [vmem:[#allocation6] sm:$0xff]  }
  0x6a   : > { %247 = vst [vmem:[#allocation2 + $0x149] sm:$0x1] %v4838_v0  ;;  %248 = vst [vmem:[#allocation2 + $0x161] sm:$0x1] %v4838_v0  ;;  %3794 = vmatprep.subr.bf16.mxu0 %v4593_v13  ;;  %4342 = vmatprep.subr.bf16.mxu1 %v5077_v14  ;;  %v3768_v37 = vld [vmem:[%s5015_s26 + $0x68] sm:$0xff]   ;;  %s6409_s18 = scalar_lea.vmem [#allocation8], %s3463_s7 }
  0x6b   : > { %249 = vst [vmem:[#allocation2 + $0x179] sm:$0x1] %v4838_v0  ;;  %250 = vst [vmem:[#allocation2 + $0x191] sm:$0x1] %v4838_v0  ;;  %s3611_s20 = sshll.u32 %s4885_s16, 11  ;;  %s3327_s8 = sshll.u32 %s6409_s18, 4  ;;  %s6481_s8 = int_to_ptr.vmem [resolvable:$true] %s3327_s8 }
  0x6c   : > { %251 = vst [vmem:[#allocation2 + $0x1a9] sm:$0x1] %v4838_v0  ;;  %253 = vst [vmem:[#allocation2 + $0x8] sm:$0xff] %v4838_v0  ;;  %s6479_s25 = scalar_lea.hbm %s6560_s2, %s3611_s20  ;;  %s3309_s5 = scalar_lea.sflag [#allocation5], %s5009_s6 }
  0x6d   : > { %254 = vst [vmem:[#allocation2 + $0x10] sm:$0x3] %v4838_v0  ;;  %258 = vst [vmem:[#allocation2 + $0x1a8] sm:$0x3] %v4838_v0  ;;  %3795 = vmatpush3.bf16.msra.mxu0 %v4595_v15  ;;  %4350 = vmatpush3.bf16.msra.mxu1 %v5077_v14  ;;  %v3622_v15 = vunpack.c.l.bf16 %v3757_v62  ;;  %s4730_s11 = scalar_lea.vmem %s6481_s8, 2048  ;;  %s4840_s27 = smov [#allocation8]  }
  0x6e   : > { %3796 = vmatprep.subr.bf16.mxu0 %v4596_v16  ;;  %4343 = vmatprep.subr.bf16.mxu1 %v5081_v17  ;;  %324 = vst [vmem:[#allocation2 + $0x19] sm:$0xff] %v3614_v27  ;;  %325 = vst [vmem:[#allocation2 + $0x21] sm:$0xff] %v3615_v28  ;;  %v3623_v16 = vunpack.c.h.bf16 %v3757_v62  ;;  %p4731_p4 = scmp.ne.s32.totalorder %s6481_s8, %s4730_s11  ;;  %s4734_s28 = sshll.u32 %s4840_s27, 4  ;;  %s4735_s28 = int_to_ptr.vmem [resolvable:$false] %s4734_s28 }
  0x6f   : > { %340 = vst [vmem:[#allocation2 + $0xd9] sm:$0xff] %v3646_v29  ;;  %341 = vst [vmem:[#allocation2 + $0xe1] sm:$0xff] %v3647_v30  ;;  %s4736_s23 = scalar_lea.vmem %s4735_s28, 4096  ;;  %p4737_p10 = scmp.lt.s32.totalorder %s6481_s8, %s4735_s28 }
  0x70   : > { %342 = vst [vmem:[#allocation2 + $0xf1] sm:$0xff] %v3650_v31  ;;  %343 = vst [vmem:[#allocation2 + $0xf9] sm:$0xff] %v3651_v32  ;;  %v3767_v32 = vld [vmem:[%s5015_s26 + $0x60] sm:$0xff]   ;;  %p4732_p6 = pnand %p4731_p4, %p4958_p12  ;;  %p4738_p13 = scmp.lt.s32.totalorder %s4736_s23, %s4730_s11 }
  0x71   : > { %3797 = vmatpush3.bf16.msra.mxu0 %v4598_v18  ;;  %4351 = vmatpush3.bf16.msra.mxu1 %v5081_v17  ;;  %326 = vst [vmem:[#allocation2 + $0x31] sm:$0xff] %v3618_v38  ;;  %327 = vst [vmem:[#allocation2 + $0x39] sm:$0xff] %v3619_v39 }
  0x72   : > { %3798 = vmatprep.subr.bf16.mxu0 %v4599_v19  ;;  %4344 = vmatprep.subr.bf16.mxu1 %v5085_v20  ;;  %344 = vst [vmem:[#allocation2 + $0x109] sm:$0xff] %v3654_v40  ;;  %345 = vst [vmem:[#allocation2 + $0x111] sm:$0xff] %v3655_v41  ;;  %p4733_p8 = pneg %p4732_p6  ;;  %p4739_p3 = por %p4738_p13, %p4737_p10 }
  0x73   : > { %346 = vst [vmem:[#allocation2 + $0x121] sm:$0xff] %v3658_v42  ;;  %347 = vst [vmem:[#allocation2 + $0x129] sm:$0xff] %v3659_v43 }
  0x74   : > { %328 = vst [vmem:[#allocation2 + $0x49] sm:$0xff] %v3622_v15  ;;  %329 = vst [vmem:[#allocation2 + $0x51] sm:$0xff] %v3623_v16  ;;  %v3770_v16 = vld [vmem:[%s5015_s26 + $0x78] sm:$0xff]   ;;  %p4740_p7 = pnand %p4739_p3, %p4733_p8 }
  0x75   : > { %3799 = vmatpush3.bf16.msra.mxu0 %v4601_v21  ;;  %4352 = vmatpush3.bf16.msra.mxu1 %v5085_v20  ;;  %v5101_v44 = vld [vmem:[#allocation2 + $0x18] sm:$0xff]  ;;  %v5103_v45 = vld [vmem:[#allocation2 + $0x20] sm:$0xff]  ;;  %v5105_v46 = vld [vmem:[#allocation2 + $0x28] sm:$0x3] }
  0x76   : > { %3800 = vmatprep.subr.bf16.mxu0 %v4602_v22  ;;  %4345 = vmatprep.subr.bf16.mxu1 %v5092_v26  ;;  %v870_v47 = vrot.slane %v5101_v44, 1  ;;  %v5109_v48 = vrot.slane %v5103_v45, 1  ;;  %v873_v49 = vrot.slane %v5105_v46, 1  ;;  %v5112_v50 = vld [vmem:[#allocation2 + $0xd8] sm:$0xff]  ;;  %v5114_v51 = vld [vmem:[#allocation2 + $0xe0] sm:$0xff]  ;;  %v5133_v60 = vpack.c.bf16 %v5103_v45, %v5101_v44 }
  0x77   : > { %v5116_v52 = vld [vmem:[#allocation2 + $0xe8] sm:$0x3]  ;;  %v1022_v53 = vrot.slane %v5112_v50, 2  ;;  %v1023_v54 = vrot.slane %v5114_v51, 2  ;;  %v5120_v55 = vld [vmem:[#allocation2 + $0xf0] sm:$0xff]  ;;  %v5122_v56 = vld [vmem:[#allocation2 + $0xf8] sm:$0xff] }
  0x78   : > { %v5126_v57 = vsel %vm452_vm0, %v870_v47, %v5109_v48  ;;  %v874_v58 = vsel %vm452_vm0, %v5109_v48, %v873_v49  ;;  %v1025_v59 = vrot.slane %v5116_v52, 2  ;;  %v5135_v61 = vld [vmem:[#allocation2 + $0x100] sm:$0x3]  ;;  %v1027_v3 = vrot.slane %v5120_v55, 2  ;;  %v777_v10 = vld [vmem:[#allocation2 + $0x30] sm:$0xff]  ;;  %v778_v12 = vld [vmem:[#allocation2 + $0x38] sm:$0xff] }
  0x79   : > { %3801 = vmatpush3.bf16.msra.mxu0 %v4604_v33  ;;  %4353 = vmatpush3.bf16.msra.mxu1 %v5092_v26  ;;  %v1095_v63 = vpack.c.bf16 %v874_v58, %v5126_v57  ;;  %v1024_v1 = vsel %vm565_vm1, %v1022_v53, %v1023_v54  ;;  %v1028_v4 = vrot.slane %v5122_v56, 2  ;;  %v1030_v7 = vrot.slane %v5135_v61, 2  ;;  %v779_v13 = vld [vmem:[#allocation2 + $0x40] sm:$0x3]  ;;  %v4607_v21 = vld [vmem:[#allocation6 + $0x48] sm:$0xff]   ;;  %v5147_v24 = vld [vmem:[#allocation2 + $0x108] sm:$0xff] }
  0x7a   : > { %4194 = vmatprep.subr.bf16.mxu0 %v5062_v2  ;;  %3922 = vmatprep.subr.bf16.mxu1 %v4605_v34  ;;  %v1026_v6 = vsel %vm565_vm1, %v1023_v54, %v1025_v59  ;;  %v875_v22 = vrot.slane %v777_v10, 1  ;;  %v5145_v23 = vrot.slane %v778_v12, 1  ;;  %v5149_v25 = vld [vmem:[#allocation2 + $0x110] sm:$0xff]  ;;  %v5151_v27 = vld [vmem:[#allocation2 + $0x118] sm:$0x3]  ;;  %v878_v29 = vrot.slane %v779_v13, 1 }
  0x7b   : > { %1367 = vmatprep.mubr.bf16.mxu0 %v1095_v63  ;;  %v1120_v18 = vpack.c.bf16 %v1026_v6, %v1024_v1  ;;  %v1029_v19 = vsel %vm565_vm1, %v1027_v3, %v1028_v4  ;;  %v1031_v28 = vsel %vm565_vm1, %v1028_v4, %v1030_v7  ;;  %v5155_v30 = vld [vmem:[#allocation2 + $0x120] sm:$0xff]  ;;  %v5157_v31 = vld [vmem:[#allocation2 + $0x128] sm:$0xff]  ;;  %v1032_v35 = vrot.slane %v5147_v24, 2  ;;  %v5166_v36 = vld [vmem:[#allocation2 + $0x130] sm:$0x3] }
  0x7c   : > { %1368 = vmatmul.mubr.bf16.vlgmr.msra.gmra.mrb[0].mxu0 %v5133_v60  ;;  %v1123_v33 = vpack.c.bf16 %v1031_v28, %v1029_v19  ;;  %v5163_v34 = vsel %vm452_vm0, %v875_v22, %v5145_v23  ;;  %6609 = vst [vmem:[#allocation15_spill] sm:$0xff] %v5166_v36  ;;  %v879_v38 = vsel %vm452_vm0, %v5145_v23, %v878_v29  ;;  %v1033_v39 = vrot.slane %v5149_v25, 2  ;;  %v4609_v3 = vld [vmem:[#allocation6 + $0x50] sm:$0xff]   ;;  %v3758_v6 = vld [vmem:[%s5015_s26 + $0x18] sm:$0xff]   ;;  %v5190_v19 = vld [vmem:[#allocation2 + $0x50] sm:$0xff] }
  0x7d   : > { %4226 = vmatprep.mubr.bf16.mxu1 %v1120_v18  ;;  %4195 = vmatpush3.bf16.msra.mxu0 %v5062_v2  ;;  %v1035_v40 = vrot.slane %v5151_v27, 2  ;;  %v5173_v41 = vpack.c.bf16 %v778_v12, %v777_v10  ;;  %v4608_v2 = vld [vmem:[#allocation6 + $0x8] sm:$0xff]   ;;  %v1098_v42 = vpack.c.bf16 %v879_v38, %v5163_v34  ;;  %v1037_v43 = vrot.slane %v5155_v30, 2  ;;  %v3769_v7 = vld [vmem:[%s5015_s26 + $0x70] sm:$0xff]   ;;  %v5188_v18 = vld [vmem:[#allocation2 + $0x48] sm:$0xff] }
  0x7e   : > { %4196 = vmatprep.subr.bf16.mxu0 %v5066_v5  ;;  %4227 = vmatmul.mubr.bf16.vlgmr.msra.gmra.mrb[0].mxu1 %v1123_v33  ;;  %v1038_v47 = vrot.slane %v5157_v31, 2  ;;  %v1040_v49 = vrot.slane %v5166_v36, 2  ;;  %v1034_v53 = vsel %vm565_vm1, %v1032_v35, %v1033_v39  ;;  %v3662_v58 = vunpack.c.l.bf16 %v3767_v32  ;;  %v4611_v38 = vld [vmem:[#allocation6 + $0x58] sm:$0xff]  }
  0x7f   : > { %3923 = vmatpush3.bf16.msra.mxu1 %v4606_v9  ;;  %v1036_v54 = vsel %vm565_vm1, %v1033_v39, %v1035_v40  ;;  %v3663_v59 = vunpack.c.h.bf16 %v3767_v32  ;;  %1375 = vmatprep.mubr.bf16.mxu0 %v1098_v42  ;;  %v3666_v4 = vunpack.c.l.bf16 %v3768_v37  ;;  %v4610_v9 = vld [vmem:[#allocation6 + $0x10] sm:$0xff]   ;;  %v3667_v12 = vunpack.c.h.bf16 %v3768_v37  ;;  %v4612_v39 = vld [vmem:[#allocation6 + $0x18] sm:$0xff]  }
  0x80   : > { %3924 = vmatprep.subr.bf16.mxu1 %v4607_v21  ;;  %v1126_v62 = vpack.c.bf16 %v1036_v54, %v1034_v53  ;;  %v1039_v63 = vsel %vm565_vm1, %v1037_v43, %v1038_v47  ;;  %v1041_v1 = vsel %vm565_vm1, %v1038_v47, %v1040_v49  ;;  %348 = vst [vmem:[#allocation2 + $0x139] sm:$0xff] %v3662_v58  ;;  %v3626_v13 = vunpack.c.l.bf16 %v3758_v6  ;;  %v5192_v21 = vld [vmem:[#allocation2 + $0x58] sm:$0x3]  ;;  %v3759_v49 = vld [vmem:[%s5015_s26 + $0x20] sm:$0xff]   ;;  %v4620_v36 = vld [vmem:[#allocation6 + $0x38] sm:$0xff]  }
  0x81   : > { %v1129_v10 = vpack.c.bf16 %v1041_v1, %v1039_v63  ;;  %349 = vst [vmem:[#allocation2 + $0x141] sm:$0xff] %v3663_v59  ;;  %4197 = vmatpush3.bf16.msra.mxu0 %v5066_v5  ;;  %v3627_v15 = vunpack.c.h.bf16 %v3758_v6  ;;  %350 = vst [vmem:[#allocation2 + $0x151] sm:$0xff] %v3666_v4  ;;  %v3670_v22 = vunpack.c.l.bf16 %v3769_v7  ;;  %v3671_v28 = vunpack.c.h.bf16 %v3769_v7  ;;  %v5220_v58 = vld [vmem:[#allocation2 + $0x10] sm:$0x3] }
  0x82   : > { %4230 = vmatprep.mubr.bf16.mxu1 %v1126_v62  ;;  %v3674_v29 = vunpack.c.l.bf16 %v3770_v16  ;;  %v3675_v32 = vunpack.c.h.bf16 %v3770_v16  ;;  %4198 = vmatprep.subr.bf16.mxu0 %v5069_v8  ;;  %v985_v33 = vrot.slane %v5105_v46, 2  ;;  %v880_v5 = vrot.slane %v5188_v18, 1  ;;  %351 = vst [vmem:[#allocation2 + $0x159] sm:$0xff] %v3667_v12  ;;  %330 = vst [vmem:[#allocation2 + $0x61] sm:$0xff] %v3626_v13 }
  0x83   : > { %3925 = vmatpush3.bf16.msra.mxu1 %v4608_v2  ;;  %v5199_v35 = vrot.slane %v5190_v19, 1  ;;  %v883_v37 = vrot.slane %v5192_v21, 1  ;;  %331 = vst [vmem:[#allocation2 + $0x69] sm:$0xff] %v3627_v15  ;;  %352 = vst [vmem:[#allocation2 + $0x169] sm:$0xff] %v3670_v22  ;;  %v571_v46 = vrot.slane %v5101_v44, 2  ;;  %v5211_v42 = vrot.slane %v5103_v45, 2 }
  0x84   : > { %1376 = vmatmul.mubr.bf16.gmra.mrb[4].mxu0 %v5173_v41  ;;  %3926 = vmatprep.subr.bf16.mxu1 %v4609_v3  ;;  %353 = vst [vmem:[#allocation2 + $0x171] sm:$0xff] %v3671_v28  ;;  %354 = vst [vmem:[#allocation2 + $0x181] sm:$0xff] %v3674_v29  ;;  %v5216_v47 = vpack.c.bf16 %v5190_v19, %v5188_v18  ;;  %v4613_v44 = vld [vmem:[#allocation6 + $0x60] sm:$0xff]   ;;  %v3630_v53 = vunpack.c.l.bf16 %v3759_v49  ;;  %v3631_v54 = vunpack.c.h.bf16 %v3759_v49  ;;  %v5237_v1 = vrot.slane %v4838_v0, 1  ;;  %v4615_v15 = vld [vmem:[#allocation6 + $0x68] sm:$0xff]  }
  0x85   : > { %355 = vst [vmem:[#allocation2 + $0x189] sm:$0xff] %v3675_v32  ;;  %v5205_v40 = vsel %vm452_vm0, %v880_v5, %v5199_v35  ;;  %v884_v2 = vsel %vm452_vm0, %v5199_v35, %v883_v37  ;;  %4199 = vmatpush3.bf16.msra.mxu0 %v5069_v8  ;;  %v5224_v8 = vsel %vm565_vm1, %v571_v46, %v5211_v42  ;;  %v456_v22 = vrot.slane %v5220_v58, 1 }
  0x86   : > { %4231 = vmatmul.mubr.bf16.gmra.mrb[4].mxu1 %v1129_v10  ;;  %v1101_v43 = vpack.c.bf16 %v884_v2, %v5205_v40  ;;  %4200 = vmatprep.subr.bf16.mxu0 %v5073_v11  ;;  %v5228_v45 = vsel %vm565_vm1, %v5211_v42, %v985_v33  ;;  %v4614_v10 = vld [vmem:[#allocation6 + $0x20] sm:$0xff]   ;;  %332 = vst [vmem:[#allocation2 + $0x79] sm:$0xff] %v3630_v53  ;;  %333 = vst [vmem:[#allocation2 + $0x81] sm:$0xff] %v3631_v54 }
  0x87   : > { %3927 = vmatpush3.bf16.msra.mxu1 %v4610_v9  ;;  %v5230_v59 = vld [vmem:[#allocation2 + $0x138] sm:$0xff] }
  0x88   : > { %3928 = vmatprep.subr.bf16.mxu1 %v4611_v38  ;;  %1383 = vmatprep.mubr.bf16.mxu0 %v1101_v43  ;;  %6610 = vst [vmem:[#allocation16_spill] sm:$0xff] %v5230_v59  ;;  %v5232_v62 = vld [vmem:[#allocation2 + $0x140] sm:$0xff]  ;;  %v5234_v63 = vld [vmem:[#allocation2 + $0x148] sm:$0x3]  ;;  %v1042_v3 = vrot.slane %v5230_v59, 2  ;;  %v5242_v7 = vld [vmem:[#allocation2 + $0x150] sm:$0xff] }
  0x89   : > { %6611 = vst [vmem:[#allocation17_spill] sm:$0xff] %v5232_v62  ;;  %6612 = vst [vmem:[#allocation18_spill] sm:$0xff] %v5234_v63  ;;  %v1043_v4 = vrot.slane %v5232_v62, 2  ;;  %v1045_v6 = vrot.slane %v5234_v63, 2  ;;  %v3760_v9 = vld [vmem:[%s5015_s26 + $0x28] sm:$0xff]   ;;  %4201 = vmatpush3.bf16.msra.mxu0 %v5073_v11  ;;  %v1047_v0 = vrot.slane %v5242_v7, 2 }
  0x8a   : > { %6613 = vst [vmem:[#allocation19_spill] sm:$0xff] %v5242_v7  ;;  %v5246_v12 = vld [vmem:[#allocation2 + $0x158] sm:$0xff]  ;;  %v5248_v13 = vld [vmem:[#allocation2 + $0x160] sm:$0x3]  ;;  %v3634_v28 = vunpack.c.l.bf16 %v3760_v9  ;;  %v3635_v29 = vunpack.c.h.bf16 %v3760_v9  ;;  %4202 = vmatprep.subr.bf16.mxu0 %v5077_v14  ;;  %v5260_v37 = vld [vmem:[#allocation2 + $0x68] sm:$0xff]  ;;  %v457_v7 = vsel %vm452_vm0, %v5237_v1, %v456_v22 }
  0x8b   : > { %6614 = vst [vmem:[#allocation20_spill] sm:$0xff] %v5246_v12  ;;  %6615 = vst [vmem:[#allocation21_spill] sm:$0xff] %v5248_v13  ;;  %v5251_v16 = vld [vmem:[#allocation2 + $0x60] sm:$0xff]  ;;  %3929 = vmatpush3.bf16.msra.mxu1 %v4612_v39  ;;  %v1044_v32 = vsel %vm565_vm1, %v1042_v3, %v1043_v4  ;;  %v1046_v11 = vsel %vm565_vm1, %v1043_v4, %v1045_v6  ;;  %v1048_v33 = vrot.slane %v5246_v12, 2  ;;  %v1050_v5 = vrot.slane %v5248_v13, 2  ;;  %v5264_v46 = vld [vmem:[#allocation2 + $0x168] sm:$0xff] }
  0x8c   : > { %1384 = vmatmul.mubr.bf16.gmra.mrb[8].mxu0 %v5216_v47  ;;  %v5262_v38 = vld [vmem:[#allocation2 + $0x70] sm:$0x3]  ;;  %6616 = vst [vmem:[#allocation22_spill] sm:$0xff] %v5264_v46  ;;  %v1132_v2 = vpack.c.bf16 %v1046_v11, %v1044_v32  ;;  %3930 = vmatprep.subr.bf16.mxu1 %v4613_v44  ;;  %v885_v39 = vrot.slane %v5251_v16, 1  ;;  %v5268_v43 = vrot.slane %v5260_v37, 1  ;;  %334 = vst [vmem:[#allocation2 + $0x91] sm:$0xff] %v3634_v28 }
  0x8d   : > { %v888_v49 = vrot.slane %v5262_v38, 1  ;;  %v5271_v53 = vld [vmem:[#allocation2 + $0x170] sm:$0xff]  ;;  %v5273_v54 = vld [vmem:[#allocation2 + $0x178] sm:$0x3]  ;;  %335 = vst [vmem:[#allocation2 + $0x99] sm:$0xff] %v3635_v29  ;;  %v1049_v58 = vsel %vm565_vm1, %v1047_v0, %v1048_v33  ;;  %v1051_v3 = vsel %vm565_vm1, %v1048_v33, %v1050_v5  ;;  %v1052_v4 = vrot.slane %v5264_v46, 2  ;;  %4203 = vmatpush3.bf16.msra.mxu0 %v5077_v14 }
  0x8e   : > { %6617 = vst [vmem:[#allocation23_spill] sm:$0xff] %v5271_v53  ;;  %6618 = vst [vmem:[#allocation24_spill] sm:$0xff] %v5273_v54  ;;  %v1053_v44 = vrot.slane %v5271_v53, 2  ;;  %v5279_v6 = vld [vmem:[#allocation2 + $0x180] sm:$0xff]  ;;  %v5281_v9 = vld [vmem:[#allocation2 + $0x188] sm:$0xff]  ;;  %4234 = vmatprep.mubr.bf16.mxu1 %v1132_v2  ;;  %v1135_v11 = vpack.c.bf16 %v1051_v3, %v1049_v58  ;;  %v5288_v0 = vsel %vm452_vm0, %v885_v39, %v5268_v43  ;;  %v1055_v33 = vrot.slane %v5273_v54, 2 }
  0x8f   : > { %v5283_v32 = vld [vmem:[#allocation2 + $0x190] sm:$0x3]  ;;  %v4616_v28 = vld [vmem:[#allocation6 + $0x28] sm:$0xff]   ;;  %v889_v29 = vsel %vm452_vm0, %v5268_v43, %v888_v49  ;;  %4204 = vmatprep.subr.bf16.mxu0 %v5081_v17  ;;  %3931 = vmatpush3.bf16.msra.mxu1 %v4614_v10  ;;  %v1057_v14 = vrot.slane %v5279_v6, 2  ;;  %v4617_v2 = vld [vmem:[#allocation6 + $0x70] sm:$0xff]   ;;  %v5300_v58 = vpack.c.bf16 %v5260_v37, %v5251_v16  ;;  %v1058_v49 = vrot.slane %v5281_v9, 2 }
  0x90   : > { %v1104_v5 = vpack.c.bf16 %v889_v29, %v5288_v0  ;;  %v1054_v53 = vsel %vm565_vm1, %v1052_v4, %v1053_v44  ;;  %4235 = vmatmul.mubr.bf16.gmra.mrb[8].mxu1 %v1135_v11  ;;  %3932 = vmatprep.subr.bf16.mxu1 %v4615_v15  ;;  %v1056_v39 = vsel %vm565_vm1, %v1053_v44, %v1055_v33  ;;  %v1060_v3 = vrot.slane %v5283_v32, 2  ;;  %v5304_v10 = vld [vmem:[#allocation2 + $0x78] sm:$0xff]  ;;  %v5306_v29 = vld [vmem:[#allocation2 + $0x80] sm:$0xff]  ;;  %v5308_v4 = vld [vmem:[#allocation2 + $0x88] sm:$0x3] }
  0x91   : > { %v1138_v11 = vpack.c.bf16 %v1056_v39, %v1054_v53  ;;  %v4618_v15 = vld [vmem:[#allocation6 + $0x30] sm:$0xff]   ;;  %v890_v44 = vrot.slane %v5304_v10, 1  ;;  %v5312_v33 = vrot.slane %v5306_v29, 1  ;;  %v893_v54 = vrot.slane %v5308_v4, 1  ;;  %4205 = vmatpush3.bf16.msra.mxu0 %v5081_v17  ;;  %v4619_v12 = vld [vmem:[#allocation6 + $0x78] sm:$0xff]  }
  0x92   : > { %1391 = vmatprep.mubr.bf16.mxu0 %v1104_v5  ;;  %v1059_v46 = vsel %vm565_vm1, %v1057_v14, %v1058_v49  ;;  %v1061_v13 = vsel %vm565_vm1, %v1058_v49, %v1060_v3  ;;  %v5320_v5 = vld [vmem:[#allocation2 + $0x28] sm:$0x3]  ;;  %v3761_v53 = vld [vmem:[%s5015_s26 + $0x30] sm:$0xff]   ;;  %4206 = vmatprep.subr.bf16.mxu0 %v5085_v20 }
  0x93   : > { %3933 = vmatpush3.bf16.msra.mxu1 %v4616_v28  ;;  %4238 = vmatprep.mubr.bf16.mxu1 %v1138_v11  ;;  %v1141_v39 = vpack.c.bf16 %v1061_v13, %v1059_v46  ;;  %v5326_v17 = vsel %vm452_vm0, %v890_v44, %v5312_v33  ;;  %v894_v14 = vsel %vm452_vm0, %v5312_v33, %v893_v54  ;;  %v5330_v49 = vld [vmem:[#allocation2 + $0x90] sm:$0xff]  ;;  %v3762_v44 = vld [vmem:[%s5015_s26 + $0x38] sm:$0xff]   ;;  %v3638_v63 = vunpack.c.l.bf16 %v3761_v53 }
  0x94   : > { %v5332_v3 = vld [vmem:[#allocation2 + $0x98] sm:$0xff]  ;;  %v5334_v22 = vld [vmem:[#allocation2 + $0xa0] sm:$0x3]  ;;  %1392 = vmatmul.mubr.bf16.gmra.mrb[12].mxu0 %v5300_v58  ;;  %3934 = vmatprep.subr.bf16.mxu1 %v4617_v2  ;;  %v1107_v28 = vpack.c.bf16 %v894_v14, %v5326_v17  ;;  %v895_v13 = vrot.slane %v5330_v49, 1  ;;  %v679_v54 = vpack.c.bf16 %v457_v7, %v5237_v1  ;;  %v3639_v62 = vunpack.c.h.bf16 %v3761_v53  ;;  %v4621_v53 = vld [vmem:[#allocation6 + $0x80] sm:$0xff]  }
  0x95   : > { %v5340_v46 = vrot.slane %v5332_v3, 1  ;;  %v898_v11 = vrot.slane %v5334_v22, 1  ;;  %4207 = vmatpush3.bf16.msra.mxu0 %v5085_v20  ;;  %v461_v59 = vrot.slane %v5320_v5, 1  ;;  %336 = vst [vmem:[#allocation2 + $0xa9] sm:$0xff] %v3638_v63  ;;  %v3642_v1 = vunpack.c.l.bf16 %v3762_v44 }
  0x96   : > { %1399 = vmatprep.mubr.bf16.mxu0 %v1107_v28  ;;  %4208 = vmatprep.subr.bf16.mxu0 %v5092_v26  ;;  %337 = vst [vmem:[#allocation2 + $0xb1] sm:$0xff] %v3639_v62  ;;  %v3643_v7 = vunpack.c.h.bf16 %v3762_v44  ;;  %v5356_v20 = vpack.c.bf16 %v5306_v29, %v5304_v10  ;;  %v5362_v62 = vld [vmem:[#allocation2 + $0x40] sm:$0x3] }
  0x97   : > { %v5348_v2 = vsel %vm452_vm0, %v895_v13, %v5340_v46  ;;  %v899_v14 = vsel %vm452_vm0, %v5340_v46, %v898_v11  ;;  %3935 = vmatpush3.bf16.msra.mxu1 %v4618_v15  ;;  %338 = vst [vmem:[#allocation2 + $0xc1] sm:$0xff] %v3642_v1  ;;  %v462_v63 = vsel %vm452_vm0, %v5109_v48, %v461_v59  ;;  %6621 = vst [vmem:[#allocation27_spill] sm:$0xff] %v5362_v62  ;;  %v4628_v15 = vld [vmem:[#allocation6 + $0x1c0] sm:$0xff]  }
  0x98   : > { %6619 = vst [vmem:[#allocation25_spill] sm:$0xff] %v5348_v2  ;;  %4239 = vmatmul.mubr.bf16.gmra.mrb[12].mxu1 %v1141_v39  ;;  %3936 = vmatprep.subr.bf16.mxu1 %v4619_v12  ;;  %6620 = vst [vmem:[#allocation26_spill] sm:$0xff] %v5356_v20  ;;  %v1110_v28 = vpack.c.bf16 %v899_v14, %v5348_v2  ;;  %v682_v12 = vpack.c.bf16 %v462_v63, %v5126_v57  ;;  %v4622_v39 = vld [vmem:[#allocation6 + $0x88] sm:$0xff]   ;;  %v466_v48 = vrot.slane %v5362_v62, 1 }
  0x99   : > { %1833 = vmatprep.mubr.bf16.mxu1 %v679_v54  ;;  %339 = vst [vmem:[#allocation2 + $0xc9] sm:$0xff] %v3643_v7  ;;  %4209 = vmatpush3.bf16.msra.mxu0 %v5092_v26  ;;  %v4839_v54 = vmov 0.0|0.0   ;;  %v5380_v57 = vpack.c.bf16 %v5332_v3, %v5330_v49 }
  0x9a   : > { %4058 = vmatprep.subr.bf16.mxu0 %v4628_v15 }
  0x9b   : > { %3937 = vmatpush3.bf16.msra.mxu1 %v4620_v36  ;;  %6623 = vst [vmem:[#allocation29_spill] sm:$0xff] %v5380_v57 }
  0x9c   : > { %1400 = vmatmul.mubr.bf16.gmra.mrb[16].mxu0 %v5356_v20  ;;  %4242 = vmatprep.subr.bf16.mxu1 %v4621_v53  ;;  %v5366_v13 = vld [vmem:[#allocation2 + $0xa8] sm:$0xff]  ;;  %v467_v20 = vsel %vm452_vm0, %v5145_v23, %v466_v48 }
  0x9d   : > { %1407 = vmatprep.mubr.bf16.mxu0 %v1110_v28  ;;  %v5368_v11 = vld [vmem:[#allocation2 + $0xb0] sm:$0xff]  ;;  %v5370_v26 = vld [vmem:[#allocation2 + $0xb8] sm:$0x3]  ;;  %v900_v59 = vrot.slane %v5366_v13, 1 }
  0x9e   : > { %v5375_v36 = vrot.slane %v5368_v11, 1  ;;  %v903_v44 = vrot.slane %v5370_v26, 1  ;;  %v5382_v14 = vld [vmem:[#allocation2 + $0xc0] sm:$0xff] }
  0x9f   : > { %v905_v15 = vrot.slane %v5382_v14, 1 }
  0xa0   : > { %6622 = vst [vmem:[#allocation28_spill] sm:$0xff] %v5375_v36  ;;  %1834 = vmatmul.mubr.bf16.vlgmr.msra.gmra.mrb[16].mxu1 %v4839_v54  ;;  %v5384_v1 = vld [vmem:[#allocation2 + $0xc8] sm:$0xff]  ;;  %v5386_v7 = vld [vmem:[#allocation2 + $0xd0] sm:$0x3]  ;;  %v5390_v28 = vsel %vm452_vm0, %v900_v59, %v5375_v36  ;;  %v904_v63 = vsel %vm452_vm0, %v5375_v36, %v903_v44  ;;  %v4623_v54 = vld [vmem:[#allocation6 + $0x90] sm:$0xff]   ;;  %v685_v59 = vpack.c.bf16 %v467_v20, %v5163_v34  ;;  %v5415_v36 = vrot.slane %v5114_v51, 1 }
  0xa1   : > { %4243 = vmatpush3.bf16.msra.mxu1 %v4621_v53  ;;  %1841 = vmatprep.mubr.bf16.mxu1 %v682_v12  ;;  %6624 = vst [vmem:[#allocation30_spill] sm:$0xff] %v5390_v28  ;;  %v1113_v62 = vpack.c.bf16 %v904_v63, %v5390_v28  ;;  %v5399_v2 = vrot.slane %v5384_v1, 1  ;;  %v908_v53 = vrot.slane %v5386_v7, 1  ;;  %v5402_v12 = vld [vmem:[#allocation2 + $0x58] sm:$0x3]  ;;  %v4624_v63 = vld [vmem:[#allocation6 + $0x98] sm:$0xff]   ;;  %v5421_v34 = vpack.c.bf16 %v5368_v11, %v5366_v13 }
  0xa2   : > { %4244 = vmatprep.subr.bf16.mxu1 %v4622_v39  ;;  %v471_v48 = vrot.slane %v5402_v12, 1  ;;  %v910_v28 = vrot.slane %v5112_v50, 1  ;;  %v5423_v20 = vld [vmem:[#allocation2 + $0x70] sm:$0x3] }
  0xa3   : > { %6625 = vst [vmem:[#allocation31_spill] sm:$0xff] %v5399_v2  ;;  %v5408_v44 = vsel %vm452_vm0, %v905_v15, %v5399_v2  ;;  %v909_v23 = vsel %vm452_vm0, %v5399_v2, %v908_v53  ;;  %6626 = vst [vmem:[#allocation32_spill] sm:$0xff] %v5421_v34  ;;  %v4625_v15 = vld [vmem:[#allocation6 + $0xa0] sm:$0xff]   ;;  %v945_v2 = vrot.slane %v5279_v6, 1 }
  0xa4   : > { %1408 = vmatmul.mubr.bf16.gmra.mrb[20].mxu0 %v5380_v57  ;;  %v472_v53 = vsel %vm452_vm0, %v5199_v35, %v471_v48  ;;  %v5436_v57 = vpack.c.bf16 %v5114_v51, %v5112_v50  ;;  %v476_v51 = vrot.slane %v5423_v20, 1  ;;  %v5473_v48 = vpack.c.bf16 %v5384_v1, %v5382_v14 }
  0xa5   : > { %1415 = vmatprep.mubr.bf16.mxu0 %v1113_v62  ;;  %4245 = vmatpush3.bf16.msra.mxu1 %v4622_v39  ;;  %v913_v62 = vrot.slane %v5116_v52, 1  ;;  %v1116_v39 = vpack.c.bf16 %v909_v23, %v5408_v44  ;;  %v946_v52 = vrot.slane %v5281_v9, 1  ;;  %v688_v50 = vpack.c.bf16 %v472_v53, %v5205_v40 }
  0xa6   : > { %4246 = vmatprep.subr.bf16.mxu1 %v4623_v54  ;;  %v5464_v40 = vrot.slane %v5190_v19, 2  ;;  %v918_v53 = vrot.slane %v5135_v61, 1  ;;  %v5480_v19 = vrot.slane %v5260_v37, 2  ;;  %v1000_v61 = vrot.slane %v5262_v38, 2  ;;  %v4627_v37 = vld [vmem:[#allocation6 + $0xb0] sm:$0xff]  }
  0xa7   : > { %v914_v35 = vsel %vm452_vm0, %v5415_v36, %v913_v62  ;;  %v5445_v23 = vsel %vm452_vm0, %v945_v2, %v946_v52  ;;  %v5458_v2 = vrot.slane %v5122_v56, 1  ;;  %v4626_v62 = vld [vmem:[#allocation6 + $0xa8] sm:$0xff]   ;;  %v5723_v38 = vld [vmem:[#allocation2 + $0x100] sm:$0x3] }
  0xa8   : > { %1842 = vmatmul.mubr.bf16.gmra.mrb[20].mxu1 %v5133_v60  ;;  %v5432_v60 = vsel %vm452_vm0, %v910_v28, %v5415_v36  ;;  %v5490_v28 = vrot.slane %v5306_v29, 2 }
  0xa9   : > { %1849 = vmatprep.mubr.bf16.mxu1 %v685_v59  ;;  %4247 = vmatpush3.bf16.msra.mxu1 %v4623_v54  ;;  %v5438_v59 = vld [vmem:[#allocation2 + $0x88] sm:$0x3]  ;;  %v948_v54 = vrot.slane %v5283_v32, 1  ;;  %v915_v32 = vrot.slane %v5120_v55, 1 }
  0xaa   : > { %4248 = vmatprep.subr.bf16.mxu1 %v4624_v63 }
  0xac   : > { %1416 = vmatmul.mubr.bf16.gmra.mrb[24].mxu0 %v5421_v34  ;;  %v5455_v34 = vsel %vm452_vm0, %v946_v52, %v948_v54  ;;  %v995_v52 = vrot.slane %v5192_v21, 2  ;;  %v997_v54 = vrot.slane %v5251_v16, 2  ;;  %v1119_v21 = vpack.c.bf16 %v914_v35, %v5432_v60 }
  0xad   : > { %1423 = vmatprep.mubr.bf16.mxu0 %v1116_v39  ;;  %4249 = vmatpush3.bf16.msra.mxu1 %v4624_v63  ;;  %v992_v39 = vrot.slane %v5188_v18, 2  ;;  %v481_v63 = vrot.slane %v5438_v59, 1  ;;  %v1002_v16 = vrot.slane %v5304_v10, 2  ;;  %v5502_v35 = vsel %vm565_vm1, %v5480_v19, %v1000_v61 }
  0xae   : > { %4250 = vmatprep.subr.bf16.mxu1 %v4625_v15  ;;  %v5506_v10 = vsel %vm452_vm0, %v915_v32, %v5458_v2  ;;  %v1012_v32 = vrot.slane %v5366_v13, 2 }
  0xaf   : > { %v5477_v18 = vsel %vm565_vm1, %v992_v39, %v5464_v40  ;;  %v477_v39 = vsel %vm452_vm0, %v5268_v43, %v476_v51  ;;  %v5512_v29 = vsel %vm565_vm1, %v1002_v16, %v5490_v28  ;;  %v1007_v51 = vrot.slane %v5330_v49, 2 }
  0xb0   : > { %1850 = vmatmul.mubr.bf16.gmra.mrb[24].mxu1 %v5173_v41  ;;  %v5486_v41 = vsel %vm565_vm1, %v5464_v40, %v995_v52  ;;  %v5518_v52 = vrot.slane %v5332_v3, 2  ;;  %v691_v61 = vpack.c.bf16 %v477_v39, %v5288_v0  ;;  %v1015_v49 = vrot.slane %v5370_v26, 2 }
  0xb1   : > { %1857 = vmatprep.mubr.bf16.mxu1 %v688_v50  ;;  %4251 = vmatpush3.bf16.msra.mxu1 %v4625_v15  ;;  %v5498_v15 = vsel %vm565_vm1, %v997_v54, %v5480_v19  ;;  %v1005_v50 = vrot.slane %v5308_v4, 2  ;;  %v1010_v54 = vrot.slane %v5334_v22, 2  ;;  %v5528_v4 = vrot.slane %v5368_v11, 2 }
  0xb2   : > { %4252 = vmatprep.subr.bf16.mxu1 %v4626_v62  ;;  %v919_v3 = vsel %vm452_vm0, %v5458_v2, %v918_v53  ;;  %v5537_v0 = vsel %vm565_vm1, %v1007_v51, %v5518_v52  ;;  %v574_v11 = vrot.slane %v5320_v5, 2  ;;  %v5559_v5 = vrot.slane %v5384_v1, 2 }
  0xb3   : > { %v5525_v16 = vsel %vm565_vm1, %v5490_v28, %v1005_v50  ;;  %v5541_v13 = vsel %vm565_vm1, %v5518_v52, %v1010_v54  ;;  %v5548_v53 = vsel %vm565_vm1, %v1012_v32, %v5528_v4  ;;  %v1017_v50 = vrot.slane %v5382_v14, 2 }
  0xb4   : > { %1424 = vmatmul.mubr.bf16.gmra.mrb[28].mxu0 %v5473_v48  ;;  %v1020_v51 = vrot.slane %v5386_v7, 2  ;;  %v1122_v54 = vpack.c.bf16 %v919_v3, %v5506_v10  ;;  %v920_v32 = vrot.slane %v5147_v24, 1  ;;  %v923_v39 = vrot.slane %v5151_v27, 1  ;;  %v5578_v7 = vld [vmem:[#allocation6 + $0x200] sm:$0xff]  }
  0xb5   : > { %1431 = vmatprep.mubr.bf16.mxu0 %v1119_v21  ;;  %4253 = vmatpush3.bf16.msra.mxu1 %v4626_v62  ;;  %v4636_v62 = vld [vmem:[#allocation6 + $0xb8] sm:$0xff]   ;;  %v5552_v21 = vsel %vm565_vm1, %v5528_v4, %v1015_v49  ;;  %v5565_v49 = vrot.slane %v5149_v25, 1  ;;  %v5572_v14 = vsel %vm565_vm1, %v1017_v50, %v5559_v5  ;;  %6627 = vst [vmem:[#allocation33_spill] sm:$0xff] %v5578_v7 }
  0xb6   : > { %4254 = vmatprep.subr.bf16.mxu1 %v4627_v37  ;;  %v5576_v1 = vsel %vm565_vm1, %v5559_v5, %v1020_v51  ;;  %v5585_v27 = vsel %vm565_vm1, %v5211_v42, %v574_v11  ;;  %v5600_v42 = vpack.c.bf16 %v5122_v56, %v5120_v55  ;;  %v925_v11 = vrot.slane %v5155_v30, 1  ;;  %v379_v56 = vld [vmem:[#allocation2 + $0xb8] sm:$0x3] }
  0xb7   : > { %6628 = vst [vmem:[#allocation34_spill] sm:$0xff] %v5585_v27  ;;  %v5592_v3 = vsel %vm452_vm0, %v920_v32, %v5565_v49  ;;  %v924_v50 = vsel %vm452_vm0, %v5565_v49, %v923_v39  ;;  %v6629_v32 = vld [vmem:[#allocation15_spill] sm:$0xff]  ;;  %v589_v55 = vrot.slane %v5423_v20, 2 }
  0xb8   : > { %1858 = vmatmul.mubr.bf16.gmra.mrb[28].mxu1 %v5216_v47  ;;  %v482_v47 = vsel %vm452_vm0, %v5312_v33, %v481_v63 }
  0xb9   : > { %1865 = vmatprep.mubr.bf16.mxu1 %v691_v61  ;;  %4255 = vmatpush3.bf16.msra.mxu1 %v4627_v37  ;;  %v376_v61 = vld [vmem:[#allocation2 + $0xa0] sm:$0x3]  ;;  %v694_v33 = vpack.c.bf16 %v482_v47, %v5326_v17  ;;  %v584_v17 = vrot.slane %v5402_v12, 2  ;;  %v928_v47 = vrot.slane %v6629_v32, 1  ;;  %v6637_v12 = vld [vmem:[#allocation17_spill] sm:$0xff] }
  0xba   : > { %4256 = vmatprep.subr.bf16.mxu1 %v4636_v62  ;;  %v486_v51 = vrot.slane %v376_v61, 1  ;;  %v6647_v37 = vld [vmem:[#allocation21_spill] sm:$0xff] }
  0xbc   : > { %1432 = vmatmul.mubr.bf16.gmra.mrb[32].mxu0 %v5436_v57  ;;  %v487_v39 = vsel %vm452_vm0, %v5340_v46, %v486_v51  ;;  %v599_v46 = vrot.slane %v376_v61, 2  ;;  %v6632_v51 = vld [vmem:[#allocation25_spill] sm:$0xff]  ;;  %v6636_v61 = vld [vmem:[#allocation16_spill] sm:$0xff] }
  0xbd   : > { %1439 = vmatprep.mubr.bf16.mxu0 %v1122_v54  ;;  %4257 = vmatpush3.bf16.msra.mxu1 %v4636_v62  ;;  %v1125_v62 = vpack.c.bf16 %v924_v50, %v5592_v3  ;;  %v5606_v54 = vrot.slane %v5157_v31, 1  ;;  %v5622_v50 = vsel %vm565_vm1, %v5480_v19, %v589_v55  ;;  %v697_v32 = vpack.c.bf16 %v487_v39, %v6632_v51  ;;  %v6635_v51 = vld [vmem:[#allocation26_spill] sm:$0xff] }
  0xbe   : > { %4290 = vmatprep.subr.bf16.mxu1 %v5578_v7  ;;  %6631 = vst [vmem:[#allocation35_spill] sm:$0xff] %v5622_v50  ;;  %v491_v19 = vrot.slane %v379_v56, 1  ;;  %v604_v55 = vrot.slane %v379_v56, 2  ;;  %v930_v20 = vrot.slane %v6636_v61, 1  ;;  %v6639_v56 = vld [vmem:[#allocation28_spill] sm:$0xff]  ;;  %v6640_v39 = vld [vmem:[#allocation18_spill] sm:$0xff] }
  0xbf   : > { %v933_v63 = vrot.slane %v6640_v39, 1 }
  0xc0   : > { %1866 = vmatmul.mubr.bf16.gmra.mrb[32].mxu1 %v5300_v58  ;;  %v5613_v58 = vsel %vm565_vm1, %v5464_v40, %v584_v17  ;;  %v5627_v40 = vsel %vm452_vm0, %v925_v11, %v5606_v54  ;;  %v929_v17 = vsel %vm452_vm0, %v5606_v54, %v928_v47  ;;  %v382_v11 = vld [vmem:[#allocation2 + $0xd0] sm:$0x3] }
  0xc1   : > { %1873 = vmatprep.mubr.bf16.mxu1 %v694_v33  ;;  %6630 = vst [vmem:[#allocation15_spill] sm:$0xff] %v5613_v58  ;;  %v594_v33 = vrot.slane %v5438_v59, 2  ;;  %v609_v47 = vrot.slane %v382_v11, 2 }
  0xc3   : > { %v5633_v59 = vsel %vm565_vm1, %v5490_v28, %v594_v33  ;;  %v5648_v28 = vpack.c.bf16 %v5149_v25, %v5147_v24  ;;  %v1128_v33 = vpack.c.bf16 %v929_v17, %v5627_v40  ;;  %v5666_v25 = vsel %vm565_vm1, %v5559_v5, %v609_v47 }
  0xc4   : > { %1440 = vmatmul.mubr.bf16.gmra.mrb[36].mxu0 %v5600_v42  ;;  %6633 = vst [vmem:[#allocation25_spill] sm:$0xff] %v5633_v59  ;;  %6641 = vst [vmem:[#allocation16_spill] sm:$0xff] %v5666_v25  ;;  %v5681_v5 = vpack.c.bf16 %v5157_v31, %v5155_v30  ;;  %v5726_v25 = vld [vmem:[#allocation2 + $0x30] sm:$0xff]  ;;  %v506_v59 = vrot.slane %v5723_v38, 1 }
  0xc5   : > { %1447 = vmatprep.mubr.bf16.mxu0 %v1125_v62  ;;  %v5641_v62 = vsel %vm565_vm1, %v5518_v52, %v599_v46  ;;  %v5653_v52 = vrot.slane %v6637_v12, 1  ;;  %v5657_v46 = vsel %vm565_vm1, %v5528_v4, %v604_v55  ;;  %v6642_v4 = vld [vmem:[#allocation30_spill] sm:$0xff]  ;;  %v496_v55 = vrot.slane %v382_v11, 1  ;;  %v5691_v11 = vld [vmem:[#allocation2 + $0xe8] sm:$0x3] }
  0xc6   : > { %6634 = vst [vmem:[#allocation36_spill] sm:$0xff] %v5641_v62  ;;  %6638 = vst [vmem:[#allocation26_spill] sm:$0xff] %v5657_v46  ;;  %v5730_v46 = vld [vmem:[#allocation2 + $0x40] sm:$0x3] }
  0xc7   : > { %v934_v39 = vsel %vm452_vm0, %v5653_v52, %v933_v63  ;;  %v938_v63 = vrot.slane %v6647_v37, 1  ;;  %6648 = vst [vmem:[#allocation17_spill] sm:$0xff] %v5691_v11  ;;  %v5705_v37 = vpack.c.bf16 %v6637_v12, %v6636_v61  ;;  %v6652_v61 = vld [vmem:[#allocation24_spill] sm:$0xff] }
  0xc8   : > { %1874 = vmatmul.mubr.bf16.gmra.mrb[36].mxu1 %v6635_v51  ;;  %v492_v51 = vsel %vm452_vm0, %v6639_v56, %v491_v19  ;;  %v5674_v19 = vsel %vm452_vm0, %v930_v20, %v5653_v52  ;;  %v6643_v56 = vld [vmem:[#allocation29_spill] sm:$0xff]  ;;  %v6646_v20 = vld [vmem:[#allocation20_spill] sm:$0xff]  ;;  %v943_v43 = vrot.slane %v6652_v61, 1 }
  0xc9   : > { %1881 = vmatprep.mubr.bf16.mxu1 %v697_v32  ;;  %v700_v17 = vpack.c.bf16 %v492_v51, %v6642_v4  ;;  %v1131_v47 = vpack.c.bf16 %v934_v39, %v5674_v19  ;;  %v6645_v4 = vld [vmem:[#allocation19_spill] sm:$0xff]  ;;  %v5688_v24 = vrot.slane %v6646_v20, 1  ;;  %v501_v39 = vrot.slane %v5691_v11, 1 }
  0xca   : > { %v935_v32 = vrot.slane %v6645_v4, 1  ;;  %v2332_v11 = vrot.slane %v5726_v25, 2 }
  0xcb   : > { %v502_v12 = vsel %vm452_vm0, %v5415_v36, %v501_v39  ;;  %v2335_v36 = vrot.slane %v5730_v46, 2 }
  0xcc   : > { %1448 = vmatmul.mubr.bf16.gmra.mrb[40].mxu0 %v5648_v28  ;;  %v5697_v31 = vsel %vm452_vm0, %v935_v32, %v5688_v24  ;;  %v706_v39 = vpack.c.bf16 %v502_v12, %v5432_v60 }
  0xcd   : > { %1455 = vmatprep.mubr.bf16.mxu0 %v1128_v33  ;;  %v6644_v33 = vld [vmem:[#allocation31_spill] sm:$0xff] }
  0xce   : > { %v497_v51 = vsel %vm452_vm0, %v6644_v33, %v496_v55  ;;  %v6649_v55 = vld [vmem:[#allocation32_spill] sm:$0xff] }
  0xcf   : > { %v703_v30 = vpack.c.bf16 %v497_v51, %v5408_v44  ;;  %v5710_v44 = vld [vmem:[#allocation2 + $0x50] sm:$0xff] }
  0xd0   : > { %1882 = vmatmul.mubr.bf16.gmra.mrb[40].mxu1 %v6643_v56  ;;  %v6650_v56 = vld [vmem:[#allocation22_spill] sm:$0xff]  ;;  %v6651_v51 = vld [vmem:[#allocation23_spill] sm:$0xff]  ;;  %v2338_v22 = vrot.slane %v5710_v44, 2 }
  0xd1   : > { %1889 = vmatprep.mubr.bf16.mxu1 %v700_v17  ;;  %v939_v17 = vsel %vm452_vm0, %v5688_v24, %v938_v63  ;;  %v940_v33 = vrot.slane %v6650_v56, 1  ;;  %v5714_v26 = vrot.slane %v6651_v51, 1  ;;  %v5716_v63 = vld [vmem:[#allocation2 + $0x58] sm:$0x3] }
  0xd2   : > { %v1134_v32 = vpack.c.bf16 %v939_v17, %v5697_v31  ;;  %v5728_v17 = vld [vmem:[#allocation2 + $0x38] sm:$0xff] }
  0xd3   : > { %v2333_v62 = vrot.slane %v5728_v17, 2  ;;  %v5739_v61 = vsel %vm452_vm0, %v940_v33, %v5714_v26  ;;  %v944_v58 = vsel %vm452_vm0, %v5714_v26, %v943_v43  ;;  %v5763_v43 = vpack.c.bf16 %v6646_v20, %v6645_v4  ;;  %v4653_v4 = vld [vmem:[#allocation2 + $0x30] sm:$0xff] }
  0xd4   : > { %1456 = vmatmul.mubr.bf16.gmra.mrb[44].mxu0 %v5681_v5  ;;  %v987_v20 = vrot.slane %v4653_v4, 2  ;;  %v5823_v4 = vld [vmem:[#allocation2 + $0x178] sm:$0x3] }
  0xd5   : > { %1463 = vmatprep.mubr.bf16.mxu0 %v1131_v47  ;;  %v5708_v47 = vld [vmem:[#allocation2 + $0x48] sm:$0xff]  ;;  %v5748_v7 = vsel %vm565_vm1, %v2332_v11, %v2333_v62  ;;  %v5751_v27 = vsel %vm565_vm1, %v2333_v62, %v2335_v36  ;;  %v1137_v11 = vpack.c.bf16 %v944_v58, %v5739_v61  ;;  %v507_v62 = vsel %vm452_vm0, %v5458_v2, %v506_v59  ;;  %v5780_v2 = vld [vmem:[#allocation2 + $0x130] sm:$0x3] }
  0xd6   : > { %v2446_v33 = vpack.c.bf16 %v5751_v27, %v5748_v7  ;;  %v6653_v59 = vpack.c.bf16 %v5455_v34, %v5445_v23  ;;  %v6654_v34 = vpack.c.bf16 %v5281_v9, %v5279_v6  ;;  %v6655_v23 = vpack.c.bf16 %v5228_v45, %v5224_v8  ;;  %v4629_v9 = vld [vmem:[#allocation6 + $0x180] sm:$0xff]  }
  0xd8   : > { %1890 = vmatmul.mubr.bf16.gmra.mrb[44].mxu1 %v6649_v55  ;;  %v2337_v55 = vrot.slane %v5708_v47, 2 }
  0xd9   : > { %1897 = vmatprep.mubr.bf16.mxu1 %v703_v30  ;;  %v2340_v30 = vrot.slane %v5716_v63, 2 }
  0xda   : > { %v5743_v50 = vsel %vm565_vm1, %v2337_v55, %v2338_v22  ;;  %v709_v55 = vpack.c.bf16 %v507_v62, %v5506_v10  ;;  %v4630_v62 = vld [vmem:[#allocation6 + $0x1c8] sm:$0xff]  }
  0xdb   : > { %v5754_v60 = vsel %vm565_vm1, %v2338_v22, %v2340_v30  ;;  %v5768_v22 = vld [vmem:[#allocation2 + $0x118] sm:$0x3] }
  0xdc   : > { %1464 = vmatmul.mubr.bf16.gmra.mrb[48].mxu0 %v5705_v37  ;;  %v511_v12 = vrot.slane %v5768_v22, 1 }
  0xdd   : > { %1471 = vmatprep.mubr.bf16.mxu0 %v1134_v32  ;;  %v2449_v32 = vpack.c.bf16 %v5754_v60, %v5743_v50 }
  0xde   : > { %v512_v58 = vsel %vm452_vm0, %v5565_v49, %v511_v12  ;;  %v4655_v49 = vld [vmem:[#allocation2 + $0x40] sm:$0x3]  ;;  %v6656_v12 = vpack.c.bf16 %v5486_v41, %v5477_v18  ;;  %v6657_v41 = vpack.c.bf16 %v5502_v35, %v5498_v15  ;;  %v4639_v35 = vld [vmem:[#allocation6 + $0x1e8] sm:$0xff]  }
  0xdf   : > { %v712_v10 = vpack.c.bf16 %v512_v58, %v5592_v3  ;;  %v990_v30 = vrot.slane %v4655_v49, 2  ;;  %v531_v49 = vrot.slane %v5823_v4, 1 }
  0xe0   : > { %1898 = vmatmul.mubr.bf16.gmra.mrb[48].mxu1 %v5473_v48  ;;  %v5776_v48 = vpack.c.bf16 %v6651_v51, %v6650_v56  ;;  %v4654_v56 = vld [vmem:[#allocation2 + $0x38] sm:$0xff] }
  0xe1   : > { %1905 = vmatprep.mubr.bf16.mxu1 %v706_v39  ;;  %v5789_v51 = vrot.slane %v4654_v56, 2  ;;  %v5793_v39 = vld [vmem:[#allocation2 + $0x148] sm:$0x3]  ;;  %v4637_v56 = vld [vmem:[#allocation6 + $0x1e0] sm:$0xff]  }
  0xe4   : > { %1472 = vmatmul.mubr.bf16.gmra.mrb[52].mxu0 %v5763_v43 }
  0xe5   : > { %1479 = vmatprep.mubr.bf16.mxu0 %v1137_v11  ;;  %v991_v11 = vsel %vm565_vm1, %v5789_v51, %v990_v30  ;;  %v532_v30 = vsel %vm452_vm0, %v5714_v26, %v531_v49 }
  0xe8   : > { %1906 = vmatmul.mubr.bf16.gmra.mrb[52].mxu1 %v5436_v57  ;;  %v516_v57 = vrot.slane %v5780_v2, 1 }
  0xe9   : > { %1913 = vmatprep.mubr.bf16.mxu1 %v709_v55  ;;  %v4631_v55 = vld [vmem:[#allocation6 + $0x188] sm:$0xff]  }
  0xea   : > { %v517_v36 = vsel %vm452_vm0, %v5606_v54, %v516_v57  ;;  %v521_v54 = vrot.slane %v5793_v39, 1 }
  0xeb   : > { %v715_v3 = vpack.c.bf16 %v517_v36, %v5627_v40  ;;  %v5813_v40 = vld [vmem:[#allocation2 + $0x160] sm:$0x3]  ;;  %v2220_v36 = vrot.slane %v5726_v25, 1 }
  0xec   : > { %1480 = vmatmul.mubr.bf16.gmra.mrb[56].mxu0 %v5776_v48  ;;  %v522_v45 = vsel %vm452_vm0, %v5653_v52, %v521_v54  ;;  %v4633_v52 = vld [vmem:[#allocation6 + $0x190] sm:$0xff]  }
  0xed   : > { %1487 = vmatprep.mubr.bf16.mxu0 %v6653_v59  ;;  %v718_v58 = vpack.c.bf16 %v522_v45, %v5674_v19  ;;  %v526_v59 = vrot.slane %v5813_v40, 1  ;;  %v4635_v19 = vld [vmem:[#allocation6 + $0x198] sm:$0xff]   ;;  %v4641_v54 = vld [vmem:[#allocation6 + $0x1f0] sm:$0xff]  }
  0xef   : > { %v527_v57 = vsel %vm452_vm0, %v5688_v24, %v526_v59  ;;  %v4638_v24 = vld [vmem:[#allocation6 + $0x1a0] sm:$0xff]  }
  0xf0   : > { %1914 = vmatmul.mubr.bf16.gmra.mrb[56].mxu1 %v5600_v42  ;;  %v5804_v42 = vsel %vm565_vm1, %v987_v20, %v5789_v51  ;;  %v6658_v20 = vpack.c.bf16 %v5525_v16, %v5512_v29  ;;  %v2221_v16 = vrot.slane %v5728_v17, 1 }
  0xf1   : > { %1921 = vmatprep.mubr.bf16.mxu1 %v712_v10  ;;  %v1099_v6 = vpack.c.bf16 %v991_v11, %v5804_v42  ;;  %v4634_v10 = vld [vmem:[#allocation6 + $0x1d8] sm:$0xff]  }
  0xf2   : > { %v5846_v11 = vld [vmem:[#allocation2 + $0x8] sm:$0xff] }
  0xf3   : > { %v5849_v26 = vrot.slane %v5846_v11, 2 }
  0xf4   : > { %1488 = vmatmul.mubr.bf16.gmra.mrb[60].mxu0 %v6654_v34  ;;  %v6659_v34 = vpack.c.bf16 %v5541_v13, %v5537_v0  ;;  %v2222_v13 = vsel %vm452_vm0, %v2220_v36, %v2221_v16 }
  0xf5   : > { %4210 = vmatprep.mubr.bf16.mxu0 %v6655_v23  ;;  %v6660_v23 = vpack.c.bf16 %v5552_v21, %v5548_v53  ;;  %v4642_v21 = vld [vmem:[#allocation6 + $0x1b0] sm:$0xff]  }
  0xf8   : > { %1922 = vmatmul.mubr.bf16.gmra.mrb[60].mxu1 %v5648_v28  ;;  %v4632_v28 = vld [vmem:[#allocation6 + $0x1d0] sm:$0xff]  }
  0xf9   : > { %1929 = vmatprep.mubr.bf16.mxu1 %v715_v3  ;;  %v724_v3 = vpack.c.bf16 %v532_v30, %v5739_v61  ;;  %v4643_v61 = vld [vmem:[#allocation6 + $0x1f8] sm:$0xff]  }
  0xfc   : > { %4211 = vmatmul.mubr.bf16.vlgmr.msra.gmra.mrb[64].mxu0 %v1099_v6 }
  0xfd   : > { %4059 = vmatpush3.bf16.msra.mxu0 %v4629_v9  ;;  %4214 = vmatprep.mubr.bf16.mxu0 %v6656_v12  ;;  %v2226_v12 = vrot.slane %v5710_v44, 1 }
  0xfe   : > { %4060 = vmatprep.subr.bf16.mxu0 %v4630_v62 }
 0x100   : > { %1930 = vmatmul.mubr.bf16.gmra.mrb[64].mxu1 %v5681_v5  ;;  %v721_v5 = vpack.c.bf16 %v527_v57, %v5697_v31  ;;  %v2223_v31 = vrot.slane %v5730_v46, 1  ;;  %v4657_v46 = vld [vmem:[#allocation2 + $0x10] sm:$0x3] }
 0x101   : > { %4061 = vmatpush3.bf16.msra.mxu0 %v4631_v55  ;;  %1937 = vmatprep.mubr.bf16.mxu1 %v718_v58  ;;  %v569_v6 = vrot.slane %v4657_v46, 2  ;;  %v2225_v55 = vrot.slane %v5708_v47, 1  ;;  %v2228_v58 = vrot.slane %v5716_v63, 1  ;;  %v5870_v63 = vld [vmem:[#allocation2 + $0x70] sm:$0x3] }
 0x102   : > { %4062 = vmatprep.subr.bf16.mxu0 %v4632_v28  ;;  %v2224_v9 = vsel %vm452_vm0, %v2221_v16, %v2223_v31  ;;  %v6661_v28 = vpack.c.bf16 %v5576_v1, %v5572_v14  ;;  %v2444_v1 = vpack.c.bf16 %v5728_v17, %v5726_v25  ;;  %v5883_v17 = vld [vmem:[#allocation2 + $0x78] sm:$0xff]  ;;  %v5885_v16 = vld [vmem:[#allocation2 + $0x80] sm:$0xff]  ;;  %v6663_v31 = vld [vmem:[#allocation34_spill] sm:$0xff] }
 0x103   : > { %v2445_v62 = vpack.c.bf16 %v2224_v9, %v2222_v13  ;;  %v570_v45 = vsel %vm565_vm1, %v5849_v26, %v569_v6  ;;  %v2227_v57 = vsel %vm452_vm0, %v2225_v55, %v2226_v12  ;;  %v2236_v46 = vrot.slane %v5885_v16, 1  ;;  %v5900_v13 = vld [vmem:[#allocation2 + $0x90] sm:$0xff]  ;;  %v5902_v9 = vld [vmem:[#allocation2 + $0x98] sm:$0xff] }
 0x104   : > { %4215 = vmatmul.mubr.bf16.gmra.mrb[68].mxu0 %v6657_v41  ;;  %v680_v59 = vpack.c.bf16 %v570_v45, %v5849_v26  ;;  %v2229_v41 = vsel %vm452_vm0, %v2226_v12, %v2228_v58  ;;  %v6668_v55 = vld [vmem:[#allocation35_spill] sm:$0xff] }
 0x105   : > { %4063 = vmatpush3.bf16.msra.mxu0 %v4633_v52  ;;  %4218 = vmatprep.mubr.bf16.mxu0 %v6658_v20  ;;  %v6662_v52 = vld [vmem:[#allocation27_spill] sm:$0xff]  ;;  %v5868_v20 = vld [vmem:[#allocation2 + $0x68] sm:$0xff]  ;;  %v6669_v12 = vpack.c.bf16 %v6668_v55, %v5498_v15  ;;  %v5944_v55 = vld [vmem:[#allocation2 + $0xd0] sm:$0x3] }
 0x106   : > { %4064 = vmatprep.subr.bf16.mxu0 %v4634_v10  ;;  %v579_v10 = vrot.slane %v6662_v52, 2  ;;  %v4649_v52 = vld [vmem:[#allocation6 + $0x220] sm:$0xff]   ;;  %v4650_v15 = vld [vmem:[#allocation6 + $0x228] sm:$0xff]  }
 0x108   : > { %1938 = vmatmul.mubr.bf16.gmra.mrb[68].mxu1 %v5705_v37  ;;  %v4640_v37 = vld [vmem:[#allocation6 + $0x1a8] sm:$0xff]  }
 0x109   : > { %4065 = vmatpush3.bf16.msra.mxu0 %v4635_v19  ;;  %1945 = vmatprep.mubr.bf16.mxu1 %v721_v5  ;;  %v5866_v19 = vld [vmem:[#allocation2 + $0x60] sm:$0xff]  ;;  %v2448_v5 = vpack.c.bf16 %v2229_v41, %v2227_v57  ;;  %v5919_v57 = vld [vmem:[#allocation2 + $0xa8] sm:$0xff]  ;;  %v5921_v41 = vld [vmem:[#allocation2 + $0xb0] sm:$0xff] }
 0x10a   : > { %4066 = vmatprep.subr.bf16.mxu0 %v4637_v56  ;;  %v580_v56 = vsel %vm565_vm1, %v5789_v51, %v579_v10  ;;  %v2230_v49 = vrot.slane %v5866_v19, 1  ;;  %v5887_v51 = vld [vmem:[#allocation2 + $0x88] sm:$0x3]  ;;  %v2450_v45 = vpack.c.bf16 %v5868_v20, %v5866_v19 }
 0x10b   : > { %v686_v30 = vpack.c.bf16 %v580_v56, %v5804_v42  ;;  %v6665_v42 = vld [vmem:[#allocation33_spill] sm:$0xff]  ;;  %v2238_v6 = vrot.slane %v5887_v51, 1  ;;  %v2350_v7 = vrot.slane %v5887_v51, 2 }
 0x10c   : > { %4219 = vmatmul.mubr.bf16.gmra.mrb[72].mxu0 %v6659_v34  ;;  %v6664_v34 = vpack.c.bf16 %v6663_v31, %v5224_v8  ;;  %v4651_v31 = vld [vmem:[#allocation6 + $0x230] sm:$0xff]  }
 0x10d   : > { %4067 = vmatpush3.bf16.msra.mxu0 %v4638_v24  ;;  %4222 = vmatprep.mubr.bf16.mxu0 %v6660_v23  ;;  %v2231_v24 = vrot.slane %v5868_v20, 1 }
 0x10e   : > { %4068 = vmatprep.subr.bf16.mxu0 %v4639_v35  ;;  %v2233_v35 = vrot.slane %v5870_v63, 1 }
 0x10f   : > { %v2232_v36 = vsel %vm452_vm0, %v2230_v49, %v2231_v24  ;;  %v2453_v49 = vpack.c.bf16 %v5885_v16, %v5883_v17 }
 0x110   : > { %1946 = vmatmul.mubr.bf16.gmra.mrb[72].mxu1 %v5763_v43  ;;  %v4644_v43 = vld [vmem:[#allocation6 + $0x1b8] sm:$0xff]   ;;  %v2234_v25 = vsel %vm452_vm0, %v2231_v24, %v2233_v35  ;;  %v6672_v24 = vld [vmem:[#allocation36_spill] sm:$0xff] }
 0x111   : > { %4069 = vmatpush3.bf16.msra.mxu0 %v4640_v37  ;;  %1953 = vmatprep.mubr.bf16.mxu1 %v724_v3  ;;  %v2447_v37 = vpack.c.bf16 %v5710_v44, %v5708_v47  ;;  %v2451_v23 = vpack.c.bf16 %v2234_v25, %v2232_v36  ;;  %v4647_v3 = vld [vmem:[#allocation6 + $0x210] sm:$0xff]   ;;  %v2239_v47 = vsel %vm452_vm0, %v2236_v46, %v2238_v6  ;;  %v4648_v44 = vld [vmem:[#allocation6 + $0x218] sm:$0xff]   ;;  %v2246_v36 = vrot.slane %v5921_v41, 1 }
 0x112   : > { %4070 = vmatprep.subr.bf16.mxu0 %v4641_v54  ;;  %v2235_v54 = vrot.slane %v5883_v17, 1  ;;  %v6673_v35 = vpack.c.bf16 %v6672_v24, %v5537_v0  ;;  %v4660_v0 = vld [vmem:[#allocation2 + $0xf0] sm:$0xff]  ;;  %v4662_v24 = vld [vmem:[#allocation2 + $0x108] sm:$0xff] }
 0x114   : > { %4223 = vmatmul.mubr.bf16.gmra.mrb[76].mxu0 %v6661_v28  ;;  %v2237_v8 = vsel %vm452_vm0, %v2235_v54, %v2236_v46  ;;  %v2240_v28 = vrot.slane %v5900_v13, 1  ;;  %v616_v54 = vrot.slane %v4660_v0, 2  ;;  %v4661_v46 = vld [vmem:[#allocation2 + $0xf8] sm:$0xff]  ;;  %v5967_v0 = vld [vmem:[#allocation2 + $0xe0] sm:$0xff] }
 0x115   : > { %4071 = vmatpush3.bf16.msra.mxu0 %v4642_v21  ;;  %2717 = vmatprep.mubr.bf16.mxu0 %v2445_v62  ;;  %v5904_v21 = vld [vmem:[#allocation2 + $0xa0] sm:$0x3]  ;;  %v6666_v62 = vld [vmem:[#allocation15_spill] sm:$0xff]  ;;  %v2454_v58 = vpack.c.bf16 %v2239_v47, %v2237_v8  ;;  %v617_v6 = vrot.slane %v4661_v46, 2  ;;  %v619_v8 = vrot.slane %v5723_v38, 2  ;;  %v2456_v38 = vpack.c.bf16 %v5902_v9, %v5900_v13 }
 0x116   : > { %4072 = vmatprep.subr.bf16.mxu0 %v4643_v61  ;;  %v6667_v61 = vpack.c.bf16 %v6666_v62, %v5477_v18  ;;  %v4652_v62 = vld [vmem:[#allocation6 + $0x238] sm:$0xff]  }
 0x118   : > { %1954 = vmatmul.mubr.bf16.gmra.mrb[76].mxu1 %v5776_v48  ;;  %v4646_v48 = vld [vmem:[#allocation6 + $0x208] sm:$0xff]  }
 0x119   : > { %4073 = vmatpush3.bf16.msra.mxu0 %v4644_v43  ;;  %4258 = vmatprep.mubr.bf16.mxu1 %v680_v59  ;;  %v2241_v43 = vrot.slane %v5902_v9, 1  ;;  %v2243_v59 = vrot.slane %v5904_v21, 1 }
 0x11b   : > { %v2242_v18 = vsel %vm452_vm0, %v2240_v28, %v2241_v43  ;;  %v2244_v10 = vsel %vm452_vm0, %v2241_v43, %v2243_v59  ;;  %v6677_v43 = vld [vmem:[#allocation16_spill] sm:$0xff] }
 0x11c   : > { %2718 = vmatmul.mubr.bf16.vlgmr.msra.gmra.mrb[80].mxu0 %v2444_v1  ;;  %v5923_v1 = vld [vmem:[#allocation2 + $0xb8] sm:$0x3]  ;;  %v6678_v59 = vpack.c.bf16 %v6677_v43, %v5572_v14  ;;  %v621_v14 = vrot.slane %v4662_v24, 2  ;;  %v4667_v43 = vld [vmem:[#allocation2 + $0x140] sm:$0xff] }
 0x11d   : > { %2725 = vmatprep.mubr.bf16.mxu0 %v2448_v5  ;;  %v6670_v5 = vld [vmem:[#allocation25_spill] sm:$0xff]  ;;  %v2248_v25 = vrot.slane %v5923_v1, 1 }
 0x11e   : > { %v6671_v56 = vpack.c.bf16 %v6670_v5, %v5512_v29  ;;  %v4658_v29 = vld [vmem:[#allocation2 + $0xd8] sm:$0xff] }
 0x120   : > { %4259 = vmatmul.mubr.bf16.vlgmr.msra.gmra.mrb[80].mxu1 %v6664_v34  ;;  %v611_v34 = vrot.slane %v4658_v29, 2  ;;  %v4665_v29 = vld [vmem:[#allocation2 + $0x128] sm:$0xff] }
 0x121   : > { %4291 = vmatpush3.bf16.msra.mxu1 %v6665_v42  ;;  %4262 = vmatprep.mubr.bf16.mxu1 %v686_v30  ;;  %v2457_v30 = vpack.c.bf16 %v2244_v10, %v2242_v18  ;;  %v618_v18 = vsel %vm565_vm1, %v616_v54, %v617_v6  ;;  %v5969_v54 = vld [vmem:[#allocation2 + $0xe8] sm:$0x3] }
 0x122   : > { %4292 = vmatprep.subr.bf16.mxu1 %v4646_v48 }
 0x124   : > { %2726 = vmatmul.mubr.bf16.gmra.mrb[84].mxu0 %v2447_v37  ;;  %v4659_v37 = vld [vmem:[#allocation2 + $0xe0] sm:$0xff] }
 0x125   : > { %4293 = vmatpush3.bf16.msra.mxu1 %v4646_v48  ;;  %2733 = vmatprep.mubr.bf16.mxu0 %v2451_v23  ;;  %v2245_v48 = vrot.slane %v5919_v57, 1  ;;  %v612_v42 = vrot.slane %v4659_v37, 2  ;;  %v6674_v23 = vld [vmem:[#allocation17_spill] sm:$0xff]  ;;  %v629_v37 = vrot.slane %v5780_v2, 2 }
 0x126   : > { %4294 = vmatprep.subr.bf16.mxu1 %v4647_v3 }
 0x127   : > { %v2247_v47 = vsel %vm452_vm0, %v2245_v48, %v2246_v36  ;;  %v613_v28 = vsel %vm565_vm1, %v611_v34, %v612_v42  ;;  %v627_v34 = vrot.slane %v4665_v29, 2 }
 0x128   : > { %4263 = vmatmul.mubr.bf16.gmra.mrb[84].mxu1 %v6667_v61  ;;  %v5940_v61 = vld [vmem:[#allocation2 + $0xc0] sm:$0xff] }
 0x129   : > { %4266 = vmatprep.mubr.bf16.mxu1 %v6669_v12  ;;  %4295 = vmatpush3.bf16.msra.mxu1 %v4647_v3  ;;  %v614_v3 = vrot.slane %v6674_v23, 2  ;;  %v6675_v12 = vld [vmem:[#allocation26_spill] sm:$0xff] }
 0x12a   : > { %4296 = vmatprep.subr.bf16.mxu1 %v4648_v44 }
 0x12c   : > { %2734 = vmatmul.mubr.bf16.gmra.mrb[88].mxu0 %v2450_v45  ;;  %v5942_v45 = vld [vmem:[#allocation2 + $0xc8] sm:$0xff] }
 0x12d   : > { %2741 = vmatprep.mubr.bf16.mxu0 %v2454_v58  ;;  %4297 = vmatpush3.bf16.msra.mxu1 %v4648_v44  ;;  %v2249_v44 = vsel %vm452_vm0, %v2246_v36, %v2248_v25  ;;  %v6676_v58 = vpack.c.bf16 %v6675_v12, %v5548_v53  ;;  %v2250_v53 = vrot.slane %v5940_v61, 1  ;;  %v2251_v5 = vrot.slane %v5942_v45, 1  ;;  %v4664_v25 = vld [vmem:[#allocation2 + $0x120] sm:$0xff] }
 0x12e   : > { %4298 = vmatprep.subr.bf16.mxu1 %v4649_v52  ;;  %v2460_v10 = vpack.c.bf16 %v2249_v44, %v2247_v47  ;;  %v624_v36 = vrot.slane %v5768_v22, 2  ;;  %v2459_v22 = vpack.c.bf16 %v5921_v41, %v5919_v57  ;;  %v630_v47 = vsel %vm565_vm1, %v627_v34, %v629_v37 }
 0x12f   : > { %v2258_v12 = vrot.slane %v5969_v54, 1 }
 0x130   : > { %4267 = vmatmul.mubr.bf16.gmra.mrb[88].mxu1 %v6671_v56  ;;  %v2253_v56 = vrot.slane %v5944_v55, 1 }
 0x131   : > { %4270 = vmatprep.mubr.bf16.mxu1 %v6673_v35  ;;  %4299 = vmatpush3.bf16.msra.mxu1 %v4649_v52  ;;  %v615_v52 = vsel %vm565_vm1, %v612_v42, %v614_v3  ;;  %v4663_v35 = vld [vmem:[#allocation2 + $0x110] sm:$0xff]  ;;  %v2252_v42 = vsel %vm452_vm0, %v2250_v53, %v2251_v5  ;;  %v5965_v3 = vld [vmem:[#allocation2 + $0xd8] sm:$0xff] }
 0x132   : > { %4300 = vmatprep.subr.bf16.mxu1 %v4650_v15  ;;  %v2254_v23 = vsel %vm452_vm0, %v2251_v5, %v2253_v56  ;;  %v2255_v44 = vrot.slane %v5965_v3, 1  ;;  %v4669_v53 = vld [vmem:[#allocation2 + $0x158] sm:$0xff]  ;;  %v639_v56 = vrot.slane %v5813_v40, 2 }
 0x133   : > { %v637_v5 = vrot.slane %v4669_v53, 2 }
 0x134   : > { %2742 = vmatmul.mubr.bf16.gmra.mrb[92].mxu0 %v2453_v49  ;;  %v707_v49 = vpack.c.bf16 %v615_v52, %v613_v28  ;;  %v4666_v28 = vld [vmem:[#allocation2 + $0x138] sm:$0xff] }
 0x135   : > { %2749 = vmatprep.mubr.bf16.mxu0 %v2457_v30  ;;  %4301 = vmatpush3.bf16.msra.mxu1 %v4650_v15  ;;  %v620_v15 = vsel %vm565_vm1, %v617_v6, %v619_v8  ;;  %v622_v30 = vrot.slane %v4663_v35, 2  ;;  %v2463_v8 = vpack.c.bf16 %v2254_v23, %v2252_v42  ;;  %v5986_v35 = vld [vmem:[#allocation2 + $0xf8] sm:$0xff] }
 0x136   : > { %4302 = vmatprep.subr.bf16.mxu1 %v4651_v31  ;;  %v710_v48 = vpack.c.bf16 %v620_v15, %v618_v18  ;;  %v634_v18 = vrot.slane %v5793_v39, 2  ;;  %v2462_v39 = vpack.c.bf16 %v5942_v45, %v5940_v61 }
 0x137   : > { %v623_v46 = vsel %vm565_vm1, %v621_v14, %v622_v30  ;;  %v625_v6 = vsel %vm565_vm1, %v622_v30, %v624_v36  ;;  %v5984_v14 = vld [vmem:[#allocation2 + $0xf0] sm:$0xff]  ;;  %v5988_v30 = vld [vmem:[#allocation2 + $0x100] sm:$0x3] }
 0x138   : > { %4271 = vmatmul.mubr.bf16.gmra.mrb[92].mxu1 %v6676_v58  ;;  %v713_v58 = vpack.c.bf16 %v625_v6, %v623_v46  ;;  %v2260_v29 = vrot.slane %v5984_v14, 1  ;;  %v2263_v37 = vrot.slane %v5988_v30, 1  ;;  %v4671_v6 = vld [vmem:[#allocation2 + $0x170] sm:$0xff] }
 0x139   : > { %4274 = vmatprep.mubr.bf16.mxu1 %v6678_v59  ;;  %4303 = vmatpush3.bf16.msra.mxu1 %v4651_v31  ;;  %v626_v31 = vrot.slane %v4664_v25, 2  ;;  %v632_v59 = vrot.slane %v4667_v43, 2 }
 0x13a   : > { %4304 = vmatprep.subr.bf16.mxu1 %v4652_v62 }
 0x13b   : > { %v628_v2 = vsel %vm565_vm1, %v626_v31, %v627_v34  ;;  %v635_v36 = vsel %vm565_vm1, %v632_v59, %v634_v18  ;;  %v640_v31 = vsel %vm565_vm1, %v637_v5, %v639_v56  ;;  %v2261_v34 = vrot.slane %v5986_v35, 1 }
 0x13c   : > { %2750 = vmatmul.mubr.bf16.gmra.mrb[96].mxu0 %v2456_v38  ;;  %v631_v38 = vrot.slane %v4666_v28, 2  ;;  %v716_v52 = vpack.c.bf16 %v630_v47, %v628_v2  ;;  %v642_v2 = vrot.slane %v4671_v6, 2  ;;  %v6004_v28 = vld [vmem:[#allocation2 + $0x110] sm:$0xff] }
 0x13d   : > { %2757 = vmatprep.mubr.bf16.mxu0 %v2460_v10  ;;  %4305 = vmatpush3.bf16.msra.mxu1 %v4652_v62  ;;  %v2256_v62 = vrot.slane %v5967_v0, 1  ;;  %v4668_v10 = vld [vmem:[#allocation2 + $0x150] sm:$0xff]  ;;  %v2266_v56 = vrot.slane %v6004_v28, 1 }
 0x13e   : > { %v636_v15 = vrot.slane %v4668_v10, 2 }
 0x13f   : > { %v2259_v24 = vsel %vm452_vm0, %v2256_v62, %v2258_v12 }
 0x140   : > { %4275 = vmatmul.mubr.bf16.gmra.mrb[0].mxu1 %v707_v49  ;;  %v2257_v49 = vsel %vm452_vm0, %v2255_v44, %v2256_v62  ;;  %v638_v40 = vsel %vm565_vm1, %v636_v15, %v637_v5  ;;  %v2262_v44 = vsel %vm452_vm0, %v2260_v29, %v2261_v34  ;;  %v2264_v62 = vsel %vm452_vm0, %v2261_v34, %v2263_v37  ;;  %v6024_v34 = vld [vmem:[#allocation2 + $0x120] sm:$0xff]  ;;  %v6026_v37 = vld [vmem:[#allocation2 + $0x128] sm:$0xff] }
 0x141   : > { %4278 = vmatprep.mubr.bf16.mxu1 %v710_v48  ;;  %v633_v48 = vsel %vm565_vm1, %v631_v38, %v632_v59  ;;  %v2466_v25 = vpack.c.bf16 %v2259_v24, %v2257_v49  ;;  %v722_v23 = vpack.c.bf16 %v640_v31, %v638_v40  ;;  %v6006_v38 = vld [vmem:[#allocation2 + $0x118] sm:$0x3]  ;;  %v2469_v15 = vpack.c.bf16 %v2264_v62, %v2262_v44 }
 0x142   : > { %v719_v42 = vpack.c.bf16 %v635_v36, %v633_v48  ;;  %v2268_v49 = vrot.slane %v6006_v38, 1  ;;  %v2343_v48 = vrot.slane %v5868_v20, 2  ;;  %v2345_v36 = vrot.slane %v5870_v63, 2 }
 0x143   : > { %v2468_v20 = vpack.c.bf16 %v5986_v35, %v5984_v14  ;;  %v2347_v62 = vrot.slane %v5883_v17, 2  ;;  %v6054_v17 = vld [vmem:[#allocation2 + $0x140] sm:$0xff] }
 0x144   : > { %2758 = vmatmul.mubr.bf16.gmra.mrb[100].mxu0 %v2459_v22  ;;  %v4670_v22 = vld [vmem:[#allocation2 + $0x168] sm:$0xff]  ;;  %v2269_v31 = vsel %vm452_vm0, %v2266_v56, %v2268_v49  ;;  %v2346_v6 = vsel %vm565_vm1, %v2343_v48, %v2345_v36  ;;  %v2276_v60 = vrot.slane %v6054_v17, 1 }
 0x145   : > { %2765 = vmatprep.mubr.bf16.mxu0 %v2463_v8  ;;  %v641_v46 = vrot.slane %v4670_v22, 2  ;;  %v644_v8 = vrot.slane %v5823_v4, 2 }
 0x147   : > { %v643_v18 = vsel %vm565_vm1, %v641_v46, %v642_v2  ;;  %v645_v10 = vsel %vm565_vm1, %v642_v2, %v644_v8  ;;  %v2270_v8 = vrot.slane %v6024_v34, 1 }
 0x148   : > { %4279 = vmatmul.mubr.bf16.gmra.mrb[4].mxu1 %v713_v58  ;;  %v6002_v58 = vld [vmem:[#allocation2 + $0x108] sm:$0xff]  ;;  %v725_v24 = vpack.c.bf16 %v645_v10, %v643_v18 }
 0x149   : > { %4282 = vmatprep.mubr.bf16.mxu1 %v716_v52  ;;  %v2465_v52 = vpack.c.bf16 %v5967_v0, %v5965_v3  ;;  %v2265_v5 = vrot.slane %v6002_v58, 1 }
 0x14c   : > { %2766 = vmatmul.mubr.bf16.gmra.mrb[104].mxu0 %v2462_v39  ;;  %v2342_v39 = vrot.slane %v5866_v19, 2 }
 0x14d   : > { %2773 = vmatprep.mubr.bf16.mxu0 %v2466_v25  ;;  %v2267_v25 = vsel %vm452_vm0, %v2265_v5, %v2266_v56  ;;  %v6052_v5 = vld [vmem:[#allocation2 + $0x138] sm:$0xff] }
 0x14e   : > { %v2472_v22 = vpack.c.bf16 %v2269_v31, %v2267_v25  ;;  %v2344_v46 = vsel %vm565_vm1, %v2342_v39, %v2343_v48  ;;  %v2275_v50 = vrot.slane %v6052_v5, 1  ;;  %v2357_v25 = vrot.slane %v5919_v57, 2  ;;  %v6084_v57 = vld [vmem:[#allocation2 + $0x158] sm:$0xff] }
 0x14f   : > { %v3802_v47 = vpop.f32.mrb[0].mxu0  ;;  %v2452_v27 = vpack.c.bf16 %v2346_v6, %v2344_v46  ;;  %v2358_v31 = vrot.slane %v5921_v41, 2  ;;  %v2365_v6 = vrot.slane %v5944_v55, 2  ;;  %v6086_v41 = vld [vmem:[#allocation2 + $0x160] sm:$0x3] }
 0x150   : > { %v3803_v12 = vpop.f32.mrb[1].mxu0  ;;  %4283 = vmatmul.mubr.bf16.gmra.mrb[8].mxu1 %v719_v42  ;;  %v6028_v42 = vld [vmem:[#allocation2 + $0x130] sm:$0x3] }
 0x151   : > { %v6008_v43 = vadd.f32 %v3803_v12, %v3802_v47  ;;  %v3805_v59 = vpop.f32.mrb[2].mxu0  ;;  %4286 = vmatprep.mubr.bf16.mxu1 %v722_v23  ;;  %v2271_v47 = vrot.slane %v6026_v37, 1  ;;  %v2273_v44 = vrot.slane %v6028_v42, 1  ;;  %v2348_v12 = vrot.slane %v5885_v16, 2  ;;  %v6056_v16 = vld [vmem:[#allocation2 + $0x148] sm:$0x3] }
 0x152   : > { %v3806_v4 = vpop.f32.mrb[3].mxu0 }
 0x153   : > { %v6014_v53 = vadd.f32 %v3806_v4, %v3805_v59  ;;  %v2353_v59 = vrot.slane %v5902_v9, 2  ;;  %v2272_v18 = vsel %vm452_vm0, %v2270_v8, %v2271_v47  ;;  %v2274_v10 = vsel %vm452_vm0, %v2271_v47, %v2273_v44  ;;  %v6082_v47 = vld [vmem:[#allocation2 + $0x150] sm:$0xff] }
 0x154   : > { %2774 = vmatmul.mubr.bf16.gmra.mrb[108].mxu0 %v2465_v52  ;;  %v2355_v52 = vrot.slane %v5904_v21, 2  ;;  %v2471_v9 = vpack.c.bf16 %v6004_v28, %v6002_v58  ;;  %v2349_v21 = vsel %vm565_vm1, %v2347_v62, %v2348_v12  ;;  %v2351_v49 = vsel %vm565_vm1, %v2348_v12, %v2350_v7 }
 0x155   : > { %2781 = vmatprep.mubr.bf16.mxu0 %v2469_v15 }
 0x156   : > { %v2356_v48 = vsel %vm565_vm1, %v2353_v59, %v2355_v52  ;;  %v2281_v52 = vrot.slane %v6084_v57, 1 }
 0x157   : > { %v3808_v40 = vpop.f32.mrb[4].mxu0 }
 0x158   : > { %v3809_v29 = vpop.f32.mrb[5].mxu0  ;;  %4287 = vmatmul.mubr.bf16.gmra.mrb[12].mxu1 %v725_v24  ;;  %v2475_v24 = vpack.c.bf16 %v2274_v10, %v2272_v18 }
 0x159   : > { %v6030_v23 = vadd.f32 %v3809_v29, %v3808_v40  ;;  %v3811_v19 = vpop.f32.mrb[6].mxu0  ;;  %4306 = vmatprep.mubr.bf16.mxu1 %v2446_v33  ;;  %v2352_v33 = vrot.slane %v5900_v13, 2  ;;  %v2455_v40 = vpack.c.bf16 %v2351_v49, %v2349_v21  ;;  %v2370_v21 = vrot.slane %v5969_v54, 2 }
 0x15a   : > { %v3812_v63 = vpop.f32.mrb[7].mxu0  ;;  %v2373_v49 = vrot.slane %v5986_v35, 2  ;;  %v2477_v54 = vpack.c.bf16 %v6054_v17, %v6052_v5 }
 0x15b   : > { %v6039_v2 = vadd.f32 %v3812_v63, %v3811_v19  ;;  %v2354_v39 = vsel %vm565_vm1, %v2352_v33, %v2353_v59  ;;  %v2360_v19 = vrot.slane %v5923_v1, 2  ;;  %v2363_v63 = vrot.slane %v5942_v45, 2 }
 0x15c   : > { %2782 = vmatmul.mubr.bf16.gmra.mrb[112].mxu0 %v2468_v20  ;;  %v2458_v29 = vpack.c.bf16 %v2356_v48, %v2354_v39  ;;  %v2362_v20 = vrot.slane %v5940_v61, 2  ;;  %v2474_v1 = vpack.c.bf16 %v6026_v37, %v6024_v34  ;;  %v2359_v61 = vsel %vm565_vm1, %v2357_v25, %v2358_v31 }
 0x15d   : > { %2789 = vmatprep.mubr.bf16.mxu0 %v2472_v22  ;;  %v2277_v22 = vsel %vm452_vm0, %v2275_v50, %v2276_v60  ;;  %v2361_v55 = vsel %vm565_vm1, %v2358_v31, %v2360_v19  ;;  %v2366_v33 = vsel %vm565_vm1, %v2363_v63, %v2365_v6  ;;  %v2280_v59 = vrot.slane %v6082_v47, 1 }
 0x15e   : > { %v2364_v7 = vsel %vm565_vm1, %v2362_v20, %v2363_v63  ;;  %v2461_v10 = vpack.c.bf16 %v2361_v55, %v2359_v61  ;;  %v2375_v48 = vrot.slane %v5988_v30, 2  ;;  %v2378_v61 = vrot.slane %v6004_v28, 2 }
 0x15f   : > { %v3814_v4 = vpop.f32.mrb[8].mxu0 }
 0x160   : > { %v3815_v15 = vpop.f32.mrb[9].mxu0  ;;  %4307 = vmatmul.mubr.bf16.vlgmr.msra.gmra.mrb[80].mxu1 %v2449_v32  ;;  %v2278_v32 = vrot.slane %v6056_v16, 1  ;;  %v2376_v19 = vsel %vm565_vm1, %v2373_v49, %v2375_v48 }
 0x161   : > { %v6061_v51 = vadd.f32 %v3815_v15, %v3814_v4  ;;  %v3817_v13 = vpop.f32.mrb[10].mxu0  ;;  %4310 = vmatprep.mubr.bf16.mxu1 %v2452_v27  ;;  %v2283_v4 = vrot.slane %v6086_v41, 1  ;;  %v2367_v15 = vrot.slane %v5965_v3, 2  ;;  %v6111_v3 = vld [vmem:[#allocation2 + $0x170] sm:$0xff] }
 0x162   : > { %v3818_v56 = vpop.f32.mrb[11].mxu0  ;;  %v2279_v46 = vsel %vm452_vm0, %v2276_v60, %v2278_v32  ;;  %v6109_v60 = vld [vmem:[#allocation2 + $0x168] sm:$0xff]  ;;  %v2286_v63 = vrot.slane %v6111_v3, 1 }
 0x163   : > { %v6069_v36 = vadd.f32 %v3818_v56, %v3817_v13  ;;  %v2478_v12 = vpack.c.bf16 %v2279_v46, %v2277_v22  ;;  %v2368_v13 = vrot.slane %v5967_v0, 2  ;;  %v2372_v56 = vrot.slane %v5984_v14, 2  ;;  %v6113_v0 = vld [vmem:[#allocation2 + $0x178] sm:$0x3] }
 0x164   : > { %2790 = vmatmul.mubr.bf16.gmra.mrb[116].mxu0 %v2471_v9  ;;  %v2464_v9 = vpack.c.bf16 %v2366_v33, %v2364_v7  ;;  %v2284_v39 = vsel %vm452_vm0, %v2281_v52, %v2283_v4  ;;  %v2285_v20 = vrot.slane %v6109_v60, 1  ;;  %v2288_v22 = vrot.slane %v6113_v0, 1 }
 0x165   : > { %2797 = vmatprep.mubr.bf16.mxu0 %v2475_v24  ;;  %v2282_v24 = vsel %vm452_vm0, %v2280_v59, %v2281_v52  ;;  %v2369_v14 = vsel %vm565_vm1, %v2367_v15, %v2368_v13  ;;  %v2371_v30 = vsel %vm565_vm1, %v2368_v13, %v2370_v21  ;;  %v2374_v31 = vsel %vm565_vm1, %v2372_v56, %v2373_v49  ;;  %v6142_v15 = vld [vmem:[#allocation2 + $0x188] sm:$0xff]  ;;  %v6144_v13 = vld [vmem:[#allocation2 + $0x190] sm:$0x3] }
 0x166   : > { %v2481_v25 = vpack.c.bf16 %v2284_v39, %v2282_v24  ;;  %v2470_v7 = vpack.c.bf16 %v2376_v19, %v2374_v31  ;;  %v2383_v33 = vrot.slane %v6026_v37, 2  ;;  %v2287_v52 = vsel %vm452_vm0, %v2285_v20, %v2286_v63 }
 0x167   : > { %v3820_v8 = vpop.f32.mrb[12].mxu0  ;;  %v2289_v4 = vsel %vm452_vm0, %v2286_v63, %v2288_v22  ;;  %v2480_v37 = vpack.c.bf16 %v6084_v57, %v6082_v47  ;;  %v2387_v31 = vrot.slane %v6052_v5, 2  ;;  %v2390_v22 = vrot.slane %v6056_v16, 2 }
 0x168   : > { %4311 = vmatmul.mubr.bf16.gmra.mrb[84].mxu1 %v2455_v40  ;;  %v3821_v44 = vpop.f32.mrb[13].mxu0  ;;  %v2484_v49 = vpack.c.bf16 %v2289_v4, %v2287_v52  ;;  %v2395_v5 = vrot.slane %v6086_v41, 2  ;;  %v2483_v16 = vpack.c.bf16 %v6111_v3, %v6109_v60 }
 0x169   : > { %v6091_v45 = vadd.f32 %v3821_v44, %v3820_v8  ;;  %v3823_v62 = vpop.f32.mrb[14].mxu0  ;;  %4314 = vmatprep.mubr.bf16.mxu1 %v2458_v29  ;;  %v2467_v44 = vpack.c.bf16 %v2371_v30, %v2369_v14 }
 0x16a   : > { %v3824_v27 = vpop.f32.mrb[15].mxu0 }
 0x16b   : > { %v6099_v18 = vadd.f32 %v3824_v27, %v3823_v62  ;;  %v2380_v62 = vrot.slane %v6006_v38, 2  ;;  %v2382_v27 = vrot.slane %v6024_v34, 2  ;;  %v6140_v38 = vld [vmem:[#allocation2 + $0x180] sm:$0xff] }
 0x16c   : > { %2798 = vmatmul.mubr.bf16.gmra.mrb[120].mxu0 %v2474_v1  ;;  %v2377_v1 = vrot.slane %v6002_v58, 2  ;;  %v2385_v58 = vrot.slane %v6028_v42, 2 }
 0x16d   : > { %2805 = vmatprep.mubr.bf16.mxu0 %v2478_v12  ;;  %v2381_v42 = vsel %vm565_vm1, %v2378_v61, %v2380_v62  ;;  %v2384_v24 = vsel %vm565_vm1, %v2382_v27, %v2383_v33 }
 0x16e   : > { %v2386_v48 = vsel %vm565_vm1, %v2383_v33, %v2385_v58  ;;  %v2295_v58 = vrot.slane %v5846_v11, 1 }
 0x16f   : > { %v3826_v50 = vpop.f32.mrb[16].mxu0  ;;  %v2476_v63 = vpack.c.bf16 %v2386_v48, %v2384_v24 }
 0x170   : > { %4315 = vmatmul.mubr.bf16.gmra.mrb[88].mxu1 %v2461_v10  ;;  %v3827_v32 = vpop.f32.mrb[17].mxu0 }
 0x171   : > { %v6118_v35 = vadd.f32 %v3827_v32, %v3826_v50  ;;  %v3829_v40 = vpop.f32.mrb[18].mxu0  ;;  %4318 = vmatprep.mubr.bf16.mxu1 %v2464_v9  ;;  %v2379_v9 = vsel %vm565_vm1, %v2377_v1, %v2378_v61  ;;  %v2290_v50 = vrot.slane %v6140_v38, 1  ;;  %v2291_v32 = vrot.slane %v6142_v15, 1 }
 0x172   : > { %v3830_v29 = vpop.f32.mrb[19].mxu0  ;;  %v2393_v61 = vrot.slane %v6084_v57, 2 }
 0x173   : > { %v3938_v46 = vpop.f32.mrb[16].mxu1  ;;  %v6126_v6 = vadd.f32 %v3830_v29, %v3829_v40  ;;  %v2388_v29 = vrot.slane %v6054_v17, 2 }
 0x174   : > { %v3939_v8 = vpop.f32.mrb[17].mxu1  ;;  %2806 = vmatmul.mubr.bf16.gmra.mrb[124].mxu0 %v2477_v54  ;;  %v2293_v54 = vrot.slane %v6144_v13, 1  ;;  %v2396_v4 = vsel %vm565_vm1, %v2393_v61, %v2395_v5 }
 0x175   : > { %v6131_v55 = vadd.f32 %v3939_v8, %v3938_v46  ;;  %v3941_v12 = vpop.f32.mrb[18].mxu1  ;;  %2813 = vmatprep.mubr.bf16.mxu0 %v2481_v25  ;;  %v2473_v25 = vpack.c.bf16 %v2381_v42, %v2379_v9  ;;  %v2392_v46 = vrot.slane %v6082_v47, 2  ;;  %v2389_v33 = vsel %vm565_vm1, %v2387_v31, %v2388_v29 }
 0x176   : > { %v3942_v59 = vpop.f32.mrb[19].mxu1  ;;  %v2294_v1 = vsel %vm452_vm0, %v2291_v32, %v2293_v54  ;;  %v2391_v57 = vsel %vm565_vm1, %v2388_v29, %v2390_v22  ;;  %v2397_v42 = vrot.slane %v6109_v60, 2  ;;  %v2486_v29 = vpack.c.bf16 %v6142_v15, %v6140_v38 }
 0x177   : > { %v6138_v10 = vadd.f32 %v3942_v59, %v3941_v12  ;;  %v3832_v28 = vpop.f32.mrb[20].mxu0  ;;  %v6171_v12 = vld [vmem:[#allocation2 + $0x1a8] sm:$0x3]  ;;  %v2394_v52 = vsel %vm565_vm1, %v2392_v46, %v2393_v61 }
 0x178   : > { %4319 = vmatmul.mubr.bf16.gmra.mrb[92].mxu1 %v2467_v44  ;;  %v3833_v34 = vpop.f32.mrb[21].mxu0  ;;  %v2292_v44 = vsel %vm452_vm0, %v2290_v50, %v2291_v32  ;;  %v2482_v48 = vpack.c.bf16 %v2396_v4, %v2394_v52  ;;  %v2400_v50 = vrot.slane %v6113_v0, 2  ;;  %v2402_v32 = vrot.slane %v6140_v38, 2 }
 0x179   : > { %v6149_v21 = vadd.f32 %v3833_v34, %v3832_v28  ;;  %v3835_v56 = vpop.f32.mrb[22].mxu0  ;;  %4322 = vmatprep.mubr.bf16.mxu1 %v2470_v7  ;;  %v2487_v59 = vpack.c.bf16 %v2294_v1, %v2292_v44  ;;  %v2298_v28 = vrot.slane %v6171_v12, 1 }
 0x17a   : > { %v3836_v39 = vpop.f32.mrb[23].mxu0 }
 0x17b   : > { %v3944_v14 = vpop.f32.mrb[20].mxu1  ;;  %v6157_v40 = vadd.f32 %v3836_v39, %v3835_v56  ;;  %v2479_v56 = vpack.c.bf16 %v2391_v57, %v2389_v33 }
 0x17c   : > { %v3945_v30 = vpop.f32.mrb[21].mxu1  ;;  %2814 = vmatmul.mubr.bf16.gmra.mrb[128].mxu0 %v2480_v37 }
 0x17d   : > { %v6161_v19 = vadd.f32 %v3945_v30, %v3944_v14  ;;  %v3947_v20 = vpop.f32.mrb[22].mxu1  ;;  %2821 = vmatprep.mubr.bf16.mxu0 %v2484_v49  ;;  %v2398_v49 = vrot.slane %v6111_v3, 2  ;;  %v2299_v14 = vsel %vm452_vm0, %v2295_v58, %v2298_v28  ;;  %v2403_v30 = vrot.slane %v6142_v15, 2 }
 0x17e   : > { %v3948_v8 = vpop.f32.mrb[23].mxu1  ;;  %v2490_v46 = vpack.c.bf16 %v2299_v14, %v2295_v58 }
 0x17f   : > { %v6169_v62 = vadd.f32 %v3948_v8, %v3947_v20  ;;  %v3838_v17 = vpop.f32.mrb[24].mxu0  ;;  %v2401_v22 = vsel %vm565_vm1, %v2398_v49, %v2400_v50 }
 0x180   : > { %4323 = vmatmul.mubr.bf16.gmra.mrb[0].mxu1 %v2473_v25  ;;  %v3839_v7 = vpop.f32.mrb[25].mxu0  ;;  %v2405_v25 = vrot.slane %v6144_v13, 2  ;;  %v2404_v13 = vsel %vm565_vm1, %v2402_v32, %v2403_v30 }
 0x181   : > { %v6175_v47 = vadd.f32 %v3839_v7, %v3838_v17  ;;  %v3841_v27 = vpop.f32.mrb[26].mxu0  ;;  %4326 = vmatprep.mubr.bf16.mxu1 %v2476_v63  ;;  %v2399_v63 = vsel %vm565_vm1, %v2397_v42, %v2398_v49 }
 0x182   : > { %v3842_v41 = vpop.f32.mrb[27].mxu0  ;;  %v2406_v44 = vsel %vm565_vm1, %v2403_v30, %v2405_v25  ;;  %v2485_v38 = vpack.c.bf16 %v2401_v22, %v2399_v63 }
 0x183   : > { %v3950_v34 = vpop.f32.mrb[24].mxu1  ;;  %v6183_v37 = vadd.f32 %v3842_v41, %v3841_v27  ;;  %v2488_v7 = vpack.c.bf16 %v2406_v44, %v2404_v13  ;;  %v2489_v41 = vpack.c.bf16 %v5846_v11, %v5846_v11 }
 0x184   : > { %v3951_v9 = vpop.f32.mrb[25].mxu1  ;;  %2822 = vmatmul.mubr.bf16.gmra.mrb[132].mxu0 %v2483_v16  ;;  %v2410_v16 = vrot.slane %v6171_v12, 2 }
 0x185   : > { %v6187_v24 = vadd.f32 %v3951_v9, %v3950_v34  ;;  %v3953_v39 = vpop.f32.mrb[26].mxu1  ;;  %2829 = vmatprep.mubr.bf16.mxu0 %v2487_v59 }
 0x186   : > { %v3954_v54 = vpop.f32.mrb[27].mxu1  ;;  %v2411_v58 = vsel %vm565_vm1, %v5849_v26, %v2410_v16 }
 0x187   : > { %v6194_v31 = vadd.f32 %v3954_v54, %v3953_v39  ;;  %v3844_v60 = vpop.f32.mrb[28].mxu0  ;;  %v2491_v12 = vpack.c.bf16 %v2411_v58, %v5849_v26 }
 0x188   : > { %4327 = vmatmul.mubr.bf16.gmra.mrb[4].mxu1 %v2479_v56  ;;  %v3845_v3 = vpop.f32.mrb[29].mxu0 }
 0x189   : > { %v6198_v20 = vadd.f32 %v3845_v3, %v3844_v60  ;;  %v3847_v0 = vpop.f32.mrb[30].mxu0  ;;  %4330 = vmatprep.mubr.bf16.mxu1 %v2482_v48 }
 0x18a   : > { %v3848_v8 = vpop.f32.mrb[31].mxu0 }
 0x18b   : > { %v3956_v1 = vpop.f32.mrb[28].mxu1  ;;  %v6204_v61 = vadd.f32 %v3848_v8, %v3847_v0 }
 0x18c   : > { %v3957_v5 = vpop.f32.mrb[29].mxu1  ;;  %2830 = vmatmul.mubr.bf16.gmra.mrb[136].mxu0 %v2486_v29 }
 0x18d   : > { %v6206_v15 = vadd.f32 %v3957_v5, %v3956_v1  ;;  %v3959_v17 = vpop.f32.mrb[30].mxu1  ;;  %2837 = vmatprep.mubr.bf16.mxu0 %v2490_v46 }
 0x18e   : > { %v3960_v27 = vpop.f32.mrb[31].mxu1 }
 0x18f   : > { %v6209_v33 = vadd.f32 %v3960_v27, %v3959_v17  ;;  %v3850_v57 = vpop.f32.mrb[32].mxu0 }
 0x190   : > { %4331 = vmatmul.mubr.bf16.gmra.mrb[8].mxu1 %v2485_v38  ;;  %v3851_v59 = vpop.f32.mrb[33].mxu0 }
 0x191   : > { %v3852_v52 = vadd.f32 %v3851_v59, %v3850_v57  ;;  %v3853_v4 = vpop.f32.mrb[34].mxu0  ;;  %4334 = vmatprep.mubr.bf16.mxu1 %v2488_v7 }
 0x192   : > { %v3854_v28 = vpop.f32.mrb[35].mxu0 }
 0x193   : > { %v3962_v34 = vpop.f32.mrb[32].mxu1  ;;  %v3855_v9 = vadd.f32 %v3854_v28, %v3853_v4 }
 0x194   : > { %v3963_v56 = vpop.f32.mrb[33].mxu1  ;;  %2838 = vmatmul.mubr.bf16.gmra.mrb[140].mxu0 %v2489_v41 }
 0x195   : > { %v6216_v42 = vadd.f32 %v3963_v56, %v3962_v34  ;;  %v3965_v49 = vpop.f32.mrb[34].mxu1 }
 0x196   : > { %v3966_v39 = vpop.f32.mrb[35].mxu1 }
 0x197   : > { %v6218_v48 = vadd.f32 %v3966_v39, %v3965_v49  ;;  %v3856_v11 = vpop.f32.mrb[36].mxu0 }
 0x198   : > { %4335 = vmatmul.mubr.bf16.gmra.mrb[12].mxu1 %v2491_v12  ;;  %v3857_v50 = vpop.f32.mrb[37].mxu0 }
 0x199   : > { %v3858_v32 = vadd.f32 %v3857_v50, %v3856_v11  ;;  %v3859_v54 = vpop.f32.mrb[38].mxu0 }
 0x19a   : > { %v3860_v14 = vpop.f32.mrb[39].mxu0 }
 0x19b   : > { %v3968_v30 = vpop.f32.mrb[36].mxu1  ;;  %v3861_v25 = vadd.f32 %v3860_v14, %v3859_v54 }
 0x19c   : > { %v3969_v60 = vpop.f32.mrb[37].mxu1 }
 0x19d   : > { %v6220_v3 = vadd.f32 %v3969_v60, %v3968_v30  ;;  %v3971_v29 = vpop.f32.mrb[38].mxu1 }
 0x19e   : > { %v3972_v0 = vpop.f32.mrb[39].mxu1 }
 0x19f   : > { %v6222_v26 = vadd.f32 %v3972_v0, %v3971_v29  ;;  %v3862_v63 = vpop.f32.mrb[40].mxu0 }
 0x1a0   : > { %v3863_v22 = vpop.f32.mrb[41].mxu0 }
 0x1a1   : > { %v3864_v46 = vadd.f32 %v3863_v22, %v3862_v63  ;;  %v3865_v8 = vpop.f32.mrb[42].mxu0 }
 0x1a2   : > { %v3866_v13 = vpop.f32.mrb[43].mxu0 }
 0x1a3   : > { %v3974_v44 = vpop.f32.mrb[40].mxu1  ;;  %v3867_v1 = vadd.f32 %v3866_v13, %v3865_v8 }
 0x1a4   : > { %v3975_v5 = vpop.f32.mrb[41].mxu1 }
 0x1a5   : > { %v6224_v38 = vadd.f32 %v3975_v5, %v3974_v44  ;;  %v3977_v17 = vpop.f32.mrb[42].mxu1 }
 0x1a6   : > { %v3978_v7 = vpop.f32.mrb[43].mxu1 }
 0x1a7   : > { %v6226_v16 = vadd.f32 %v3978_v7, %v3977_v17  ;;  %v3868_v27 = vpop.f32.mrb[44].mxu0 }
 0x1a8   : > { %v3869_v57 = vpop.f32.mrb[45].mxu0 }
 0x1a9   : > { %v6228_v59 = vadd.f32 %v3869_v57, %v3868_v27  ;;  %v3871_v41 = vpop.f32.mrb[46].mxu0 }
 0x1aa   : > { %v3872_v4 = vpop.f32.mrb[47].mxu0 }
 0x1ab   : > { %v3980_v58 = vpop.f32.mrb[44].mxu1  ;;  %v6230_v28 = vadd.f32 %v3872_v4, %v3871_v41 }
 0x1ac   : > { %v3981_v34 = vpop.f32.mrb[45].mxu1 }
 0x1ad   : > { %v6232_v56 = vadd.f32 %v3981_v34, %v3980_v58  ;;  %v3983_v12 = vpop.f32.mrb[46].mxu1 }
 0x1ae   : > { %v3984_v49 = vpop.f32.mrb[47].mxu1 }
 0x1af   : > { %v6234_v39 = vadd.f32 %v3984_v49, %v3983_v12  ;;  %v3874_v11 = vpop.f32.mrb[48].mxu0 }
 0x1b0   : > { %v3875_v50 = vpop.f32.mrb[49].mxu0 }
 0x1b1   : > { %v6236_v54 = vadd.f32 %v3875_v50, %v3874_v11  ;;  %v3877_v14 = vpop.f32.mrb[50].mxu0 }
 0x1b2   : > { %v3878_v30 = vpop.f32.mrb[51].mxu0 }
 0x1b3   : > { %v3986_v60 = vpop.f32.mrb[48].mxu1  ;;  %v6238_v29 = vadd.f32 %v3878_v30, %v3877_v14 }
 0x1b4   : > { %v3987_v0 = vpop.f32.mrb[49].mxu1 }
 0x1b5   : > { %v3988_v63 = vadd.f32 %v3987_v0, %v3986_v60  ;;  %v3989_v22 = vpop.f32.mrb[50].mxu1 }
 0x1b6   : > { %v3990_v8 = vpop.f32.mrb[51].mxu1 }
 0x1b7   : > { %v6240_v13 = vadd.f32 %v3988_v63, %v3852_v52  ;;  %v3991_v44 = vadd.f32 %v3990_v8, %v3989_v22  ;;  %v3880_v5 = vpop.f32.mrb[52].mxu0 }
 0x1b8   : > { %v3881_v17 = vpop.f32.mrb[53].mxu0 }
 0x1b9   : > { %v6242_v7 = vadd.f32 %v3991_v44, %v3855_v9  ;;  %v6244_v27 = vadd.f32 %v3881_v17, %v3880_v5  ;;  %v3883_v57 = vpop.f32.mrb[54].mxu0 }
 0x1ba   : > { %v3884_v41 = vpop.f32.mrb[55].mxu0 }
 0x1bb   : > { %v3992_v4 = vpop.f32.mrb[52].mxu1  ;;  %v6246_v58 = vadd.f32 %v3884_v41, %v3883_v57 }
 0x1bc   : > { %v3993_v34 = vpop.f32.mrb[53].mxu1 }
 0x1bd   : > { %v3994_v12 = vadd.f32 %v3993_v34, %v3992_v4  ;;  %v3995_v49 = vpop.f32.mrb[54].mxu1 }
 0x1be   : > { %v3996_v11 = vpop.f32.mrb[55].mxu1 }
 0x1bf   : > { %v6248_v50 = vadd.f32 %v3994_v12, %v3858_v32  ;;  %v3997_v52 = vadd.f32 %v3996_v11, %v3995_v49  ;;  %v3886_v14 = vpop.f32.mrb[56].mxu0 }
 0x1c0   : > { %v3887_v30 = vpop.f32.mrb[57].mxu0 }
 0x1c1   : > { %v6250_v60 = vadd.f32 %v3997_v52, %v3861_v25  ;;  %v6252_v9 = vadd.f32 %v3887_v30, %v3886_v14  ;;  %v3889_v0 = vpop.f32.mrb[58].mxu0 }
 0x1c2   : > { %v3890_v63 = vpop.f32.mrb[59].mxu0 }
 0x1c3   : > { %v3998_v22 = vpop.f32.mrb[56].mxu1  ;;  %v6254_v8 = vadd.f32 %v3890_v63, %v3889_v0 }
 0x1c4   : > { %v3999_v44 = vpop.f32.mrb[57].mxu1 }
 0x1c5   : > { %v4000_v5 = vadd.f32 %v3999_v44, %v3998_v22  ;;  %v4001_v17 = vpop.f32.mrb[58].mxu1 }
 0x1c6   : > { %v4002_v57 = vpop.f32.mrb[59].mxu1 }
 0x1c7   : > { %v6256_v41 = vadd.f32 %v4000_v5, %v3864_v46  ;;  %v4003_v32 = vadd.f32 %v4002_v57, %v4001_v17  ;;  %v3892_v4 = vpop.f32.mrb[60].mxu0 }
 0x1c8   : > { %v3893_v34 = vpop.f32.mrb[61].mxu0 }
 0x1c9   : > { %v6258_v12 = vadd.f32 %v4003_v32, %v3867_v1  ;;  %v6260_v25 = vadd.f32 %v3893_v34, %v3892_v4  ;;  %v3895_v49 = vpop.f32.mrb[62].mxu0 }
 0x1ca   : > { %v3896_v11 = vpop.f32.mrb[63].mxu0 }
 0x1cb   : > { %v4004_v52 = vpop.f32.mrb[60].mxu1  ;;  %v6262_v14 = vadd.f32 %v3896_v11, %v3895_v49 }
 0x1cc   : > { %v4005_v30 = vpop.f32.mrb[61].mxu1 }
 0x1cd   : > { %v4006_v0 = vadd.f32 %v4005_v30, %v4004_v52  ;;  %v4007_v63 = vpop.f32.mrb[62].mxu1 }
 0x1ce   : > { %v4008_v22 = vpop.f32.mrb[63].mxu1 }
 0x1cf   : > { %v6265_v44 = vadd.f32 %v4006_v0, %v6228_v59  ;;  %v4009_v46 = vadd.f32 %v4008_v22, %v4007_v63  ;;  %v4212_v5 = vpop.f32.mrb[64].mxu0 }
 0x1d0   : > { %v1539_v17 = vadd.f32 %v4212_v5, %v6030_v23  ;;  %v1530_v1 = vpop.f32.mrb[65].mxu0 }
 0x1d1   : > { %v6269_v57 = vadd.f32 %v4009_v46, %v6230_v28  ;;  %v1531_v32 = vadd.f32 %v6008_v43, %v1530_v1  ;;  %v4213_v4 = vpop.f32.mrb[66].mxu0 }
 0x1d2   : > { %v6273_v34 = vadd.f32 %v6161_v19, %v1539_v17  ;;  %v1542_v49 = vadd.f32 %v4213_v4, %v6039_v2  ;;  %v1533_v11 = vpop.f32.mrb[67].mxu0 }
 0x1d3   : > { %v4010_v52 = vpop.f32.mrb[64].mxu1  ;;  %v6277_v59 = vadd.f32 %v6131_v55, %v1531_v32  ;;  %v1534_v30 = vadd.f32 %v6014_v53, %v1533_v11 }
 0x1d4   : > { %v4011_v23 = vpop.f32.mrb[65].mxu1  ;;  %v6281_v0 = vadd.f32 %v6169_v62, %v1542_v49 }
 0x1d5   : > { %v4012_v28 = vadd.f32 %v4011_v23, %v4010_v52  ;;  %v4013_v63 = vpop.f32.mrb[66].mxu1  ;;  %v6284_v43 = vadd.f32 %v6138_v10, %v1534_v30 }
 0x1d6   : > { %v4014_v19 = vpop.f32.mrb[67].mxu1 }
 0x1d7   : > { %v6287_v22 = vadd.f32 %v4012_v28, %v6236_v54  ;;  %v4015_v2 = vadd.f32 %v4014_v19, %v4013_v63  ;;  %v4216_v46 = vpop.f32.mrb[68].mxu0 }
 0x1d8   : > { %v1555_v55 = vadd.f32 %v4216_v46, %v6091_v45  ;;  %v1546_v5 = vpop.f32.mrb[69].mxu0 }
 0x1d9   : > { %v6291_v53 = vadd.f32 %v4015_v2, %v6238_v29  ;;  %v1547_v62 = vadd.f32 %v6061_v51, %v1546_v5  ;;  %v4217_v17 = vpop.f32.mrb[70].mxu0 }
 0x1da   : > { %v6295_v1 = vadd.f32 %v6206_v15, %v1555_v55  ;;  %v1558_v10 = vadd.f32 %v4217_v17, %v6099_v18  ;;  %v1549_v32 = vpop.f32.mrb[71].mxu0 }
 0x1db   : > { %v4016_v4 = vpop.f32.mrb[68].mxu1  ;;  %v6299_v54 = vadd.f32 %v6187_v24, %v1547_v62  ;;  %v1550_v49 = vadd.f32 %v6069_v36, %v1549_v32 }
 0x1dc   : > { %v4017_v45 = vpop.f32.mrb[69].mxu1  ;;  %v6303_v11 = vadd.f32 %v6209_v33, %v1558_v10 }
 0x1dd   : > { %v4018_v29 = vadd.f32 %v4017_v45, %v4016_v4  ;;  %v4019_v52 = vpop.f32.mrb[70].mxu1  ;;  %v6306_v51 = vadd.f32 %v6194_v31, %v1550_v49 }
 0x1de   : > { %v4020_v15 = vpop.f32.mrb[71].mxu1 }
 0x1df   : > { %v6309_v30 = vadd.f32 %v4018_v29, %v6244_v27  ;;  %v4021_v18 = vadd.f32 %v4020_v15, %v4019_v52  ;;  %v4220_v23 = vpop.f32.mrb[72].mxu0 }
 0x1e0   : > { %v1571_v24 = vadd.f32 %v4220_v23, %v6149_v21  ;;  %v1562_v28 = vpop.f32.mrb[73].mxu0 }
 0x1e1   : > { %v6313_v36 = vadd.f32 %v4021_v18, %v6246_v58  ;;  %v1563_v33 = vadd.f32 %v6118_v35, %v1562_v28  ;;  %v4221_v63 = vpop.f32.mrb[74].mxu0 }
 0x1e2   : > { %v6317_v19 = vadd.f32 %v6220_v3, %v1571_v24  ;;  %v1574_v31 = vadd.f32 %v4221_v63, %v6157_v40  ;;  %v1565_v2 = vpop.f32.mrb[75].mxu0 }
 0x1e3   : > { %v4022_v46 = vpop.f32.mrb[72].mxu1  ;;  %v6321_v27 = vadd.f32 %v6216_v42, %v1563_v33  ;;  %v1566_v55 = vadd.f32 %v6126_v6, %v1565_v2 }
 0x1e4   : > { %v4023_v21 = vpop.f32.mrb[73].mxu1  ;;  %v6325_v5 = vadd.f32 %v6222_v26, %v1574_v31 }
 0x1e5   : > { %v4024_v58 = vadd.f32 %v4023_v21, %v4022_v46  ;;  %v4025_v62 = vpop.f32.mrb[74].mxu1  ;;  %v6328_v35 = vadd.f32 %v6218_v48, %v1566_v55 }
 0x1e6   : > { %v4026_v3 = vpop.f32.mrb[75].mxu1 }
 0x1e7   : > { %v6331_v17 = vadd.f32 %v4024_v58, %v6252_v9  ;;  %v4027_v40 = vadd.f32 %v4026_v3, %v4025_v62  ;;  %v4224_v10 = vpop.f32.mrb[76].mxu0 }
 0x1e8   : > { %v1587_v42 = vadd.f32 %v4224_v10, %v6198_v20  ;;  %v1578_v32 = vpop.f32.mrb[77].mxu0 }
 0x1e9   : > { %v6335_v6 = vadd.f32 %v4027_v40, %v6254_v8  ;;  %v1579_v26 = vadd.f32 %v6175_v47, %v1578_v32  ;;  %v4225_v4 = vpop.f32.mrb[78].mxu0 }
 0x1ea   : > { %v6339_v49 = vadd.f32 %v6232_v56, %v1587_v42  ;;  %v1590_v48 = vadd.f32 %v4225_v4, %v6204_v61  ;;  %v1581_v45 = vpop.f32.mrb[79].mxu0 }
 0x1eb   : > { %v4028_v29 = vpop.f32.mrb[76].mxu1  ;;  %v6343_v9 = vadd.f32 %v6224_v38, %v1579_v26  ;;  %v1582_v52 = vadd.f32 %v6183_v37, %v1581_v45 }
 0x1ec   : > { %v4029_v20 = vpop.f32.mrb[77].mxu1  ;;  %v6347_v15 = vadd.f32 %v6234_v39, %v1590_v48 }
 0x1ed   : > { %v4030_v8 = vadd.f32 %v4029_v20, %v4028_v29  ;;  %v4031_v18 = vpop.f32.mrb[78].mxu1  ;;  %v1887_v47 = vadd.f32 %v6226_v16, %v1582_v52 }
 0x1ee   : > { %v4032_v23 = vpop.f32.mrb[79].mxu1 }
 0x1ef   : > { %v6351_v56 = vadd.f32 %v4030_v8, %v6260_v25  ;;  %v4033_v61 = vadd.f32 %v4032_v23, %v4031_v18  ;;  %v4074_v24 = vpop.f32.mrb[80].mxu0 }
 0x1f0   : > { %v4075_v28 = vpop.f32.mrb[81].mxu0 }
 0x1f1   : > { %v6354_v38 = vadd.f32 %v4033_v61, %v6262_v14  ;;  %v4076_v33 = vadd.f32 %v4075_v28, %v4074_v24  ;;  %v4077_v37 = vpop.f32.mrb[82].mxu0 }
 0x1f2   : > { %v4078_v63 = vpop.f32.mrb[83].mxu0 }
 0x1f3   : > { %v4079_v31 = vadd.f32 %v4078_v63, %v4077_v37  ;;  %v6357_v39 = vadd.f32 %v4076_v33, %v6277_v59 }
 0x1f5   : > { %v6360_v2 = vadd.f32 %v4079_v31, %v6284_v43 }
 0x1f7   : > { %v4080_v16 = vpop.f32.mrb[84].mxu0 }
 0x1f8   : > { %v4081_v46 = vpop.f32.mrb[85].mxu0 }
 0x1f9   : > { %v4082_v25 = vadd.f32 %v4081_v46, %v4080_v16  ;;  %v4083_v55 = vpop.f32.mrb[86].mxu0 }
 0x1fa   : > { %v4084_v21 = vpop.f32.mrb[87].mxu0 }
 0x1fb   : > { %v4085_v58 = vadd.f32 %v4084_v21, %v4083_v55  ;;  %v4356_v62 = vadd.f32 %v4082_v25, %v6273_v34 }
 0x1fd   : > { %v4364_v14 = vadd.f32 %v4085_v58, %v6281_v0 }
 0x1ff   : > { %v4086_v3 = vpop.f32.mrb[88].mxu0 }
 0x200   : > { %v4087_v40 = vpop.f32.mrb[89].mxu0 }
 0x201   : > { %v4088_v10 = vadd.f32 %v4087_v40, %v4086_v3  ;;  %v4089_v42 = vpop.f32.mrb[90].mxu0 }
 0x202   : > { %v4090_v32 = vpop.f32.mrb[91].mxu0 }
 0x203   : > { %v4091_v59 = vadd.f32 %v4090_v32, %v4089_v42  ;;  %v6365_v26 = vadd.f32 %v4088_v10, %v6299_v54 }
 0x205   : > { %v6368_v43 = vadd.f32 %v4091_v59, %v6306_v51 }
 0x207   : > { %v4092_v4 = vpop.f32.mrb[92].mxu0 }
 0x208   : > { %v4093_v48 = vpop.f32.mrb[93].mxu0 }
 0x209   : > { %v4094_v45 = vadd.f32 %v4093_v48, %v4092_v4  ;;  %v4095_v29 = vpop.f32.mrb[94].mxu0 }
 0x20a   : > { %v4096_v52 = vpop.f32.mrb[95].mxu0 }
 0x20b   : > { %v4097_v34 = vadd.f32 %v4096_v52, %v4095_v29  ;;  %v6371_v0 = vadd.f32 %v4094_v45, %v6295_v1 }
 0x20d   : > { %v6374_v20 = vadd.f32 %v4097_v34, %v6303_v11 }
 0x20f   : > { %v4098_v8 = vpop.f32.mrb[96].mxu0 }
 0x210   : > { %v4099_v18 = vpop.f32.mrb[97].mxu0 }
 0x211   : > { %v4100_v23 = vadd.f32 %v4099_v18, %v4098_v8  ;;  %v4101_v54 = vpop.f32.mrb[98].mxu0 }
 0x212   : > { %v4102_v61 = vpop.f32.mrb[99].mxu0 }
 0x213   : > { %v4103_v24 = vadd.f32 %v4102_v61, %v4101_v54  ;;  %v6377_v51 = vadd.f32 %v4100_v23, %v6321_v27 }
 0x215   : > { %v6380_v28 = vadd.f32 %v4103_v24, %v6328_v35 }
 0x217   : > { %v4104_v33 = vpop.f32.mrb[100].mxu0 }
 0x218   : > { %v4105_v37 = vpop.f32.mrb[101].mxu0 }
 0x219   : > { %v4106_v63 = vadd.f32 %v4105_v37, %v4104_v33  ;;  %v4107_v1 = vpop.f32.mrb[102].mxu0 }
 0x21a   : > { %v4108_v31 = vpop.f32.mrb[103].mxu0 }
 0x21b   : > { %v4109_v16 = vadd.f32 %v4108_v31, %v4107_v1  ;;  %v6383_v11 = vadd.f32 %v4106_v63, %v6317_v19 }
 0x21d   : > { %v6386_v46 = vadd.f32 %v4109_v16, %v6325_v5 }
 0x21f   : > { %v4110_v25 = vpop.f32.mrb[104].mxu0 }
 0x220   : > { %v4111_v55 = vpop.f32.mrb[105].mxu0 }
 0x221   : > { %v4112_v21 = vadd.f32 %v4111_v55, %v4110_v25  ;;  %v4113_v27 = vpop.f32.mrb[106].mxu0 }
 0x222   : > { %v4114_v58 = vpop.f32.mrb[107].mxu0 }
 0x223   : > { %v4115_v3 = vadd.f32 %v4114_v58, %v4113_v27  ;;  %v6389_v35 = vadd.f32 %v4112_v21, %v6343_v9 }
 0x225   : > { %v6391_v40 = vadd.f32 %v4115_v3, %v1887_v47 }
 0x227   : > { %v4116_v10 = vpop.f32.mrb[108].mxu0 }
 0x228   : > { %v4117_v42 = vpop.f32.mrb[109].mxu0 }
 0x229   : > { %v4118_v32 = vadd.f32 %v4117_v42, %v4116_v10  ;;  %v4119_v59 = vpop.f32.mrb[110].mxu0 }
 0x22a   : > { %v4120_v19 = vpop.f32.mrb[111].mxu0 }
 0x22b   : > { %v4121_v4 = vadd.f32 %v4120_v19, %v4119_v59  ;;  %v6394_v5 = vadd.f32 %v4118_v32, %v6339_v49 }
 0x22d   : > { %v6397_v48 = vadd.f32 %v4121_v4, %v6347_v15 }
 0x22f   : > { %v4122_v45 = vpop.f32.mrb[112].mxu0 }
 0x230   : > { %v4123_v29 = vpop.f32.mrb[113].mxu0 }
 0x231   : > { %v4124_v52 = vadd.f32 %v4123_v29, %v4122_v45  ;;  %v4125_v34 = vpop.f32.mrb[114].mxu0 }
 0x232   : > { %v4126_v9 = vpop.f32.mrb[115].mxu0 }
 0x233   : > { %v4308_v8 = vpop.f32.mrb[80].mxu1  ;;  %v4127_v47 = vadd.f32 %v4126_v9, %v4125_v34  ;;  %v6400_v18 = vadd.f32 %v6240_v13, %v4124_v52 }
 0x234   : > { %v4357_v23 = vadd.f32 %v4356_v62, %v4308_v8  ;;  %v2880_v54 = vpop.f32.mrb[81].mxu1 }
 0x235   : > { %v4361_v61 = vadd.f32 %v6357_v39, %v2880_v54  ;;  %v4309_v49 = vpop.f32.mrb[82].mxu1  ;;  %v6404_v24 = vadd.f32 %v6242_v7, %v4127_v47 }
 0x236   : > { %v4365_v15 = vadd.f32 %v4364_v14, %v4309_v49  ;;  %v2883_v33 = vpop.f32.mrb[83].mxu1  ;;  %v3078_v27 = vmul.f32 %v4357_v23, %v4357_v23 }
 0x237   : > { %v4369_v37 = vadd.f32 %v6360_v2, %v2883_v33  ;;  %v4128_v63 = vpop.f32.mrb[116].mxu0  ;;  %v3076_v1 = vmul.f32 %v4361_v61, %v4361_v61 }
 0x238   : > { %v3684_v31 = vpack.c.bf16 %v4365_v15, %v4357_v23  ;;  %v4129_v16 = vpop.f32.mrb[117].mxu0  ;;  %v3079_v10 = vmul.f32 %v4365_v15, %v4365_v15 }
 0x239   : > { %v3039_v25 = vadd.f32 %v4369_v37, %v4361_v61  ;;  %v3077_v13 = vmul.f32 %v4369_v37, %v4369_v37  ;;  %v3679_v55 = vpack.c.bf16 %v4369_v37, %v4361_v61  ;;  %v4130_v62 = vadd.f32 %v4129_v16, %v4128_v63  ;;  %v4131_v21 = vpop.f32.mrb[118].mxu0 }
 0x23a   : > { %3771 = vst [vmem:[%s6409_s18 + $0x8] sm:$0xff] %v3684_v31   ;;  %v4132_v7 = vpop.f32.mrb[119].mxu0 }
 0x23b   : > { %v3040_v39 = vadd.f32 %v4357_v23, %v3039_v25  ;;  %v3108_v14 = vadd.f32 %v3077_v13, %v3076_v1  ;;  %3680 = vst [vmem:[%s6409_s18] sm:$0xff] %v3679_v55   ;;  %v4312_v2 = vpop.f32.mrb[84].mxu1  ;;  %v4133_v58 = vadd.f32 %v4132_v7, %v4131_v21  ;;  %v6414_v3 = vadd.f32 %v6248_v50, %v4130_v62 }
 0x23c   : > { %v4373_v42 = vadd.f32 %v6371_v0, %v4312_v2  ;;  %v2896_v32 = vpop.f32.mrb[85].mxu1 }
 0x23d   : > { %v3109_v59 = vadd.f32 %v3108_v14, %v3078_v27  ;;  %v4377_v19 = vadd.f32 %v6365_v26, %v2896_v32  ;;  %v3041_v4 = vadd.f32 %v4365_v15, %v3040_v39  ;;  %v4313_v45 = vpop.f32.mrb[86].mxu1  ;;  %v6419_v29 = vadd.f32 %v6250_v60, %v4133_v58 }
 0x23e   : > { %v4381_v52 = vadd.f32 %v6374_v20, %v4313_v45  ;;  %v2899_v34 = vpop.f32.mrb[87].mxu1  ;;  %v3082_v63 = vmul.f32 %v4373_v42, %v4373_v42 }
 0x23f   : > { %v3042_v9 = vadd.f32 %v4377_v19, %v3041_v4  ;;  %v3080_v8 = vmul.f32 %v4377_v19, %v4377_v19  ;;  %v3110_v50 = vadd.f32 %v3109_v59, %v3079_v10  ;;  %v4385_v47 = vadd.f32 %v6368_v43, %v2899_v34  ;;  %v4134_v0 = vpop.f32.mrb[120].mxu0 }
 0x240   : > { %v3694_v23 = vpack.c.bf16 %v4381_v52, %v4373_v42  ;;  %v4135_v54 = vpop.f32.mrb[121].mxu0  ;;  %v3083_v25 = vmul.f32 %v4381_v52, %v4381_v52 }
 0x241   : > { %v3111_v61 = vadd.f32 %v3110_v50, %v3080_v8  ;;  %v3043_v26 = vadd.f32 %v4385_v47, %v3042_v9  ;;  %v3081_v49 = vmul.f32 %v4385_v47, %v4385_v47  ;;  %v3689_v15 = vpack.c.bf16 %v4385_v47, %v4377_v19  ;;  %v4137_v33 = vpop.f32.mrb[122].mxu0 }
 0x242   : > { %3773 = vst [vmem:[%s6409_s18 + $0x18] sm:$0xff] %v3694_v23   ;;  %v4136_v60 = vadd.f32 %v4135_v54, %v4134_v0  ;;  %v4138_v37 = vpop.f32.mrb[123].mxu0 }
 0x243   : > { %v3044_v20 = vadd.f32 %v4373_v42, %v3043_v26  ;;  %v3112_v1 = vadd.f32 %v3111_v61, %v3081_v49  ;;  %3772 = vst [vmem:[%s6409_s18 + $0x10] sm:$0xff] %v3689_v15   ;;  %v4316_v31 = vpop.f32.mrb[88].mxu1  ;;  %v4139_v16 = vadd.f32 %v4138_v37, %v4137_v33 }
 0x244   : > { %v4389_v43 = vadd.f32 %v6383_v11, %v4316_v31  ;;  %v2912_v13 = vpop.f32.mrb[89].mxu1  ;;  %v6427_v55 = vadd.f32 %v6256_v41, %v4136_v60 }
 0x245   : > { %v3113_v62 = vadd.f32 %v3112_v1, %v3082_v63  ;;  %v4393_v21 = vadd.f32 %v6377_v51, %v2912_v13  ;;  %v3045_v27 = vadd.f32 %v4381_v52, %v3044_v20  ;;  %v4317_v7 = vpop.f32.mrb[90].mxu1  ;;  %v6431_v39 = vadd.f32 %v6258_v12, %v4139_v16 }
 0x246   : > { %v4397_v14 = vadd.f32 %v6386_v46, %v4317_v7  ;;  %v2915_v2 = vpop.f32.mrb[91].mxu1  ;;  %v3086_v9 = vmul.f32 %v4389_v43, %v4389_v43 }
 0x247   : > { %v3046_v58 = vadd.f32 %v4393_v21, %v3045_v27  ;;  %v3084_v10 = vmul.f32 %v4393_v21, %v4393_v21  ;;  %v3114_v42 = vadd.f32 %v3113_v62, %v3083_v25  ;;  %v4401_v11 = vadd.f32 %v6380_v28, %v2915_v2  ;;  %v4140_v41 = vpop.f32.mrb[124].mxu0 }
 0x248   : > { %v3704_v32 = vpack.c.bf16 %v4397_v14, %v4389_v43  ;;  %v4141_v59 = vpop.f32.mrb[125].mxu0  ;;  %v3087_v0 = vmul.f32 %v4397_v14, %v4397_v14 }
 0x249   : > { %v3115_v19 = vadd.f32 %v3114_v42, %v3084_v10  ;;  %v3047_v51 = vadd.f32 %v4401_v11, %v3046_v58  ;;  %v3085_v4 = vmul.f32 %v4401_v11, %v4401_v11  ;;  %v3699_v45 = vpack.c.bf16 %v4401_v11, %v4393_v21  ;;  %v4143_v52 = vpop.f32.mrb[126].mxu0 }
 0x24a   : > { %3775 = vst [vmem:[%s6409_s18 + $0x28] sm:$0xff] %v3704_v32   ;;  %v4142_v12 = vadd.f32 %v4141_v59, %v4140_v41  ;;  %v4144_v34 = vpop.f32.mrb[127].mxu0 }
 0x24b   : > { %v3048_v46 = vadd.f32 %v4389_v43, %v3047_v51  ;;  %v3116_v8 = vadd.f32 %v3115_v19, %v3085_v4  ;;  %3774 = vst [vmem:[%s6409_s18 + $0x20] sm:$0xff] %v3699_v45   ;;  %v4320_v50 = vpop.f32.mrb[92].mxu1  ;;  %v4145_v47 = vadd.f32 %v4144_v34, %v4143_v52 }
 0x24c   : > { %v4405_v28 = vadd.f32 %v6394_v5, %v4320_v50  ;;  %v2928_v23 = vpop.f32.mrb[93].mxu1  ;;  %v4431_v54 = vadd.f32 %v6265_v44, %v4142_v12 }
 0x24d   : > { %v3117_v61 = vadd.f32 %v3116_v8, %v3086_v9  ;;  %v4409_v26 = vadd.f32 %v6389_v35, %v2928_v23  ;;  %v3049_v49 = vadd.f32 %v4397_v14, %v3048_v46  ;;  %v4321_v15 = vpop.f32.mrb[94].mxu1  ;;  %v6441_v33 = vadd.f32 %v6269_v57, %v4145_v47 }
 0x24e   : > { %v4413_v60 = vadd.f32 %v6397_v48, %v4321_v15  ;;  %v2931_v37 = vpop.f32.mrb[95].mxu1  ;;  %v3090_v27 = vmul.f32 %v4405_v28, %v4405_v28 }
 0x24f   : > { %v3050_v63 = vadd.f32 %v4409_v26, %v3049_v49  ;;  %v3088_v20 = vmul.f32 %v4409_v26, %v4409_v26  ;;  %v3118_v1 = vadd.f32 %v3117_v61, %v3087_v0  ;;  %v4417_v5 = vadd.f32 %v6391_v40, %v2931_v37  ;;  %v4146_v31 = vpop.f32.mrb[128].mxu0 }
 0x250   : > { %v3714_v44 = vpack.c.bf16 %v4413_v60, %v4405_v28  ;;  %v4147_v16 = vpop.f32.mrb[129].mxu0  ;;  %v3091_v58 = vmul.f32 %v4413_v60, %v4413_v60 }
 0x251   : > { %v3119_v25 = vadd.f32 %v3118_v1, %v3088_v20  ;;  %v3051_v35 = vadd.f32 %v4417_v5, %v3050_v63  ;;  %v3089_v43 = vmul.f32 %v4417_v5, %v4417_v5  ;;  %v3709_v13 = vpack.c.bf16 %v4417_v5, %v4409_v26  ;;  %v4149_v62 = vpop.f32.mrb[130].mxu0 }
 0x252   : > { %3777 = vst [vmem:[%s6409_s18 + $0x38] sm:$0xff] %v3714_v44   ;;  %v4148_v57 = vadd.f32 %v4147_v16, %v4146_v31  ;;  %v4150_v21 = vpop.f32.mrb[131].mxu0 }
 0x253   : > { %v3052_v48 = vadd.f32 %v4405_v28, %v3051_v35  ;;  %v3120_v7 = vadd.f32 %v3119_v25, %v3089_v43  ;;  %3776 = vst [vmem:[%s6409_s18 + $0x30] sm:$0xff] %v3709_v13   ;;  %v4324_v14 = vpop.f32.mrb[0].mxu1  ;;  %v4151_v2 = vadd.f32 %v4150_v21, %v4149_v62 }
 0x254   : > { %v4420_v40 = vadd.f32 %v6414_v3, %v4324_v14  ;;  %v2944_v10 = vpop.f32.mrb[1].mxu1  ;;  %v6449_v42 = vadd.f32 %v6287_v22, %v4148_v57 }
 0x255   : > { %v3121_v11 = vadd.f32 %v3120_v7, %v3090_v27  ;;  %v4423_v41 = vadd.f32 %v6400_v18, %v2944_v10  ;;  %v3053_v32 = vadd.f32 %v4413_v60, %v3052_v48  ;;  %v4325_v59 = vpop.f32.mrb[2].mxu1  ;;  %v6453_v19 = vadd.f32 %v6291_v53, %v4151_v2 }
 0x256   : > { %v4426_v51 = vadd.f32 %v6419_v29, %v4325_v59  ;;  %v2947_v4 = vpop.f32.mrb[3].mxu1  ;;  %v3094_v28 = vmul.f32 %v4420_v40, %v4420_v40 }
 0x257   : > { %v3054_v45 = vadd.f32 %v4423_v41, %v3053_v32  ;;  %v3092_v52 = vmul.f32 %v4423_v41, %v4423_v41  ;;  %v3122_v12 = vadd.f32 %v3121_v11, %v3091_v58  ;;  %v4429_v3 = vadd.f32 %v6404_v24, %v2947_v4  ;;  %v4152_v22 = vpop.f32.mrb[132].mxu0 }
 0x258   : > { %v3724_v34 = vpack.c.bf16 %v4426_v51, %v4420_v40  ;;  %v4153_v9 = vpop.f32.mrb[133].mxu0  ;;  %v3095_v49 = vmul.f32 %v4426_v51, %v4426_v51 }
 0x259   : > { %v3123_v46 = vadd.f32 %v3122_v12, %v3092_v52  ;;  %v3055_v18 = vadd.f32 %v4429_v3, %v3054_v45  ;;  %v3093_v8 = vmul.f32 %v4429_v3, %v4429_v3  ;;  %v3719_v50 = vpack.c.bf16 %v4429_v3, %v4423_v41  ;;  %v4155_v47 = vpop.f32.mrb[134].mxu0 }
 0x25a   : > { %3779 = vst [vmem:[%s6409_s18 + $0x48] sm:$0xff] %v3724_v34   ;;  %v4154_v53 = vadd.f32 %v4153_v9, %v4152_v22  ;;  %v4156_v0 = vpop.f32.mrb[135].mxu0 }
 0x25b   : > { %v3056_v29 = vadd.f32 %v4420_v40, %v3055_v18  ;;  %v3124_v23 = vadd.f32 %v3123_v46, %v3093_v8  ;;  %3778 = vst [vmem:[%s6409_s18 + $0x40] sm:$0xff] %v3719_v50   ;;  %v4328_v61 = vpop.f32.mrb[4].mxu1  ;;  %v4157_v26 = vadd.f32 %v4156_v0, %v4155_v47 }
 0x25c   : > { %v4432_v15 = vadd.f32 %v4431_v54, %v4328_v61  ;;  %v2960_v24 = vpop.f32.mrb[5].mxu1  ;;  %v4443_v60 = vadd.f32 %v6309_v30, %v4154_v53 }
 0x25d   : > { %v3125_v37 = vadd.f32 %v3124_v23, %v3094_v28  ;;  %v4435_v63 = vadd.f32 %v6427_v55, %v2960_v24  ;;  %v3057_v20 = vadd.f32 %v4426_v51, %v3056_v29  ;;  %v4329_v1 = vpop.f32.mrb[6].mxu1  ;;  %v4449_v5 = vadd.f32 %v6313_v36, %v4157_v26 }
 0x25e   : > { %v4438_v31 = vadd.f32 %v6441_v33, %v4329_v1  ;;  %v2963_v44 = vpop.f32.mrb[7].mxu1  ;;  %v3098_v7 = vmul.f32 %v4432_v15, %v4432_v15 }
 0x25f   : > { %v3058_v16 = vadd.f32 %v4435_v63, %v3057_v20  ;;  %v3096_v25 = vmul.f32 %v4435_v63, %v4435_v63  ;;  %v3126_v35 = vadd.f32 %v3125_v37, %v3095_v49  ;;  %v4441_v54 = vadd.f32 %v6431_v39, %v2963_v44  ;;  %v4158_v43 = vpop.f32.mrb[136].mxu0 }
 0x260   : > { %v3734_v13 = vpack.c.bf16 %v4438_v31, %v4432_v15  ;;  %v4159_v30 = vpop.f32.mrb[137].mxu0  ;;  %v3099_v40 = vmul.f32 %v4438_v31, %v4438_v31 }
 0x261   : > { %v3127_v62 = vadd.f32 %v3126_v35, %v3096_v25  ;;  %v3059_v57 = vadd.f32 %v4441_v54, %v3058_v16  ;;  %v3097_v55 = vmul.f32 %v4441_v54, %v4441_v54  ;;  %v3729_v21 = vpack.c.bf16 %v4441_v54, %v4435_v63  ;;  %v4161_v27 = vpop.f32.mrb[138].mxu0 }
 0x262   : > { %3781 = vst [vmem:[%s6409_s18 + $0x58] sm:$0xff] %v3734_v13   ;;  %v4160_v48 = vadd.f32 %v4159_v30, %v4158_v43  ;;  %v4162_v36 = vpop.f32.mrb[139].mxu0 }
 0x263   : > { %v3060_v33 = vadd.f32 %v4432_v15, %v3059_v57  ;;  %v3128_v14 = vadd.f32 %v3127_v62, %v3097_v55  ;;  %3780 = vst [vmem:[%s6409_s18 + $0x50] sm:$0xff] %v3729_v21   ;;  %v4332_v2 = vpop.f32.mrb[8].mxu1  ;;  %v4163_v58 = vadd.f32 %v4162_v36, %v4161_v27 }
 0x264   : > { %v4444_v10 = vadd.f32 %v4443_v60, %v4332_v2  ;;  %v2976_v39 = vpop.f32.mrb[9].mxu1  ;;  %v4458_v11 = vadd.f32 %v6331_v17, %v4160_v48 }
 0x265   : > { %v3129_v41 = vadd.f32 %v3128_v14, %v3098_v7  ;;  %v4447_v32 = vadd.f32 %v6449_v42, %v2976_v39  ;;  %v3061_v59 = vadd.f32 %v4438_v31, %v3060_v33  ;;  %v4333_v51 = vpop.f32.mrb[10].mxu1  ;;  %v4464_v4 = vadd.f32 %v6335_v6, %v4163_v58 }
 0x266   : > { %v4450_v45 = vadd.f32 %v4449_v5, %v4333_v51  ;;  %v2979_v52 = vpop.f32.mrb[11].mxu1  ;;  %v3102_v6 = vmul.f32 %v4444_v10, %v4444_v10 }
 0x267   : > { %v3062_v12 = vadd.f32 %v4447_v32, %v3061_v59  ;;  %v3100_v3 = vmul.f32 %v4447_v32, %v4447_v32  ;;  %v3130_v22 = vadd.f32 %v3129_v41, %v3099_v40  ;;  %v4453_v34 = vadd.f32 %v6453_v19, %v2979_v52  ;;  %v4164_v9 = vpop.f32.mrb[140].mxu0 }
 0x268   : > { %v3744_v46 = vpack.c.bf16 %v4450_v45, %v4444_v10  ;;  %v4165_v18 = vpop.f32.mrb[141].mxu0  ;;  %v3103_v19 = vmul.f32 %v4450_v45, %v4450_v45 }
 0x269   : > { %v3131_v17 = vadd.f32 %v3130_v22, %v3100_v3  ;;  %v3063_v8 = vadd.f32 %v4453_v34, %v3062_v12  ;;  %v3101_v50 = vmul.f32 %v4453_v34, %v4453_v34  ;;  %v3739_v42 = vpack.c.bf16 %v4453_v34, %v4447_v32  ;;  %v4167_v47 = vpop.f32.mrb[142].mxu0 }
 0x26a   : > { %3783 = vst [vmem:[%s6409_s18 + $0x68] sm:$0xff] %v3744_v46   ;;  %v4166_v53 = vadd.f32 %v4165_v18, %v4164_v9  ;;  %v4168_v0 = vpop.f32.mrb[143].mxu0 }
 0x26b   : > { %v3064_v28 = vadd.f32 %v4444_v10, %v3063_v8  ;;  %v3132_v29 = vadd.f32 %v3131_v17, %v3101_v50  ;;  %3782 = vst [vmem:[%s6409_s18 + $0x60] sm:$0xff] %v3739_v42   ;;  %v4336_v23 = vpop.f32.mrb[12].mxu1  ;;  %v4169_v61 = vadd.f32 %v4168_v0, %v4167_v47 }
 0x26c   : > { %v4455_v26 = vadd.f32 %v6351_v56, %v4166_v53  ;;  %v2992_v49 = vpop.f32.mrb[13].mxu1 }
 0x26d   : > { %v3133_v15 = vadd.f32 %v3132_v29, %v3102_v6  ;;  %v4459_v24 = vadd.f32 %v4458_v11, %v2992_v49  ;;  %v3065_v60 = vadd.f32 %v4450_v45, %v3064_v28  ;;  %v4337_v37 = vpop.f32.mrb[14].mxu1  ;;  %v4461_v63 = vadd.f32 %v6354_v38, %v4169_v61 }
 0x26e   : > { %v4456_v20 = vadd.f32 %v4455_v26, %v4336_v23  ;;  %v2995_v1 = vpop.f32.mrb[15].mxu1 }
 0x26f   : > { %v3066_v5 = vadd.f32 %v4459_v24, %v3065_v60  ;;  %v3104_v31 = vmul.f32 %v4459_v24, %v4459_v24  ;;  %v3134_v44 = vadd.f32 %v3133_v15, %v3103_v19  ;;  %v4462_v16 = vadd.f32 %v4461_v63, %v4337_v37 }
 0x270   : > { %v4465_v25 = vadd.f32 %v4464_v4, %v2995_v1  ;;  %v3106_v38 = vmul.f32 %v4456_v20, %v4456_v20 }
 0x271   : > { %v3135_v56 = vadd.f32 %v3134_v44, %v3104_v31  ;;  %v3754_v35 = vpack.c.bf16 %v4462_v16, %v4456_v20  ;;  %v3107_v30 = vmul.f32 %v4462_v16, %v4462_v16 }
 0x272   : > { %v3067_v54 = vadd.f32 %v4465_v25, %v3066_v5  ;;  %v3105_v43 = vmul.f32 %v4465_v25, %v4465_v25  ;;  %v3749_v13 = vpack.c.bf16 %v4465_v25, %v4459_v24 }
 0x273   : > { %3785 = vst [vmem:[%s6409_s18 + $0x78] sm:$0xff] %v3754_v35  }
 0x274   : > { %v3068_v62 = vadd.f32 %v4456_v20, %v3067_v54  ;;  %v3136_v57 = vadd.f32 %v3135_v56, %v3105_v43  ;;  %3784 = vst [vmem:[%s6409_s18 + $0x70] sm:$0xff] %v3749_v13  }
 0x275   : > { %4743 = shalt.err (!%p4740_p7)
}
 0x276   : > { %s4744_s29 = scalar_lea.hbm %s6479_s25, 2048  ;;  %s4748_s7 = scalar_lea.hbm %s6560_s2, 4096 }
 0x277   : > { %p4745_p9 = scmp.ne.s32.totalorder %s6479_s25, %s4744_s29  ;;  %p4749_p5 = scmp.lt.u32.totalorder %s6479_s25, %s6560_s2 }
 0x278   : > { %p4750_p11 = scmp.lt.u32.totalorder %s4748_s7, %s4744_s29  ;;  %p4752_p4 = scmp.lt.u32.totalorder %s4744_s29, %s6479_s25 }
 0x279   : > { %p4746_p1 = pnand %p4745_p9, %p4958_p12 }
 0x27a   : > { %p4751_p2 = por %p4750_p11, %p4749_p5 }
 0x27b   : > { %p4747_p0 = pneg %p4746_p1 }
 0x27c   : > { %p4753_p6 = por %p4752_p4, %p4751_p2 }
 0x27e   : > { %p4754_p8 = pnand %p4753_p6, %p4747_p0 }
 0x280   : > { %4757 = shalt.err (!%p4754_p8)
}
 0x281   : > { %s4841_s18 = smov 64   ;;  %s4842_s20 = smov 4   ;;  %v3069_v55 = vadd.f32 %v4462_v16, %v3068_v62  ;;  %v3137_v21 = vadd.f32 %v3136_v57, %v3106_v38  ;;  %vm3145_vm2 = vcmask 1040384  }
 0x282   : > { %4520 = dma.vmem_to_hbm [thread:$0]  (%p4958_p12), %s6481_s8, 2048, %s6479_s25, %s3309_s5, %s4841_s18, %s4841_s18, %s4842_s20  }
 0x283   : > { %v3070_v27 = vrot.slane %v3069_v55, 4  ;;  %v3138_v48 = vadd.f32 %v3137_v21, %v3107_v30  ;;  %s3466_s9 = sshll.u32 %s5009_s6, 1  ;;  %s3575_s4 = sshll.u32 %s4885_s16, 5 }
 0x284   : > { %s214_s11 = scalar_lea.vmem [#allocation9], %s3466_s9  ;;  %s6514_s5 = scalar_lea.hbm %s6561_s3, %s3575_s4 }
 0x285   : > { %v3071_v36 = vadd.f32 %v3070_v27, %v3069_v55  ;;  %v3139_v7 = vrot.slane %v3138_v48, 4  ;;  %s3343_s27 = sshll.u32 %s214_s11, 4  ;;  %s3314_s28 = scalar_lea.sflag [#allocation10], %s5009_s6  ;;  %s6516_s27 = int_to_ptr.vmem [resolvable:$true] %s3343_s27 }
 0x286   : > { %s4758_s23 = scalar_lea.vmem %s6516_s27, 32  ;;  %s4843_s16 = smov [#allocation9]  }
 0x287   : > { %v3072_v33 = vrot.slane %v3071_v36, 2  ;;  %v3140_v14 = vadd.f32 %v3139_v7, %v3138_v48  ;;  %p4759_p10 = scmp.ne.s32.totalorder %s6516_s27, %s4758_s23  ;;  %s4762_s29 = sshll.u32 %s4843_s16, 4  ;;  %s4763_s29 = int_to_ptr.vmem [resolvable:$false] %s4762_s29 }
 0x288   : > { %s4764_s30 = scalar_lea.vmem %s4763_s29, 64  ;;  %p4765_p7 = scmp.lt.s32.totalorder %s6516_s27, %s4763_s29 }
 0x289   : > { %v3073_v2 = vadd.f32 %v3072_v33, %v3071_v36  ;;  %v3141_v58 = vrot.slane %v3140_v14, 2  ;;  %p4760_p13 = pnand %p4759_p10, %p4958_p12  ;;  %p4766_p9 = scmp.lt.s32.totalorder %s4764_s30, %s4758_s23 }
 0x28b   : > { %v3074_v40 = vrot.slane %v3073_v2, 1  ;;  %v3142_v10 = vadd.f32 %v3141_v58, %v3140_v14  ;;  %p4761_p3 = pneg %p4760_p13  ;;  %p4767_p1 = por %p4766_p9, %p4765_p7 }
 0x28d   : > { %v3143_v39 = vrot.slane %v3142_v10, 1  ;;  %v3075_v11 = vadd.f32 %v3074_v40, %v3073_v2  ;;  %p4768_p0 = pnand %p4767_p1, %p4761_p3 }
 0x28f   : > { %v3144_v41 = vadd.f32 %v3143_v39, %v3142_v10 }
 0x291   : > { %v3146_v32 = vsel %vm3145_vm2, %v3075_v11, %v3144_v41 }
 0x292   : > { %3147 = vst [vmem:[%s214_s11] sm:$0x3] %v3146_v32 }
 0x293   : > { %4771 = shalt.err (!%p4768_p0)
}
 0x294   : > { %s4772_s6 = scalar_lea.hbm %s6514_s5, 32  ;;  %s4776_s10 = scalar_lea.hbm %s6561_s3, 64 }
 0x295   : > { %p4773_p5 = scmp.ne.s32.totalorder %s6514_s5, %s4772_s6  ;;  %p4777_p4 = scmp.lt.u32.totalorder %s6514_s5, %s6561_s3 }
 0x296   : > { %p4778_p6 = scmp.lt.u32.totalorder %s4776_s10, %s4772_s6  ;;  %p4780_p10 = scmp.lt.u32.totalorder %s4772_s6, %s6514_s5 }
 0x297   : > { %p4774_p11 = pnand %p4773_p5, %p4958_p12 }
 0x298   : > { %p4779_p8 = por %p4778_p6, %p4777_p4 }
 0x299   : > { %p4775_p2 = pneg %p4774_p11 }
 0x29a   : > { %p4781_p13 = por %p4780_p10, %p4779_p8 }
 0x29c   : > { %p4782_p3 = pnand %p4781_p13, %p4775_p2 }
 0x29e   : > { %4785 = shalt.err (!%p4782_p3)
}
 0x29f   : > { %4521 = dma.vmem_to_hbm [thread:$0]  (%p4958_p12), %s6516_s27, 32, %s6514_s5, %s3314_s28  }
 0x2a0 PF: > { %s3355_s20 = sand.u32 1, %s4820_s12   ;;  %p6679_p7 = scmp.ne.s32.totalorder %s6599_s19, 0 }
 0x2a1   : > { %p6680_p9 = scmp.ge.s32.totalorder %s4832_s15, 2  ;;  %s3356_s9 = scalar_lea.sflag [#allocation5], %s3355_s20 }
 0x2a3   : > { %p4533_p1 = pnand %p6680_p9, %p6679_p7 }
 0x2a5   : > { %4811 = dma.done.wait (!%p4533_p1), %s3356_s9, 2048  }
 0x2a6   : > { %4813 = vsyncadd (!%p4533_p1), %s3356_s9, 4294965248  ;;  %s3365_s4 = scalar_lea.sflag [#allocation10], %s3355_s20 }
 0x2a7   : > { %4815 = dma.done.wait (!%p4533_p1), %s3365_s4, 32  }
 0x2a8   : > { %4817 = vsyncadd (!%p4533_p1), %s3365_s4, 4294967264  ;;  %p21_p12 = scmp.ge.s32.totalorder %s4920_s24, 4   ;;  %s6681_s12 = smov %s4824_s13 }
 0x2a9   : > { %s6682_s13 = smov %s4828_s14  ;;  %s6683_s14 = smov %s4954_s17 }
 0x2aa   : > { %s6684_s15 = smov %s4920_s24  ;;  %23 = sbr.rel (!%p21_p12) target bundleno = 8 (0x8), region = 99 }
 0x2b1   :  { %3370 = vsyncpa [#allocation4], 1 }
 0x2b2   :  { %3372 = vsyncpa [#allocation4 + $0x1], 1 }
 0x2b3   :  { %3373 = vsyncpa [#allocation7], 1 }
 0x2b4   :  { %3374 = vsyncpa [#allocation5], 1 }
 0x2b5   :  { %3376 = vsyncpa [#allocation5 + $0x1], 1 }
 0x2b6   :  { %3377 = vsyncpa [#allocation10], 1 }
 0x2b7   :  { %3379 = vsyncpa [#allocation10 + $0x1], 1 }

</bundles_post_ra>
